<compile_context>
chip_gen: v5e
topology: v5e:2x2
jax: 0.10.0
libtpu: 0.0.40
codegen_flags: <defaults>
</compile_context>

<pallas_src>
import functools

import jax
import jax.numpy as jnp
from jax import lax
from jax.experimental import pallas as pl
from jax.experimental.pallas import tpu as pltpu

K = 5  # Conv1d kernel size


def _vmem_limit_bytes(*arrays, extra_bytes=0):
    total = sum(int(a.size) * a.dtype.itemsize for a in arrays) + int(extra_bytes)
    # Size-aware scoped-VMEM cap: generous double-buffer margin, floor at 32 MiB,
    # capped at the smallest chip's physical VMEM (v7x: 64 MiB).
    return int(min(max(4 * total, 32 << 20), 64 << 20))


# --------------------------------------------------------------------------- #
# Kernel 1: conv block  (Conv1d+ReLU+BN, Conv1d+ReLU+BN, Dropout[eval], MaxPool)
#   one batch element per grid step, time-major pooled output
# --------------------------------------------------------------------------- #
def conv_block_kernel(x_ref, w1_ref, b1_ref, s1_ref, t1_ref,
                      w2_ref, b2_ref, s2_ref, t2_ref, o_ref, pool_scr):
    # x_ref : (L, Cin)      one batch element, channels-last
    # w1_ref: (K*Cin, H)    conv1 taps fused along the contraction dim (bf16)
    # w2_ref: (K, H, H)     conv2 per-tap weights (bf16)
    # b*/s*/t*: (1, H)      conv bias / folded-BN scale / folded-BN shift (f32)
    # o_ref : (Lo, H)       pooled output (time-major slice for this batch element)
    # pool_scr: (L, H) f32  VMEM scratch for the strided max-pool reads
    L = x_ref.shape[0]
    Lo, H = o_ref.shape

    # Hoisted halo masks, shared by both convs (JAX does not CSE broadcast_in_dim).
    t_idx = lax.broadcasted_iota(jnp.int32, (L, 1), 0)
    masks = {d: (t_idx + d >= 0) & (t_idx + d < L) for d in (-2, -1, 1, 2)}

    def shift_time(v, d):
        # out[t, :] = v[t + d, :] for 0 <= t + d < L, zero outside ('same' halo).
        # pltpu.roll (XLU slot) + precomputed mask (VPU); no padded scratch copies.
        if d == 0:
            return v
        rolled = pltpu.roll(v, shift=(-d) % L, axis=0)
        return jnp.where(masks[d], rolled, 0.0)

    # --- Conv1d(Cin->H, k=5, pad=2): all 5 taps fused into ONE MXU matmul ------
    # Cin is tiny, so per-tap matmuls waste the MXU contraction dim; concat the
    # shifted inputs to (L, K*Cin) and do a single (L,K*Cin)x(K*Cin,H) dot.
    x = x_ref[...]
    xcat = jnp.concatenate([shift_time(x, d) for d in (-2, -1, 0, 1, 2)], axis=1)
    h1 = jnp.dot(xcat.astype(jnp.bfloat16), w1_ref[...],
                 preferred_element_type=jnp.float32) + b1_ref[...]
    # ReLU -> BatchNorm1d (eval, folded)                       [module order]
    h1 = jnp.maximum(h1, 0.0) * s1_ref[...] + t1_ref[...]

    # --- Conv1d(H->H, k=5, pad=2): contraction dim is already H, keep 5 taps ---
    acc = jnp.zeros((L, H), jnp.float32)
    for k in range(K):
        acc = acc + jnp.dot(shift_time(h1, k - 2).astype(jnp.bfloat16), w2_ref[k],
                            preferred_element_type=jnp.float32)
    h2 = jnp.maximum(acc + b2_ref[...], 0.0) * s2_ref[...] + t2_ref[...]
    # Dropout (eval) = identity.

    # --- MaxPool1d(kernel=2, stride=2, padding=0) ------------------------------
    # Exact f32 pairwise max via two stride-2 sublane reads of a VMEM scratch
    # (replaces rev.2's two Precision.HIGHEST one-hot gather matmuls).
    pool_scr[...] = h2
    o_ref[...] = jnp.maximum(pool_scr[pl.ds(0, Lo, stride=2), :],
                             pool_scr[pl.ds(1, Lo, stride=2), :])


def conv_block_pallas(x, P):
    # x: (B, L, Cin) — exactly what the PyTorch forward receives before its
    # .transpose(1, 2); the kernel consumes it channels-last directly.
    B, L, Cin = x.shape
    H = P["w1"].shape[2]
    assert L % 2 == 0, "MaxPool1d(2,2,padding=0) assumes an even sequence length"
    Lo = L // 2

    # bf16 weights at the pallas_call boundary; taps fused for conv1.
    w1 = P["w1"].reshape(K * Cin, H).astype(jnp.bfloat16)
    w2 = P["w2"].astype(jnp.bfloat16)

    vec = pl.BlockSpec((1, H), lambda b: (0, 0))
    out4 = pl.pallas_call(
        conv_block_kernel,
        # (Lo, B, 1, H) row-major == time-major-flattened (T*B, H) with row t*B+b,
        # which is exactly the layout the GRU kernel wants (no host transpose).
        # The trailing unit dim keeps the out block's last two dims equal to the
        # full array dims (Mosaic (8,128) block rule); the reshape below is free.
        out_shape=jax.ShapeDtypeStruct((Lo, B, 1, H), jnp.float32),
        grid=(B,),
        in_specs=[
            pl.BlockSpec((None, L, Cin), lambda b: (b, 0, 0)),
            pl.BlockSpec((K * Cin, H), lambda b: (0, 0)),
            vec, vec, vec,
            pl.BlockSpec((K, H, H), lambda b: (0, 0, 0)),
            vec, vec, vec,
        ],
        out_specs=pl.BlockSpec((Lo, None, None, H), lambda b: (0, b, 0, 0)),
        scratch_shapes=[pltpu.VMEM((L, H), jnp.float32)],
        compiler_params=pltpu.CompilerParams(
            dimension_semantics=("parallel",),   # batch elements independent
            vmem_limit_bytes=_vmem_limit_bytes(
                x, w1, w2, P["b1"], P["s1"], P["t1"], P["b2"], P["s2"], P["t2"],
                extra_bytes=(Lo * B + L) * H * 4),
        ),
    )(x, w1, P["b1"], P["s1"], P["t1"], w2, P["b2"], P["s2"], P["t2"])
    return out4.reshape(Lo * B, H)   # (T*B, H), row = t*B + b  (free reshape)


# --------------------------------------------------------------------------- #
# Kernel 2: multi-layer GRU (hn[-1]) + FC head, fused in one kernel
# --------------------------------------------------------------------------- #
def gru_head_kernel(x_ref, wih_ref, whh_ref, bih_ref, bhh_ref,
                    wfc_ref, bfc_ref, sfc_ref, tfc_ref, wout_ref, bout_ref,
                    o_ref, seq_scr, gx_scr, *, T, B):
    # x_ref  : (T*B, H) f32   time-major-flattened conv output (row = t*B + b)
    # wih/whh: (NL, H, 3H)    bf16 fused gates, PyTorch order (r, z, n), pre-transposed
    # bih/bhh: (NL, 1, 3H)    f32
    # head   : wfc (H,H) bf16, bfc/sfc/tfc (1,H) f32, wout (H,OUT) bf16, bout (1,OUT) f32
    # o_ref  : (B, OUT) f32
    # seq_scr: (T*B, H) f32   layer l's output sequence (input of layer l+1)
    # gx_scr : (T*B, 3H) f32  hoisted input-to-hidden projections of current layer
    H = x_ref.shape[1]
    NL = wih_ref.shape[0]

    h_last = jnp.zeros((B, H), jnp.float32)
    for l in range(NL):                                    # static layer loop
        wih_l = wih_ref[l]                                 # (H, 3H)
        whh_l = whh_ref[l]                                 # (H, 3H)
        bih_l = bih_ref[l]                                 # (1, 3H)
        bhh_l = bhh_ref[l]                                 # (1, 3H)
        write_seq = (l + 1 < NL)                           # last layer only needs h

        # Input-to-hidden projections for the WHOLE sequence as ONE well-shaped
        # (T*B, H) x (H, 3H) MXU matmul, off the serial critical path; input bias
        # folded in once.  Layer 0 reads x_ref directly (no extra copy).
        x_in = x_ref[...] if l == 0 else seq_scr[...]
        gx_scr[...] = jnp.dot(x_in.astype(jnp.bfloat16), wih_l,
                              preferred_element_type=jnp.float32) + bih_l

        # Serial recurrence: one fused (B,H)x(H,3H) matmul per step; every
        # per-step slice is a contiguous block of B rows thanks to the layout.
        def step(t, h, whh_l=whh_l, bhh_l=bhh_l, write_seq=write_seq):
            gx_t = gx_scr[pl.ds(t * B, B), :]              # (B, 3H)
            gh = jnp.dot(h.astype(jnp.bfloat16), whh_l,
                         preferred_element_type=jnp.float32) + bhh_l
            r = jax.nn.sigmoid(gx_t[:, 0:H] + gh[:, 0:H])
            z = jax.nn.sigmoid(gx_t[:, H:2 * H] + gh[:, H:2 * H])
            n = jnp.tanh(gx_t[:, 2 * H:] + r * gh[:, 2 * H:])
            h_new = n + z * (h - n)                        # == (1-z)*n + z*h
            if write_seq:
                seq_scr[pl.ds(t * B, B), :] = h_new        # next layer's input
            return h_new

        # unroll=True: T is static; gives the LLO scheduler visibility to overlap
        # each step's MXU work with the EUP sigmoid/tanh and VPU gate math.
        h_last = lax.fori_loop(0, T, step, jnp.zeros((B, H), jnp.float32),
                               unroll=True)

    # Head fused into the epilogue: Dropout(eval)=id -> Linear -> BN(eval) -> Linear.
    y = jnp.dot(h_last.astype(jnp.bfloat16), wfc_ref[...],
                preferred_element_type=jnp.float32) + bfc_ref[...]
    y = y * sfc_ref[...] + tfc_ref[...]
    o_ref[...] = jnp.dot(y.astype(jnp.bfloat16), wout_ref[...],
                         preferred_element_type=jnp.float32) + bout_ref[...]


def gru_head_pallas(seq_flat, T, B, P):
    TB, H = seq_flat.shape
    NL = P["wih"].shape[0]
    OUT = P["wout"].shape[1]

    # bf16 weights at the boundary; biases / folded-BN parameters stay f32.
    wih = P["wih"].astype(jnp.bfloat16)
    whh = P["whh"].astype(jnp.bfloat16)
    wfc = P["wfc"].astype(jnp.bfloat16)
    wout = P["wout"].astype(jnp.bfloat16)

    def fs(shape):
        return pl.BlockSpec(shape, lambda i: (0,) * len(shape))

    kernel = functools.partial(gru_head_kernel, T=T, B=B)
    return pl.pallas_call(
        kernel,
        out_shape=jax.ShapeDtypeStruct((B, OUT), jnp.float32),
        grid=(1,),
        in_specs=[fs((TB, H)),
                  fs((NL, H, 3 * H)), fs((NL, H, 3 * H)),
                  fs((NL, 1, 3 * H)), fs((NL, 1, 3 * H)),
                  fs((H, H)), fs((1, H)), fs((1, H)), fs((1, H)),
                  fs((H, OUT)), fs((1, OUT))],
        out_specs=fs((B, OUT)),
        scratch_shapes=[pltpu.VMEM((TB, H), jnp.float32),
                        pltpu.VMEM((TB, 3 * H), jnp.float32)],
        compiler_params=pltpu.CompilerParams(
            dimension_semantics=("arbitrary",),
            vmem_limit_bytes=_vmem_limit_bytes(
                seq_flat, wih, whh, P["bih"], P["bhh"], wfc, P["bfc"],
                P["sfc"], P["tfc"], wout, P["bout"],
                extra_bytes=TB * 4 * H * 4 + B * OUT * 4),
        ),
    )(seq_flat, wih, whh, P["bih"], P["bhh"],
      wfc, P["bfc"], P["sfc"], P["tfc"], wout, P["bout"])


# --------------------------------------------------------------------------- #
# Full forward: conv block emits the time-major-flattened sequence directly;
# multi-layer GRU + FC head run in one fused kernel.
# --------------------------------------------------------------------------- #
@jax.jit
def convgru_forward(x, P):
    B = x.shape[0]
    seq_flat = conv_block_pallas(x, P)            # (T*B, H), row = t*B + b
    T = seq_flat.shape[0] // B
    return gru_head_pallas(seq_flat, T, B, P)     # (B, output_dim)


# --------------------------------------------------------------------------- #
# Pure-JAX reference (true-f32 matmuls, standard formulation, no Pallas).
# --------------------------------------------------------------------------- #
def ref_forward(x, P):
    B, L, Cin = x.shape
    H = P["w1"].shape[2]
    hp = lax.Precision.HIGHEST

    def conv1d(inp, w, b):
        Lq = inp.shape[1]
        xp = jnp.pad(inp, ((0, 0), (2, 2), (0, 0)))
        acc = jnp.zeros((inp.shape[0], Lq, w.shape[2]), jnp.float32)
        for k in range(K):
            acc = acc + jnp.einsum("blc,ch->blh", xp[:, k:k + Lq, :], w[k],
                                   precision=hp)
        return acc + b

    # Conv -> ReLU -> BN(eval) -> Conv -> ReLU -> BN(eval) -> Dropout(eval) -> MaxPool
    h = jnp.maximum(conv1d(x, P["w1"], P["b1"]), 0.0) * P["s1"] + P["t1"]
    h = jnp.maximum(conv1d(h, P["w2"], P["b2"]), 0.0) * P["s2"] + P["t2"]
    h = h.reshape(B, L // 2, 2, H).max(axis=2)            # MaxPool1d(2, 2)

    seq = jnp.transpose(h, (1, 0, 2))                     # (T, B, H)
    T = seq.shape[0]
    NL = P["wih"].shape[0]
    hcur = jnp.zeros((B, H), jnp.float32)
    for l in range(NL):
        hcur = jnp.zeros((B, H), jnp.float32)
        outs = []
        for t in range(T):
            gi = jnp.dot(seq[t], P["wih"][l], precision=hp) + P["bih"][l]
            gh = jnp.dot(hcur, P["whh"][l], precision=hp) + P["bhh"][l]
            r = jax.nn.sigmoid(gi[:, :H] + gh[:, :H])
            z = jax.nn.sigmoid(gi[:, H:2 * H] + gh[:, H:2 * H])
            n = jnp.tanh(gi[:, 2 * H:] + r * gh[:, 2 * H:])
            hcur = (1.0 - z) * n + z * hcur
            outs.append(hcur)
        seq = jnp.stack(outs, axis=0)

    y = jnp.dot(hcur, P["wfc"], precision=hp) + P["bfc"]
    y = y * P["sfc"] + P["tfc"]
    return jnp.dot(y, P["wout"], precision=hp) + P["bout"]


# --------------------------------------------------------------------------- #
if __name__ == "__main__":
    # Hyper-parameters consistent with the module's forward pass.
    B, L, Cin, H, OUT, NL = 2, 16, 4, 32, 3, 2   # batch, seq_len, input_dim, hidden, output_dim, num_layers
    EPS = 1e-5

    key = jax.random.PRNGKey(0)
    keys = iter(jax.random.split(key, 64))

    def rn(shape, scale=0.2):
        return scale * jax.random.normal(next(keys), shape, dtype=jnp.float32)

    def bn_fold(hdim):
        # gamma, beta, running_mean, running_var -> folded scale/shift (eval mode)
        gamma = 1.0 + rn((1, hdim), 0.1)
        beta = rn((1, hdim), 0.1)
        mean = rn((1, hdim), 0.1)
        var = 1.0 + 0.1 * jnp.abs(jax.random.normal(next(keys), (1, hdim), dtype=jnp.float32))
        scale = gamma / jnp.sqrt(var + EPS)
        shift = beta - mean * scale
        return scale, shift

    P = {}
    P["w1"], P["b1"] = rn((K, Cin, H), 0.25), rn((1, H), 0.1)    # Conv1d(Cin->H,k=5): weight[:,:,k].T
    P["s1"], P["t1"] = bn_fold(H)                                 # BatchNorm1d(H), eval
    P["w2"], P["b2"] = rn((K, H, H), 0.08), rn((1, H), 0.1)       # Conv1d(H->H,k=5)
    P["s2"], P["t2"] = bn_fold(H)
    # GRU(H, H, NL): weight_ih_l{l}.T / weight_hh_l{l}.T, gates fused (r, z, n).
    P["wih"] = rn((NL, H, 3 * H), 0.15)
    P["whh"] = rn((NL, H, 3 * H), 0.15)
    P["bih"] = rn((NL, 1, 3 * H), 0.1)
    P["bhh"] = rn((NL, 1, 3 * H), 0.1)
    P["wfc"], P["bfc"] = rn((H, H), 0.15), rn((1, H), 0.1)        # Linear(H->H)
    P["sfc"], P["tfc"] = bn_fold(H)                               # BatchNorm1d(H), eval
    P["wout"], P["bout"] = rn((H, OUT), 0.2), rn((1, OUT), 0.1)   # Linear(H->OUT)

    x = jax.random.normal(next(keys), (B, L, Cin), dtype=jnp.float32)

    out = convgru_forward(x, P)
    jax.block_until_ready(out)
    assert out.shape == (B, OUT), out.shape

    ref = ref_forward(x, P)
    # Kernel uses DEFAULT-precision bf16 MXU matmuls (f32 accumulation); the ref is
    # true f32, so the tolerance covers bf16 rounding compounded through the GRU.
    assert jnp.allclose(out, ref, atol=3e-2, rtol=3e-2), (out, ref)

    print("KERNEL_OK")
</pallas_src>

<mosaic_0001>
module attributes {stable_mosaic.version = 11 : i64} {
  func.func @conv_block_kernel(%arg0: i32, %arg1: memref<1x16x4xf32, #tpu.memory_space<vmem>>, %arg2: memref<20x32xbf16, #tpu.memory_space<vmem>>, %arg3: memref<1x32xf32, #tpu.memory_space<vmem>>, %arg4: memref<1x32xf32, #tpu.memory_space<vmem>>, %arg5: memref<1x32xf32, #tpu.memory_space<vmem>>, %arg6: memref<5x32x32xbf16, #tpu.memory_space<vmem>>, %arg7: memref<1x32xf32, #tpu.memory_space<vmem>>, %arg8: memref<1x32xf32, #tpu.memory_space<vmem>>, %arg9: memref<1x32xf32, #tpu.memory_space<vmem>>, %arg10: memref<8x1x1x32xf32, #tpu.memory_space<vmem>>, %arg11: memref<16x32xf32, #tpu.memory_space<vmem>>) attributes {dimension_semantics = [#tpu.dimension_semantics<parallel>], iteration_bounds = array<i64: 2>, scalar_prefetch = 0 : i64, scratch_operands = 1 : i64, tpu.core_type = #tpu.core_type<tc>, window_params = [{transform_indices = @transform_0, window_bounds = array<i64: 1, 16, 4>}, {pipeline_mode = #tpu.pipeline_mode<synchronous>, transform_indices = @transform_1, window_bounds = array<i64: 20, 32>}, {pipeline_mode = #tpu.pipeline_mode<synchronous>, transform_indices = @transform_2, window_bounds = array<i64: 1, 32>}, {pipeline_mode = #tpu.pipeline_mode<synchronous>, transform_indices = @transform_3, window_bounds = array<i64: 1, 32>}, {pipeline_mode = #tpu.pipeline_mode<synchronous>, transform_indices = @transform_4, window_bounds = array<i64: 1, 32>}, {pipeline_mode = #tpu.pipeline_mode<synchronous>, transform_indices = @transform_5, window_bounds = array<i64: 5, 32, 32>}, {pipeline_mode = #tpu.pipeline_mode<synchronous>, transform_indices = @transform_6, window_bounds = array<i64: 1, 32>}, {pipeline_mode = #tpu.pipeline_mode<synchronous>, transform_indices = @transform_7, window_bounds = array<i64: 1, 32>}, {pipeline_mode = #tpu.pipeline_mode<synchronous>, transform_indices = @transform_8, window_bounds = array<i64: 1, 32>}, {transform_indices = @transform_9, window_bounds = array<i64: 8, 1, 1, 32>}]} {
    %0 = tpu.iota {dimensions = array<i32: 0>} : vector<16x1xi32>
    %c-2_i32 = arith.constant -2 : i32
    %1 = vector.broadcast %c-2_i32 : i32 to vector<16x1xi32>
    %2 = arith.addi %0, %1 : vector<16x1xi32>
    %c0_i32 = arith.constant 0 : i32
    %3 = vector.broadcast %c0_i32 : i32 to vector<16x1xi32>
    %4 = arith.cmpi sge, %2, %3 : vector<16x1xi32>
    %c-2_i32_0 = arith.constant -2 : i32
    %5 = vector.broadcast %c-2_i32_0 : i32 to vector<16x1xi32>
    %6 = arith.addi %0, %5 : vector<16x1xi32>
    %c16_i32 = arith.constant 16 : i32
    %7 = vector.broadcast %c16_i32 : i32 to vector<16x1xi32>
    %8 = arith.cmpi slt, %6, %7 : vector<16x1xi32>
    %9 = arith.andi %4, %8 : vector<16x1xi1>
    %c-1_i32 = arith.constant -1 : i32
    %10 = vector.broadcast %c-1_i32 : i32 to vector<16x1xi32>
    %11 = arith.addi %0, %10 : vector<16x1xi32>
    %c0_i32_1 = arith.constant 0 : i32
    %12 = vector.broadcast %c0_i32_1 : i32 to vector<16x1xi32>
    %13 = arith.cmpi sge, %11, %12 : vector<16x1xi32>
    %c-1_i32_2 = arith.constant -1 : i32
    %14 = vector.broadcast %c-1_i32_2 : i32 to vector<16x1xi32>
    %15 = arith.addi %0, %14 : vector<16x1xi32>
    %c16_i32_3 = arith.constant 16 : i32
    %16 = vector.broadcast %c16_i32_3 : i32 to vector<16x1xi32>
    %17 = arith.cmpi slt, %15, %16 : vector<16x1xi32>
    %18 = arith.andi %13, %17 : vector<16x1xi1>
    %c1_i32 = arith.constant 1 : i32
    %19 = vector.broadcast %c1_i32 : i32 to vector<16x1xi32>
    %20 = arith.addi %0, %19 : vector<16x1xi32>
    %c0_i32_4 = arith.constant 0 : i32
    %21 = vector.broadcast %c0_i32_4 : i32 to vector<16x1xi32>
    %22 = arith.cmpi sge, %20, %21 : vector<16x1xi32>
    %c1_i32_5 = arith.constant 1 : i32
    %23 = vector.broadcast %c1_i32_5 : i32 to vector<16x1xi32>
    %24 = arith.addi %0, %23 : vector<16x1xi32>
    %c16_i32_6 = arith.constant 16 : i32
    %25 = vector.broadcast %c16_i32_6 : i32 to vector<16x1xi32>
    %26 = arith.cmpi slt, %24, %25 : vector<16x1xi32>
    %27 = arith.andi %22, %26 : vector<16x1xi1>
    %c2_i32 = arith.constant 2 : i32
    %28 = vector.broadcast %c2_i32 : i32 to vector<16x1xi32>
    %29 = arith.addi %0, %28 : vector<16x1xi32>
    %c0_i32_7 = arith.constant 0 : i32
    %30 = vector.broadcast %c0_i32_7 : i32 to vector<16x1xi32>
    %31 = arith.cmpi sge, %29, %30 : vector<16x1xi32>
    %c2_i32_8 = arith.constant 2 : i32
    %32 = vector.broadcast %c2_i32_8 : i32 to vector<16x1xi32>
    %33 = arith.addi %0, %32 : vector<16x1xi32>
    %c16_i32_9 = arith.constant 16 : i32
    %34 = vector.broadcast %c16_i32_9 : i32 to vector<16x1xi32>
    %35 = arith.cmpi slt, %33, %34 : vector<16x1xi32>
    %36 = arith.andi %31, %35 : vector<16x1xi1>
    %c0 = arith.constant 0 : index
    %c0_10 = arith.constant 0 : index
    %c0_11 = arith.constant 0 : index
    %37 = vector.load %arg1[%c0, %c0_10, %c0_11] : memref<1x16x4xf32, #tpu.memory_space<vmem>>, vector<1x16x4xf32>
    %38 = vector.shape_cast %37 : vector<1x16x4xf32> to vector<16x4xf32>
    %c2_i32_12 = arith.constant 2 : i32
    %39 = tpu.dynamic_rotate %38 by %c2_i32_12 dim 0 : vector<16x4xf32>, i32 -> vector<16x4xf32>
    %cst = arith.constant 0.000000e+00 : f32
    %40 = vector.shape_cast %9 : vector<16x1xi1> to vector<16x1xi1>
    %41 = vector.broadcast %40 : vector<16x1xi1> to vector<16x4xi1>
    %42 = vector.broadcast %cst : f32 to vector<16x4xf32>
    %43 = arith.select %41, %39, %42 : vector<16x4xi1>, vector<16x4xf32>
    %c1_i32_13 = arith.constant 1 : i32
    %44 = tpu.dynamic_rotate %38 by %c1_i32_13 dim 0 : vector<16x4xf32>, i32 -> vector<16x4xf32>
    %cst_14 = arith.constant 0.000000e+00 : f32
    %45 = vector.shape_cast %18 : vector<16x1xi1> to vector<16x1xi1>
    %46 = vector.broadcast %45 : vector<16x1xi1> to vector<16x4xi1>
    %47 = vector.broadcast %cst_14 : f32 to vector<16x4xf32>
    %48 = arith.select %46, %44, %47 : vector<16x4xi1>, vector<16x4xf32>
    %c15_i32 = arith.constant 15 : i32
    %49 = tpu.dynamic_rotate %38 by %c15_i32 dim 0 : vector<16x4xf32>, i32 -> vector<16x4xf32>
    %cst_15 = arith.constant 0.000000e+00 : f32
    %50 = vector.shape_cast %27 : vector<16x1xi1> to vector<16x1xi1>
    %51 = vector.broadcast %50 : vector<16x1xi1> to vector<16x4xi1>
    %52 = vector.broadcast %cst_15 : f32 to vector<16x4xf32>
    %53 = arith.select %51, %49, %52 : vector<16x4xi1>, vector<16x4xf32>
    %c14_i32 = arith.constant 14 : i32
    %54 = tpu.dynamic_rotate %38 by %c14_i32 dim 0 : vector<16x4xf32>, i32 -> vector<16x4xf32>
    %cst_16 = arith.constant 0.000000e+00 : f32
    %55 = vector.shape_cast %36 : vector<16x1xi1> to vector<16x1xi1>
    %56 = vector.broadcast %55 : vector<16x1xi1> to vector<16x4xi1>
    %57 = vector.broadcast %cst_16 : f32 to vector<16x4xf32>
    %58 = arith.select %56, %54, %57 : vector<16x4xi1>, vector<16x4xf32>
    %59 = tpu.concatenate %43, %48, %38, %53, %58 in 1 : vector<16x4xf32>, vector<16x4xf32>, vector<16x4xf32>, vector<16x4xf32>, vector<16x4xf32> -> vector<16x20xf32>
    %60 = arith.truncf %59 : vector<16x20xf32> to vector<16x20xbf16>
    %c0_17 = arith.constant 0 : index
    %c0_18 = arith.constant 0 : index
    %61 = vector.load %arg2[%c0_17, %c0_18] : memref<20x32xbf16, #tpu.memory_space<vmem>>, vector<20x32xbf16>
    %cst_19 = arith.constant dense<0.000000e+00> : vector<16x32xf32>
    %62 = tpu.matmul %60, %61, %cst_19 {dimension_numbers = #tpu.dot_dimension_numbers<[1], [0], [0], [1], [0, 0, 1, 1], [], []>} : vector<16x20xbf16>, vector<20x32xbf16>, vector<16x32xf32> -> vector<16x32xf32>
    %c0_20 = arith.constant 0 : index
    %c0_21 = arith.constant 0 : index
    %63 = vector.load %arg3[%c0_20, %c0_21] : memref<1x32xf32, #tpu.memory_space<vmem>>, vector<1x32xf32>
    %64 = vector.broadcast %63 : vector<1x32xf32> to vector<16x32xf32>
    %65 = arith.addf %62, %64 : vector<16x32xf32>
    %cst_22 = arith.constant 0.000000e+00 : f32
    %66 = vector.broadcast %cst_22 : f32 to vector<16x32xf32>
    %67 = arith.maximumf %65, %66 : vector<16x32xf32>
    %c0_23 = arith.constant 0 : index
    %c0_24 = arith.constant 0 : index
    %68 = vector.load %arg4[%c0_23, %c0_24] : memref<1x32xf32, #tpu.memory_space<vmem>>, vector<1x32xf32>
    %69 = vector.broadcast %68 : vector<1x32xf32> to vector<16x32xf32>
    %70 = arith.mulf %67, %69 : vector<16x32xf32>
    %c0_25 = arith.constant 0 : index
    %c0_26 = arith.constant 0 : index
    %71 = vector.load %arg5[%c0_25, %c0_26] : memref<1x32xf32, #tpu.memory_space<vmem>>, vector<1x32xf32>
    %72 = vector.broadcast %71 : vector<1x32xf32> to vector<16x32xf32>
    %73 = arith.addf %70, %72 : vector<16x32xf32>
    %cst_27 = arith.constant 0.000000e+00 : f32
    %74 = vector.broadcast %cst_27 : f32 to vector<16x32xf32>
    %c2_i32_28 = arith.constant 2 : i32
    %75 = tpu.dynamic_rotate %73 by %c2_i32_28 dim 0 : vector<16x32xf32>, i32 -> vector<16x32xf32>
    %cst_29 = arith.constant 0.000000e+00 : f32
    %76 = vector.shape_cast %9 : vector<16x1xi1> to vector<16x1xi1>
    %77 = vector.broadcast %76 : vector<16x1xi1> to vector<16x32xi1>
    %78 = vector.broadcast %cst_29 : f32 to vector<16x32xf32>
    %79 = arith.select %77, %75, %78 : vector<16x32xi1>, vector<16x32xf32>
    %80 = arith.truncf %79 : vector<16x32xf32> to vector<16x32xbf16>
    %c0_30 = arith.constant 0 : index
    %c0_31 = arith.constant 0 : index
    %c0_32 = arith.constant 0 : index
    %81 = vector.load %arg6[%c0_30, %c0_31, %c0_32] : memref<5x32x32xbf16, #tpu.memory_space<vmem>>, vector<1x32x32xbf16>
    %82 = vector.shape_cast %81 : vector<1x32x32xbf16> to vector<32x32xbf16>
    %cst_33 = arith.constant dense<0.000000e+00> : vector<16x32xf32>
    %83 = tpu.matmul %80, %82, %cst_33 {dimension_numbers = #tpu.dot_dimension_numbers<[1], [0], [0], [1], [0, 0, 1, 1], [], []>} : vector<16x32xbf16>, vector<32x32xbf16>, vector<16x32xf32> -> vector<16x32xf32>
    %84 = arith.addf %74, %83 : vector<16x32xf32>
    %c1_i32_34 = arith.constant 1 : i32
    %85 = tpu.dynamic_rotate %73 by %c1_i32_34 dim 0 : vector<16x32xf32>, i32 -> vector<16x32xf32>
    %cst_35 = arith.constant 0.000000e+00 : f32
    %86 = vector.shape_cast %18 : vector<16x1xi1> to vector<16x1xi1>
    %87 = vector.broadcast %86 : vector<16x1xi1> to vector<16x32xi1>
    %88 = vector.broadcast %cst_35 : f32 to vector<16x32xf32>
    %89 = arith.select %87, %85, %88 : vector<16x32xi1>, vector<16x32xf32>
    %90 = arith.truncf %89 : vector<16x32xf32> to vector<16x32xbf16>
    %c1 = arith.constant 1 : index
    %c0_36 = arith.constant 0 : index
    %c0_37 = arith.constant 0 : index
    %91 = vector.load %arg6[%c1, %c0_36, %c0_37] : memref<5x32x32xbf16, #tpu.memory_space<vmem>>, vector<1x32x32xbf16>
    %92 = vector.shape_cast %91 : vector<1x32x32xbf16> to vector<32x32xbf16>
    %cst_38 = arith.constant dense<0.000000e+00> : vector<16x32xf32>
    %93 = tpu.matmul %90, %92, %cst_38 {dimension_numbers = #tpu.dot_dimension_numbers<[1], [0], [0], [1], [0, 0, 1, 1], [], []>} : vector<16x32xbf16>, vector<32x32xbf16>, vector<16x32xf32> -> vector<16x32xf32>
    %94 = arith.addf %84, %93 : vector<16x32xf32>
    %95 = arith.truncf %73 : vector<16x32xf32> to vector<16x32xbf16>
    %c2 = arith.constant 2 : index
    %c0_39 = arith.constant 0 : index
    %c0_40 = arith.constant 0 : index
    %96 = vector.load %arg6[%c2, %c0_39, %c0_40] : memref<5x32x32xbf16, #tpu.memory_space<vmem>>, vector<1x32x32xbf16>
    %97 = vector.shape_cast %96 : vector<1x32x32xbf16> to vector<32x32xbf16>
    %cst_41 = arith.constant dense<0.000000e+00> : vector<16x32xf32>
    %98 = tpu.matmul %95, %97, %cst_41 {dimension_numbers = #tpu.dot_dimension_numbers<[1], [0], [0], [1], [0, 0, 1, 1], [], []>} : vector<16x32xbf16>, vector<32x32xbf16>, vector<16x32xf32> -> vector<16x32xf32>
    %99 = arith.addf %94, %98 : vector<16x32xf32>
    %c15_i32_42 = arith.constant 15 : i32
    %100 = tpu.dynamic_rotate %73 by %c15_i32_42 dim 0 : vector<16x32xf32>, i32 -> vector<16x32xf32>
    %cst_43 = arith.constant 0.000000e+00 : f32
    %101 = vector.shape_cast %27 : vector<16x1xi1> to vector<16x1xi1>
    %102 = vector.broadcast %101 : vector<16x1xi1> to vector<16x32xi1>
    %103 = vector.broadcast %cst_43 : f32 to vector<16x32xf32>
    %104 = arith.select %102, %100, %103 : vector<16x32xi1>, vector<16x32xf32>
    %105 = arith.truncf %104 : vector<16x32xf32> to vector<16x32xbf16>
    %c3 = arith.constant 3 : index
    %c0_44 = arith.constant 0 : index
    %c0_45 = arith.constant 0 : index
    %106 = vector.load %arg6[%c3, %c0_44, %c0_45] : memref<5x32x32xbf16, #tpu.memory_space<vmem>>, vector<1x32x32xbf16>
    %107 = vector.shape_cast %106 : vector<1x32x32xbf16> to vector<32x32xbf16>
    %cst_46 = arith.constant dense<0.000000e+00> : vector<16x32xf32>
    %108 = tpu.matmul %105, %107, %cst_46 {dimension_numbers = #tpu.dot_dimension_numbers<[1], [0], [0], [1], [0, 0, 1, 1], [], []>} : vector<16x32xbf16>, vector<32x32xbf16>, vector<16x32xf32> -> vector<16x32xf32>
    %109 = arith.addf %99, %108 : vector<16x32xf32>
    %c14_i32_47 = arith.constant 14 : i32
    %110 = tpu.dynamic_rotate %73 by %c14_i32_47 dim 0 : vector<16x32xf32>, i32 -> vector<16x32xf32>
    %cst_48 = arith.constant 0.000000e+00 : f32
    %111 = vector.shape_cast %36 : vector<16x1xi1> to vector<16x1xi1>
    %112 = vector.broadcast %111 : vector<16x1xi1> to vector<16x32xi1>
    %113 = vector.broadcast %cst_48 : f32 to vector<16x32xf32>
    %114 = arith.select %112, %110, %113 : vector<16x32xi1>, vector<16x32xf32>
    %115 = arith.truncf %114 : vector<16x32xf32> to vector<16x32xbf16>
    %c4 = arith.constant 4 : index
    %c0_49 = arith.constant 0 : index
    %c0_50 = arith.constant 0 : index
    %116 = vector.load %arg6[%c4, %c0_49, %c0_50] : memref<5x32x32xbf16, #tpu.memory_space<vmem>>, vector<1x32x32xbf16>
    %117 = vector.shape_cast %116 : vector<1x32x32xbf16> to vector<32x32xbf16>
    %cst_51 = arith.constant dense<0.000000e+00> : vector<16x32xf32>
    %118 = tpu.matmul %115, %117, %cst_51 {dimension_numbers = #tpu.dot_dimension_numbers<[1], [0], [0], [1], [0, 0, 1, 1], [], []>} : vector<16x32xbf16>, vector<32x32xbf16>, vector<16x32xf32> -> vector<16x32xf32>
    %119 = arith.addf %109, %118 : vector<16x32xf32>
    %c0_52 = arith.constant 0 : index
    %c0_53 = arith.constant 0 : index
    %120 = vector.load %arg7[%c0_52, %c0_53] : memref<1x32xf32, #tpu.memory_space<vmem>>, vector<1x32xf32>
    %121 = vector.broadcast %120 : vector<1x32xf32> to vector<16x32xf32>
    %122 = arith.addf %119, %121 : vector<16x32xf32>
    %cst_54 = arith.constant 0.000000e+00 : f32
    %123 = vector.broadcast %cst_54 : f32 to vector<16x32xf32>
    %124 = arith.maximumf %122, %123 : vector<16x32xf32>
    %c0_55 = arith.constant 0 : index
    %c0_56 = arith.constant 0 : index
    %125 = vector.load %arg8[%c0_55, %c0_56] : memref<1x32xf32, #tpu.memory_space<vmem>>, vector<1x32xf32>
    %126 = vector.broadcast %125 : vector<1x32xf32> to vector<16x32xf32>
    %127 = arith.mulf %124, %126 : vector<16x32xf32>
    %c0_57 = arith.constant 0 : index
    %c0_58 = arith.constant 0 : index
    %128 = vector.load %arg9[%c0_57, %c0_58] : memref<1x32xf32, #tpu.memory_space<vmem>>, vector<1x32xf32>
    %129 = vector.broadcast %128 : vector<1x32xf32> to vector<16x32xf32>
    %130 = arith.addf %127, %129 : vector<16x32xf32>
    %c0_59 = arith.constant 0 : index
    %c0_60 = arith.constant 0 : index
    %131 = vector.load %arg11[%c0_59, %c0_60] : memref<16x32xf32, #tpu.memory_space<vmem>>, vector<16x32xf32>
    tpu.vector_store %arg11[%c0_59, %c0_60], %130 {strides = array<i32>} : memref<16x32xf32, #tpu.memory_space<vmem>>, vector<16x32xf32>,
    %c0_61 = arith.constant 0 : index
    %c0_62 = arith.constant 0 : index
    %132 = tpu.strided_load %arg11[%c0_61, %c0_62] {strides = array<i32: 2, 1>} : memref<16x32xf32, #tpu.memory_space<vmem>>, vector<8x32xf32>
    %c1_63 = arith.constant 1 : index
    %c0_64 = arith.constant 0 : index
    %133 = tpu.strided_load %arg11[%c1_63, %c0_64] {strides = array<i32: 2, 1>} : memref<16x32xf32, #tpu.memory_space<vmem>>, vector<8x32xf32>
    %134 = arith.maximumf %132, %133 : vector<8x32xf32>
    %c0_65 = arith.constant 0 : index
    %c0_66 = arith.constant 0 : index
    %c0_67 = arith.constant 0 : index
    %c0_68 = arith.constant 0 : index
    %135 = vector.load %arg10[%c0_65, %c0_66, %c0_67, %c0_68] : memref<8x1x1x32xf32, #tpu.memory_space<vmem>>, vector<8x1x1x32xf32>
    %136 = vector.shape_cast %135 : vector<8x1x1x32xf32> to vector<8x32xf32>
    %137 = vector.shape_cast %134 : vector<8x32xf32> to vector<8x1x1x32xf32>
    tpu.vector_store %arg10[%c0_65, %c0_66, %c0_67, %c0_68], %137 {strides = array<i32>} : memref<8x1x1x32xf32, #tpu.memory_space<vmem>>, vector<8x1x1x32xf32>,
    return
  }
  func.func @transform_0(%arg0: i32) -> (i32, i32, i32) {
    %c0_i32 = arith.constant 0 : i32
    %c0_i32_0 = arith.constant 0 : i32
    %c0_i32_1 = arith.constant 0 : i32
    return %arg0, %c0_i32, %c0_i32_0 : i32, i32, i32
  }
  func.func @transform_1(%arg0: i32) -> (i32, i32) {
    %c0_i32 = arith.constant 0 : i32
    %c0_i32_0 = arith.constant 0 : i32
    %c0_i32_1 = arith.constant 0 : i32
    return %c0_i32, %c0_i32_0 : i32, i32
  }
  func.func @transform_2(%arg0: i32) -> (i32, i32) {
    %c0_i32 = arith.constant 0 : i32
    %c0_i32_0 = arith.constant 0 : i32
    %c0_i32_1 = arith.constant 0 : i32
    return %c0_i32, %c0_i32_0 : i32, i32
  }
  func.func @transform_3(%arg0: i32) -> (i32, i32) {
    %c0_i32 = arith.constant 0 : i32
    %c0_i32_0 = arith.constant 0 : i32
    %c0_i32_1 = arith.constant 0 : i32
    return %c0_i32, %c0_i32_0 : i32, i32
  }
  func.func @transform_4(%arg0: i32) -> (i32, i32) {
    %c0_i32 = arith.constant 0 : i32
    %c0_i32_0 = arith.constant 0 : i32
    %c0_i32_1 = arith.constant 0 : i32
    return %c0_i32, %c0_i32_0 : i32, i32
  }
  func.func @transform_5(%arg0: i32) -> (i32, i32, i32) {
    %c0_i32 = arith.constant 0 : i32
    %c0_i32_0 = arith.constant 0 : i32
    %c0_i32_1 = arith.constant 0 : i32
    %c0_i32_2 = arith.constant 0 : i32
    return %c0_i32, %c0_i32_0, %c0_i32_1 : i32, i32, i32
  }
  func.func @transform_6(%arg0: i32) -> (i32, i32) {
    %c0_i32 = arith.constant 0 : i32
    %c0_i32_0 = arith.constant 0 : i32
    %c0_i32_1 = arith.constant 0 : i32
    return %c0_i32, %c0_i32_0 : i32, i32
  }
  func.func @transform_7(%arg0: i32) -> (i32, i32) {
    %c0_i32 = arith.constant 0 : i32
    %c0_i32_0 = arith.constant 0 : i32
    %c0_i32_1 = arith.constant 0 : i32
    return %c0_i32, %c0_i32_0 : i32, i32
  }
  func.func @transform_8(%arg0: i32) -> (i32, i32) {
    %c0_i32 = arith.constant 0 : i32
    %c0_i32_0 = arith.constant 0 : i32
    %c0_i32_1 = arith.constant 0 : i32
    return %c0_i32, %c0_i32_0 : i32, i32
  }
  func.func @transform_9(%arg0: i32) -> (i32, i32, i32, i32) {
    %c0_i32 = arith.constant 0 : i32
    %c0_i32_0 = arith.constant 0 : i32
    %c0_i32_1 = arith.constant 0 : i32
    %c0_i32_2 = arith.constant 0 : i32
    return %c0_i32, %arg0, %c0_i32_0, %c0_i32_1 : i32, i32, i32, i32
  }
}

module attributes {stable_mosaic.version = 11 : i64} {
  func.func @gru_head_kernel(%arg0: i32, %arg1: memref<16x32xf32, #tpu.memory_space<vmem>>, %arg2: memref<2x32x96xbf16, #tpu.memory_space<vmem>>, %arg3: memref<2x32x96xbf16, #tpu.memory_space<vmem>>, %arg4: memref<2x1x96xf32, #tpu.memory_space<vmem>>, %arg5: memref<2x1x96xf32, #tpu.memory_space<vmem>>, %arg6: memref<32x32xbf16, #tpu.memory_space<vmem>>, %arg7: memref<1x32xf32, #tpu.memory_space<vmem>>, %arg8: memref<1x32xf32, #tpu.memory_space<vmem>>, %arg9: memref<1x32xf32, #tpu.memory_space<vmem>>, %arg10: memref<32x3xbf16, #tpu.memory_space<vmem>>, %arg11: memref<1x3xf32, #tpu.memory_space<vmem>>, %arg12: memref<2x3xf32, #tpu.memory_space<vmem>>, %arg13: memref<16x32xf32, #tpu.memory_space<vmem>>, %arg14: memref<16x96xf32, #tpu.memory_space<vmem>>) attributes {dimension_semantics = [#tpu.dimension_semantics<arbitrary>], iteration_bounds = array<i64: 1>, scalar_prefetch = 0 : i64, scratch_operands = 2 : i64, tpu.core_type = #tpu.core_type<tc>, window_params = [{pipeline_mode = #tpu.pipeline_mode<synchronous>, transform_indices = @transform_0, window_bounds = array<i64: 16, 32>}, {pipeline_mode = #tpu.pipeline_mode<synchronous>, transform_indices = @transform_1, window_bounds = array<i64: 2, 32, 96>}, {pipeline_mode = #tpu.pipeline_mode<synchronous>, transform_indices = @transform_2, window_bounds = array<i64: 2, 32, 96>}, {pipeline_mode = #tpu.pipeline_mode<synchronous>, transform_indices = @transform_3, window_bounds = array<i64: 2, 1, 96>}, {pipeline_mode = #tpu.pipeline_mode<synchronous>, transform_indices = @transform_4, window_bounds = array<i64: 2, 1, 96>}, {pipeline_mode = #tpu.pipeline_mode<synchronous>, transform_indices = @transform_5, window_bounds = array<i64: 32, 32>}, {pipeline_mode = #tpu.pipeline_mode<synchronous>, transform_indices = @transform_6, window_bounds = array<i64: 1, 32>}, {pipeline_mode = #tpu.pipeline_mode<synchronous>, transform_indices = @transform_7, window_bounds = array<i64: 1, 32>}, {pipeline_mode = #tpu.pipeline_mode<synchronous>, transform_indices = @transform_8, window_bounds = array<i64: 1, 32>}, {pipeline_mode = #tpu.pipeline_mode<synchronous>, transform_indices = @transform_9, window_bounds = array<i64: 32, 3>}, {pipeline_mode = #tpu.pipeline_mode<synchronous>, transform_indices = @transform_10, window_bounds = array<i64: 1, 3>}, {pipeline_mode = #tpu.pipeline_mode<synchronous>, transform_indices = @transform_11, window_bounds = array<i64: 2, 3>}]} {
    %c0 = arith.constant 0 : index
    %c0_0 = arith.constant 0 : index
    %c0_1 = arith.constant 0 : index
    %0 = vector.load %arg2[%c0, %c0_0, %c0_1] : memref<2x32x96xbf16, #tpu.memory_space<vmem>>, vector<1x32x96xbf16>
    %1 = vector.shape_cast %0 : vector<1x32x96xbf16> to vector<32x96xbf16>
    %c0_2 = arith.constant 0 : index
    %c0_3 = arith.constant 0 : index
    %c0_4 = arith.constant 0 : index
    %2 = vector.load %arg3[%c0_2, %c0_3, %c0_4] : memref<2x32x96xbf16, #tpu.memory_space<vmem>>, vector<1x32x96xbf16>
    %3 = vector.shape_cast %2 : vector<1x32x96xbf16> to vector<32x96xbf16>
    %c0_5 = arith.constant 0 : index
    %c0_6 = arith.constant 0 : index
    %c0_7 = arith.constant 0 : index
    %4 = vector.load %arg4[%c0_5, %c0_6, %c0_7] : memref<2x1x96xf32, #tpu.memory_space<vmem>>, vector<1x1x96xf32>
    %5 = vector.shape_cast %4 : vector<1x1x96xf32> to vector<1x96xf32>
    %c0_8 = arith.constant 0 : index
    %c0_9 = arith.constant 0 : index
    %c0_10 = arith.constant 0 : index
    %6 = vector.load %arg5[%c0_8, %c0_9, %c0_10] : memref<2x1x96xf32, #tpu.memory_space<vmem>>, vector<1x1x96xf32>
    %7 = vector.shape_cast %6 : vector<1x1x96xf32> to vector<1x96xf32>
    %c0_11 = arith.constant 0 : index
    %c0_12 = arith.constant 0 : index
    %8 = vector.load %arg1[%c0_11, %c0_12] : memref<16x32xf32, #tpu.memory_space<vmem>>, vector<16x32xf32>
    %9 = arith.truncf %8 : vector<16x32xf32> to vector<16x32xbf16>
    %cst = arith.constant dense<0.000000e+00> : vector<16x96xf32>
    %10 = tpu.matmul %9, %1, %cst {dimension_numbers = #tpu.dot_dimension_numbers<[1], [0], [0], [1], [0, 0, 1, 1], [], []>} : vector<16x32xbf16>, vector<32x96xbf16>, vector<16x96xf32> -> vector<16x96xf32>
    %11 = vector.broadcast %5 : vector<1x96xf32> to vector<16x96xf32>
    %12 = arith.addf %10, %11 : vector<16x96xf32>
    %c0_13 = arith.constant 0 : index
    %c0_14 = arith.constant 0 : index
    %13 = vector.load %arg14[%c0_13, %c0_14] : memref<16x96xf32, #tpu.memory_space<vmem>>, vector<16x96xf32>
    tpu.vector_store %arg14[%c0_13, %c0_14], %12 {strides = array<i32>} : memref<16x96xf32, #tpu.memory_space<vmem>>, vector<16x96xf32>,
    %cst_15 = arith.constant 0.000000e+00 : f32
    %14 = vector.broadcast %cst_15 : f32 to vector<2x32xf32>
    %c0_i32 = arith.constant 0 : i32
    %c2_i32 = arith.constant 2 : i32
    %15 = arith.muli %c0_i32, %c2_i32 : i32
    %16 = arith.index_cast %15 : i32 to index
    %c0_16 = arith.constant 0 : index
    %17 = vector.load %arg14[%16, %c0_16] : memref<16x96xf32, #tpu.memory_space<vmem>>, vector<2x96xf32>
    %18 = arith.truncf %14 : vector<2x32xf32> to vector<2x32xbf16>
    %cst_17 = arith.constant dense<0.000000e+00> : vector<2x96xf32>
    %19 = tpu.matmul %18, %3, %cst_17 {dimension_numbers = #tpu.dot_dimension_numbers<[1], [0], [0], [1], [0, 0, 1, 1], [], []>} : vector<2x32xbf16>, vector<32x96xbf16>, vector<2x96xf32> -> vector<2x96xf32>
    %20 = vector.broadcast %7 : vector<1x96xf32> to vector<2x96xf32>
    %21 = arith.addf %19, %20 : vector<2x96xf32>
    %22 = vector.extract_strided_slice %17 {offsets = [0, 0], sizes = [2, 32], strides = [1, 1]} : vector<2x96xf32> to vector<2x32xf32>
    %23 = vector.extract_strided_slice %21 {offsets = [0, 0], sizes = [2, 32], strides = [1, 1]} : vector<2x96xf32> to vector<2x32xf32>
    %24 = arith.addf %22, %23 : vector<2x32xf32>
    %25 = arith.negf %24 : vector<2x32xf32>
    %26 = math.exp %25 : vector<2x32xf32>
    %cst_18 = arith.constant 1.000000e+00 : f32
    %27 = vector.broadcast %cst_18 : f32 to vector<2x32xf32>
    %28 = arith.addf %27, %26 : vector<2x32xf32>
    %29 = arith.divf %27, %28 : vector<2x32xf32>
    %30 = vector.extract_strided_slice %17 {offsets = [0, 32], sizes = [2, 32], strides = [1, 1]} : vector<2x96xf32> to vector<2x32xf32>
    %31 = vector.extract_strided_slice %21 {offsets = [0, 32], sizes = [2, 32], strides = [1, 1]} : vector<2x96xf32> to vector<2x32xf32>
    %32 = arith.addf %30, %31 : vector<2x32xf32>
    %33 = arith.negf %32 : vector<2x32xf32>
    %34 = math.exp %33 : vector<2x32xf32>
    %cst_19 = arith.constant 1.000000e+00 : f32
    %35 = vector.broadcast %cst_19 : f32 to vector<2x32xf32>
    %36 = arith.addf %35, %34 : vector<2x32xf32>
    %37 = arith.divf %35, %36 : vector<2x32xf32>
    %38 = vector.extract_strided_slice %17 {offsets = [0, 64], sizes = [2, 32], strides = [1, 1]} : vector<2x96xf32> to vector<2x32xf32>
    %39 = vector.extract_strided_slice %21 {offsets = [0, 64], sizes = [2, 32], strides = [1, 1]} : vector<2x96xf32> to vector<2x32xf32>
    %40 = arith.mulf %29, %39 : vector<2x32xf32>
    %41 = arith.addf %38, %40 : vector<2x32xf32>
    %42 = math.tanh %41 : vector<2x32xf32>
    %43 = arith.subf %14, %42 : vector<2x32xf32>
    %44 = arith.mulf %37, %43 : vector<2x32xf32>
    %45 = arith.addf %42, %44 : vector<2x32xf32>
    %c2_i32_20 = arith.constant 2 : i32
    %46 = arith.muli %c0_i32, %c2_i32_20 : i32
    %47 = arith.index_cast %46 : i32 to index
    %c0_21 = arith.constant 0 : index
    %48 = vector.load %arg13[%47, %c0_21] : memref<16x32xf32, #tpu.memory_space<vmem>>, vector<2x32xf32>
    tpu.vector_store %arg13[%47, %c0_21], %45 {strides = array<i32>} : memref<16x32xf32, #tpu.memory_space<vmem>>, vector<2x32xf32>,
    %c1_i32 = arith.constant 1 : i32
    %c2_i32_22 = arith.constant 2 : i32
    %49 = arith.muli %c1_i32, %c2_i32_22 : i32
    %50 = arith.index_cast %49 : i32 to index
    %c0_23 = arith.constant 0 : index
    %51 = vector.load %arg14[%50, %c0_23] : memref<16x96xf32, #tpu.memory_space<vmem>>, vector<2x96xf32>
    %52 = arith.truncf %45 : vector<2x32xf32> to vector<2x32xbf16>
    %cst_24 = arith.constant dense<0.000000e+00> : vector<2x96xf32>
    %53 = tpu.matmul %52, %3, %cst_24 {dimension_numbers = #tpu.dot_dimension_numbers<[1], [0], [0], [1], [0, 0, 1, 1], [], []>} : vector<2x32xbf16>, vector<32x96xbf16>, vector<2x96xf32> -> vector<2x96xf32>
    %54 = vector.broadcast %7 : vector<1x96xf32> to vector<2x96xf32>
    %55 = arith.addf %53, %54 : vector<2x96xf32>
    %56 = vector.extract_strided_slice %51 {offsets = [0, 0], sizes = [2, 32], strides = [1, 1]} : vector<2x96xf32> to vector<2x32xf32>
    %57 = vector.extract_strided_slice %55 {offsets = [0, 0], sizes = [2, 32], strides = [1, 1]} : vector<2x96xf32> to vector<2x32xf32>
    %58 = arith.addf %56, %57 : vector<2x32xf32>
    %59 = arith.negf %58 : vector<2x32xf32>
    %60 = math.exp %59 : vector<2x32xf32>
    %cst_25 = arith.constant 1.000000e+00 : f32
    %61 = vector.broadcast %cst_25 : f32 to vector<2x32xf32>
    %62 = arith.addf %61, %60 : vector<2x32xf32>
    %63 = arith.divf %61, %62 : vector<2x32xf32>
    %64 = vector.extract_strided_slice %51 {offsets = [0, 32], sizes = [2, 32], strides = [1, 1]} : vector<2x96xf32> to vector<2x32xf32>
    %65 = vector.extract_strided_slice %55 {offsets = [0, 32], sizes = [2, 32], strides = [1, 1]} : vector<2x96xf32> to vector<2x32xf32>
    %66 = arith.addf %64, %65 : vector<2x32xf32>
    %67 = arith.negf %66 : vector<2x32xf32>
    %68 = math.exp %67 : vector<2x32xf32>
    %cst_26 = arith.constant 1.000000e+00 : f32
    %69 = vector.broadcast %cst_26 : f32 to vector<2x32xf32>
    %70 = arith.addf %69, %68 : vector<2x32xf32>
    %71 = arith.divf %69, %70 : vector<2x32xf32>
    %72 = vector.extract_strided_slice %51 {offsets = [0, 64], sizes = [2, 32], strides = [1, 1]} : vector<2x96xf32> to vector<2x32xf32>
    %73 = vector.extract_strided_slice %55 {offsets = [0, 64], sizes = [2, 32], strides = [1, 1]} : vector<2x96xf32> to vector<2x32xf32>
    %74 = arith.mulf %63, %73 : vector<2x32xf32>
    %75 = arith.addf %72, %74 : vector<2x32xf32>
    %76 = math.tanh %75 : vector<2x32xf32>
    %77 = arith.subf %45, %76 : vector<2x32xf32>
    %78 = arith.mulf %71, %77 : vector<2x32xf32>
    %79 = arith.addf %76, %78 : vector<2x32xf32>
    %c2_i32_27 = arith.constant 2 : i32
    %80 = arith.muli %c1_i32, %c2_i32_27 : i32
    %81 = arith.index_cast %80 : i32 to index
    %c0_28 = arith.constant 0 : index
    %82 = vector.load %arg13[%81, %c0_28] : memref<16x32xf32, #tpu.memory_space<vmem>>, vector<2x32xf32>
    tpu.vector_store %arg13[%81, %c0_28], %79 {strides = array<i32>} : memref<16x32xf32, #tpu.memory_space<vmem>>, vector<2x32xf32>,
    %c2_i32_29 = arith.constant 2 : i32
    %c2_i32_30 = arith.constant 2 : i32
    %83 = arith.muli %c2_i32_29, %c2_i32_30 : i32
    %84 = arith.index_cast %83 : i32 to index
    %c0_31 = arith.constant 0 : index
    %85 = vector.load %arg14[%84, %c0_31] : memref<16x96xf32, #tpu.memory_space<vmem>>, vector<2x96xf32>
    %86 = arith.truncf %79 : vector<2x32xf32> to vector<2x32xbf16>
    %cst_32 = arith.constant dense<0.000000e+00> : vector<2x96xf32>
    %87 = tpu.matmul %86, %3, %cst_32 {dimension_numbers = #tpu.dot_dimension_numbers<[1], [0], [0], [1], [0, 0, 1, 1], [], []>} : vector<2x32xbf16>, vector<32x96xbf16>, vector<2x96xf32> -> vector<2x96xf32>
    %88 = vector.broadcast %7 : vector<1x96xf32> to vector<2x96xf32>
    %89 = arith.addf %87, %88 : vector<2x96xf32>
    %90 = vector.extract_strided_slice %85 {offsets = [0, 0], sizes = [2, 32], strides = [1, 1]} : vector<2x96xf32> to vector<2x32xf32>
    %91 = vector.extract_strided_slice %89 {offsets = [0, 0], sizes = [2, 32], strides = [1, 1]} : vector<2x96xf32> to vector<2x32xf32>
    %92 = arith.addf %90, %91 : vector<2x32xf32>
    %93 = arith.negf %92 : vector<2x32xf32>
    %94 = math.exp %93 : vector<2x32xf32>
    %cst_33 = arith.constant 1.000000e+00 : f32
    %95 = vector.broadcast %cst_33 : f32 to vector<2x32xf32>
    %96 = arith.addf %95, %94 : vector<2x32xf32>
    %97 = arith.divf %95, %96 : vector<2x32xf32>
    %98 = vector.extract_strided_slice %85 {offsets = [0, 32], sizes = [2, 32], strides = [1, 1]} : vector<2x96xf32> to vector<2x32xf32>
    %99 = vector.extract_strided_slice %89 {offsets = [0, 32], sizes = [2, 32], strides = [1, 1]} : vector<2x96xf32> to vector<2x32xf32>
    %100 = arith.addf %98, %99 : vector<2x32xf32>
    %101 = arith.negf %100 : vector<2x32xf32>
    %102 = math.exp %101 : vector<2x32xf32>
    %cst_34 = arith.constant 1.000000e+00 : f32
    %103 = vector.broadcast %cst_34 : f32 to vector<2x32xf32>
    %104 = arith.addf %103, %102 : vector<2x32xf32>
    %105 = arith.divf %103, %104 : vector<2x32xf32>
    %106 = vector.extract_strided_slice %85 {offsets = [0, 64], sizes = [2, 32], strides = [1, 1]} : vector<2x96xf32> to vector<2x32xf32>
    %107 = vector.extract_strided_slice %89 {offsets = [0, 64], sizes = [2, 32], strides = [1, 1]} : vector<2x96xf32> to vector<2x32xf32>
    %108 = arith.mulf %97, %107 : vector<2x32xf32>
    %109 = arith.addf %106, %108 : vector<2x32xf32>
    %110 = math.tanh %109 : vector<2x32xf32>
    %111 = arith.subf %79, %110 : vector<2x32xf32>
    %112 = arith.mulf %105, %111 : vector<2x32xf32>
    %113 = arith.addf %110, %112 : vector<2x32xf32>
    %c2_i32_35 = arith.constant 2 : i32
    %114 = arith.muli %c2_i32_29, %c2_i32_35 : i32
    %115 = arith.index_cast %114 : i32 to index
    %c0_36 = arith.constant 0 : index
    %116 = vector.load %arg13[%115, %c0_36] : memref<16x32xf32, #tpu.memory_space<vmem>>, vector<2x32xf32>
    tpu.vector_store %arg13[%115, %c0_36], %113 {strides = array<i32>} : memref<16x32xf32, #tpu.memory_space<vmem>>, vector<2x32xf32>,
    %c3_i32 = arith.constant 3 : i32
    %c2_i32_37 = arith.constant 2 : i32
    %117 = arith.muli %c3_i32, %c2_i32_37 : i32
    %118 = arith.index_cast %117 : i32 to index
    %c0_38 = arith.constant 0 : index
    %119 = vector.load %arg14[%118, %c0_38] : memref<16x96xf32, #tpu.memory_space<vmem>>, vector<2x96xf32>
    %120 = arith.truncf %113 : vector<2x32xf32> to vector<2x32xbf16>
    %cst_39 = arith.constant dense<0.000000e+00> : vector<2x96xf32>
    %121 = tpu.matmul %120, %3, %cst_39 {dimension_numbers = #tpu.dot_dimension_numbers<[1], [0], [0], [1], [0, 0, 1, 1], [], []>} : vector<2x32xbf16>, vector<32x96xbf16>, vector<2x96xf32> -> vector<2x96xf32>
    %122 = vector.broadcast %7 : vector<1x96xf32> to vector<2x96xf32>
    %123 = arith.addf %121, %122 : vector<2x96xf32>
    %124 = vector.extract_strided_slice %119 {offsets = [0, 0], sizes = [2, 32], strides = [1, 1]} : vector<2x96xf32> to vector<2x32xf32>
    %125 = vector.extract_strided_slice %123 {offsets = [0, 0], sizes = [2, 32], strides = [1, 1]} : vector<2x96xf32> to vector<2x32xf32>
    %126 = arith.addf %124, %125 : vector<2x32xf32>
    %127 = arith.negf %126 : vector<2x32xf32>
    %128 = math.exp %127 : vector<2x32xf32>
    %cst_40 = arith.constant 1.000000e+00 : f32
    %129 = vector.broadcast %cst_40 : f32 to vector<2x32xf32>
    %130 = arith.addf %129, %128 : vector<2x32xf32>
    %131 = arith.divf %129, %130 : vector<2x32xf32>
    %132 = vector.extract_strided_slice %119 {offsets = [0, 32], sizes = [2, 32], strides = [1, 1]} : vector<2x96xf32> to vector<2x32xf32>
    %133 = vector.extract_strided_slice %123 {offsets = [0, 32], sizes = [2, 32], strides = [1, 1]} : vector<2x96xf32> to vector<2x32xf32>
    %134 = arith.addf %132, %133 : vector<2x32xf32>
    %135 = arith.negf %134 : vector<2x32xf32>
    %136 = math.exp %135 : vector<2x32xf32>
    %cst_41 = arith.constant 1.000000e+00 : f32
    %137 = vector.broadcast %cst_41 : f32 to vector<2x32xf32>
    %138 = arith.addf %137, %136 : vector<2x32xf32>
    %139 = arith.divf %137, %138 : vector<2x32xf32>
    %140 = vector.extract_strided_slice %119 {offsets = [0, 64], sizes = [2, 32], strides = [1, 1]} : vector<2x96xf32> to vector<2x32xf32>
    %141 = vector.extract_strided_slice %123 {offsets = [0, 64], sizes = [2, 32], strides = [1, 1]} : vector<2x96xf32> to vector<2x32xf32>
    %142 = arith.mulf %131, %141 : vector<2x32xf32>
    %143 = arith.addf %140, %142 : vector<2x32xf32>
    %144 = math.tanh %143 : vector<2x32xf32>
    %145 = arith.subf %113, %144 : vector<2x32xf32>
    %146 = arith.mulf %139, %145 : vector<2x32xf32>
    %147 = arith.addf %144, %146 : vector<2x32xf32>
    %c2_i32_42 = arith.constant 2 : i32
    %148 = arith.muli %c3_i32, %c2_i32_42 : i32
    %149 = arith.index_cast %148 : i32 to index
    %c0_43 = arith.constant 0 : index
    %150 = vector.load %arg13[%149, %c0_43] : memref<16x32xf32, #tpu.memory_space<vmem>>, vector<2x32xf32>
    tpu.vector_store %arg13[%149, %c0_43], %147 {strides = array<i32>} : memref<16x32xf32, #tpu.memory_space<vmem>>, vector<2x32xf32>,
    %c4_i32 = arith.constant 4 : i32
    %c2_i32_44 = arith.constant 2 : i32
    %151 = arith.muli %c4_i32, %c2_i32_44 : i32
    %152 = arith.index_cast %151 : i32 to index
    %c0_45 = arith.constant 0 : index
    %153 = vector.load %arg14[%152, %c0_45] : memref<16x96xf32, #tpu.memory_space<vmem>>, vector<2x96xf32>
    %154 = arith.truncf %147 : vector<2x32xf32> to vector<2x32xbf16>
    %cst_46 = arith.constant dense<0.000000e+00> : vector<2x96xf32>
    %155 = tpu.matmul %154, %3, %cst_46 {dimension_numbers = #tpu.dot_dimension_numbers<[1], [0], [0], [1], [0, 0, 1, 1], [], []>} : vector<2x32xbf16>, vector<32x96xbf16>, vector<2x96xf32> -> vector<2x96xf32>
    %156 = vector.broadcast %7 : vector<1x96xf32> to vector<2x96xf32>
    %157 = arith.addf %155, %156 : vector<2x96xf32>
    %158 = vector.extract_strided_slice %153 {offsets = [0, 0], sizes = [2, 32], strides = [1, 1]} : vector<2x96xf32> to vector<2x32xf32>
    %159 = vector.extract_strided_slice %157 {offsets = [0, 0], sizes = [2, 32], strides = [1, 1]} : vector<2x96xf32> to vector<2x32xf32>
    %160 = arith.addf %158, %159 : vector<2x32xf32>
    %161 = arith.negf %160 : vector<2x32xf32>
    %162 = math.exp %161 : vector<2x32xf32>
    %cst_47 = arith.constant 1.000000e+00 : f32
    %163 = vector.broadcast %cst_47 : f32 to vector<2x32xf32>
    %164 = arith.addf %163, %162 : vector<2x32xf32>
    %165 = arith.divf %163, %164 : vector<2x32xf32>
    %166 = vector.extract_strided_slice %153 {offsets = [0, 32], sizes = [2, 32], strides = [1, 1]} : vector<2x96xf32> to vector<2x32xf32>
    %167 = vector.extract_strided_slice %157 {offsets = [0, 32], sizes = [2, 32], strides = [1, 1]} : vector<2x96xf32> to vector<2x32xf32>
    %168 = arith.addf %166, %167 : vector<2x32xf32>
    %169 = arith.negf %168 : vector<2x32xf32>
    %170 = math.exp %169 : vector<2x32xf32>
    %cst_48 = arith.constant 1.000000e+00 : f32
    %171 = vector.broadcast %cst_48 : f32 to vector<2x32xf32>
    %172 = arith.addf %171, %170 : vector<2x32xf32>
    %173 = arith.divf %171, %172 : vector<2x32xf32>
    %174 = vector.extract_strided_slice %153 {offsets = [0, 64], sizes = [2, 32], strides = [1, 1]} : vector<2x96xf32> to vector<2x32xf32>
    %175 = vector.extract_strided_slice %157 {offsets = [0, 64], sizes = [2, 32], strides = [1, 1]} : vector<2x96xf32> to vector<2x32xf32>
    %176 = arith.mulf %165, %175 : vector<2x32xf32>
    %177 = arith.addf %174, %176 : vector<2x32xf32>
    %178 = math.tanh %177 : vector<2x32xf32>
    %179 = arith.subf %147, %178 : vector<2x32xf32>
    %180 = arith.mulf %173, %179 : vector<2x32xf32>
    %181 = arith.addf %178, %180 : vector<2x32xf32>
    %c2_i32_49 = arith.constant 2 : i32
    %182 = arith.muli %c4_i32, %c2_i32_49 : i32
    %183 = arith.index_cast %182 : i32 to index
    %c0_50 = arith.constant 0 : index
    %184 = vector.load %arg13[%183, %c0_50] : memref<16x32xf32, #tpu.memory_space<vmem>>, vector<2x32xf32>
    tpu.vector_store %arg13[%183, %c0_50], %181 {strides = array<i32>} : memref<16x32xf32, #tpu.memory_space<vmem>>, vector<2x32xf32>,
    %c5_i32 = arith.constant 5 : i32
    %c2_i32_51 = arith.constant 2 : i32
    %185 = arith.muli %c5_i32, %c2_i32_51 : i32
    %186 = arith.index_cast %185 : i32 to index
    %c0_52 = arith.constant 0 : index
    %187 = vector.load %arg14[%186, %c0_52] : memref<16x96xf32, #tpu.memory_space<vmem>>, vector<2x96xf32>
    %188 = arith.truncf %181 : vector<2x32xf32> to vector<2x32xbf16>
    %cst_53 = arith.constant dense<0.000000e+00> : vector<2x96xf32>
    %189 = tpu.matmul %188, %3, %cst_53 {dimension_numbers = #tpu.dot_dimension_numbers<[1], [0], [0], [1], [0, 0, 1, 1], [], []>} : vector<2x32xbf16>, vector<32x96xbf16>, vector<2x96xf32> -> vector<2x96xf32>
    %190 = vector.broadcast %7 : vector<1x96xf32> to vector<2x96xf32>
    %191 = arith.addf %189, %190 : vector<2x96xf32>
    %192 = vector.extract_strided_slice %187 {offsets = [0, 0], sizes = [2, 32], strides = [1, 1]} : vector<2x96xf32> to vector<2x32xf32>
    %193 = vector.extract_strided_slice %191 {offsets = [0, 0], sizes = [2, 32], strides = [1, 1]} : vector<2x96xf32> to vector<2x32xf32>
    %194 = arith.addf %192, %193 : vector<2x32xf32>
    %195 = arith.negf %194 : vector<2x32xf32>
    %196 = math.exp %195 : vector<2x32xf32>
    %cst_54 = arith.constant 1.000000e+00 : f32
    %197 = vector.broadcast %cst_54 : f32 to vector<2x32xf32>
    %198 = arith.addf %197, %196 : vector<2x32xf32>
    %199 = arith.divf %197, %198 : vector<2x32xf32>
    %200 = vector.extract_strided_slice %187 {offsets = [0, 32], sizes = [2, 32], strides = [1, 1]} : vector<2x96xf32> to vector<2x32xf32>
    %201 = vector.extract_strided_slice %191 {offsets = [0, 32], sizes = [2, 32], strides = [1, 1]} : vector<2x96xf32> to vector<2x32xf32>
    %202 = arith.addf %200, %201 : vector<2x32xf32>
    %203 = arith.negf %202 : vector<2x32xf32>
    %204 = math.exp %203 : vector<2x32xf32>
    %cst_55 = arith.constant 1.000000e+00 : f32
    %205 = vector.broadcast %cst_55 : f32 to vector<2x32xf32>
    %206 = arith.addf %205, %204 : vector<2x32xf32>
    %207 = arith.divf %205, %206 : vector<2x32xf32>
    %208 = vector.extract_strided_slice %187 {offsets = [0, 64], sizes = [2, 32], strides = [1, 1]} : vector<2x96xf32> to vector<2x32xf32>
    %209 = vector.extract_strided_slice %191 {offsets = [0, 64], sizes = [2, 32], strides = [1, 1]} : vector<2x96xf32> to vector<2x32xf32>
    %210 = arith.mulf %199, %209 : vector<2x32xf32>
    %211 = arith.addf %208, %210 : vector<2x32xf32>
    %212 = math.tanh %211 : vector<2x32xf32>
    %213 = arith.subf %181, %212 : vector<2x32xf32>
    %214 = arith.mulf %207, %213 : vector<2x32xf32>
    %215 = arith.addf %212, %214 : vector<2x32xf32>
    %c2_i32_56 = arith.constant 2 : i32
    %216 = arith.muli %c5_i32, %c2_i32_56 : i32
    %217 = arith.index_cast %216 : i32 to index
    %c0_57 = arith.constant 0 : index
    %218 = vector.load %arg13[%217, %c0_57] : memref<16x32xf32, #tpu.memory_space<vmem>>, vector<2x32xf32>
    tpu.vector_store %arg13[%217, %c0_57], %215 {strides = array<i32>} : memref<16x32xf32, #tpu.memory_space<vmem>>, vector<2x32xf32>,
    %c6_i32 = arith.constant 6 : i32
    %c2_i32_58 = arith.constant 2 : i32
    %219 = arith.muli %c6_i32, %c2_i32_58 : i32
    %220 = arith.index_cast %219 : i32 to index
    %c0_59 = arith.constant 0 : index
    %221 = vector.load %arg14[%220, %c0_59] : memref<16x96xf32, #tpu.memory_space<vmem>>, vector<2x96xf32>
    %222 = arith.truncf %215 : vector<2x32xf32> to vector<2x32xbf16>
    %cst_60 = arith.constant dense<0.000000e+00> : vector<2x96xf32>
    %223 = tpu.matmul %222, %3, %cst_60 {dimension_numbers = #tpu.dot_dimension_numbers<[1], [0], [0], [1], [0, 0, 1, 1], [], []>} : vector<2x32xbf16>, vector<32x96xbf16>, vector<2x96xf32> -> vector<2x96xf32>
    %224 = vector.broadcast %7 : vector<1x96xf32> to vector<2x96xf32>
    %225 = arith.addf %223, %224 : vector<2x96xf32>
    %226 = vector.extract_strided_slice %221 {offsets = [0, 0], sizes = [2, 32], strides = [1, 1]} : vector<2x96xf32> to vector<2x32xf32>
    %227 = vector.extract_strided_slice %225 {offsets = [0, 0], sizes = [2, 32], strides = [1, 1]} : vector<2x96xf32> to vector<2x32xf32>
    %228 = arith.addf %226, %227 : vector<2x32xf32>
    %229 = arith.negf %228 : vector<2x32xf32>
    %230 = math.exp %229 : vector<2x32xf32>
    %cst_61 = arith.constant 1.000000e+00 : f32
    %231 = vector.broadcast %cst_61 : f32 to vector<2x32xf32>
    %232 = arith.addf %231, %230 : vector<2x32xf32>
    %233 = arith.divf %231, %232 : vector<2x32xf32>
    %234 = vector.extract_strided_slice %221 {offsets = [0, 32], sizes = [2, 32], strides = [1, 1]} : vector<2x96xf32> to vector<2x32xf32>
    %235 = vector.extract_strided_slice %225 {offsets = [0, 32], sizes = [2, 32], strides = [1, 1]} : vector<2x96xf32> to vector<2x32xf32>
    %236 = arith.addf %234, %235 : vector<2x32xf32>
    %237 = arith.negf %236 : vector<2x32xf32>
    %238 = math.exp %237 : vector<2x32xf32>
    %cst_62 = arith.constant 1.000000e+00 : f32
    %239 = vector.broadcast %cst_62 : f32 to vector<2x32xf32>
    %240 = arith.addf %239, %238 : vector<2x32xf32>
    %241 = arith.divf %239, %240 : vector<2x32xf32>
    %242 = vector.extract_strided_slice %221 {offsets = [0, 64], sizes = [2, 32], strides = [1, 1]} : vector<2x96xf32> to vector<2x32xf32>
    %243 = vector.extract_strided_slice %225 {offsets = [0, 64], sizes = [2, 32], strides = [1, 1]} : vector<2x96xf32> to vector<2x32xf32>
    %244 = arith.mulf %233, %243 : vector<2x32xf32>
    %245 = arith.addf %242, %244 : vector<2x32xf32>
    %246 = math.tanh %245 : vector<2x32xf32>
    %247 = arith.subf %215, %246 : vector<2x32xf32>
    %248 = arith.mulf %241, %247 : vector<2x32xf32>
    %249 = arith.addf %246, %248 : vector<2x32xf32>
    %c2_i32_63 = arith.constant 2 : i32
    %250 = arith.muli %c6_i32, %c2_i32_63 : i32
    %251 = arith.index_cast %250 : i32 to index
    %c0_64 = arith.constant 0 : index
    %252 = vector.load %arg13[%251, %c0_64] : memref<16x32xf32, #tpu.memory_space<vmem>>, vector<2x32xf32>
    tpu.vector_store %arg13[%251, %c0_64], %249 {strides = array<i32>} : memref<16x32xf32, #tpu.memory_space<vmem>>, vector<2x32xf32>,
    %c7_i32 = arith.constant 7 : i32
    %c2_i32_65 = arith.constant 2 : i32
    %253 = arith.muli %c7_i32, %c2_i32_65 : i32
    %254 = arith.index_cast %253 : i32 to index
    %c0_66 = arith.constant 0 : index
    %255 = vector.load %arg14[%254, %c0_66] : memref<16x96xf32, #tpu.memory_space<vmem>>, vector<2x96xf32>
    %256 = arith.truncf %249 : vector<2x32xf32> to vector<2x32xbf16>
    %cst_67 = arith.constant dense<0.000000e+00> : vector<2x96xf32>
    %257 = tpu.matmul %256, %3, %cst_67 {dimension_numbers = #tpu.dot_dimension_numbers<[1], [0], [0], [1], [0, 0, 1, 1], [], []>} : vector<2x32xbf16>, vector<32x96xbf16>, vector<2x96xf32> -> vector<2x96xf32>
    %258 = vector.broadcast %7 : vector<1x96xf32> to vector<2x96xf32>
    %259 = arith.addf %257, %258 : vector<2x96xf32>
    %260 = vector.extract_strided_slice %255 {offsets = [0, 0], sizes = [2, 32], strides = [1, 1]} : vector<2x96xf32> to vector<2x32xf32>
    %261 = vector.extract_strided_slice %259 {offsets = [0, 0], sizes = [2, 32], strides = [1, 1]} : vector<2x96xf32> to vector<2x32xf32>
    %262 = arith.addf %260, %261 : vector<2x32xf32>
    %263 = arith.negf %262 : vector<2x32xf32>
    %264 = math.exp %263 : vector<2x32xf32>
    %cst_68 = arith.constant 1.000000e+00 : f32
    %265 = vector.broadcast %cst_68 : f32 to vector<2x32xf32>
    %266 = arith.addf %265, %264 : vector<2x32xf32>
    %267 = arith.divf %265, %266 : vector<2x32xf32>
    %268 = vector.extract_strided_slice %255 {offsets = [0, 32], sizes = [2, 32], strides = [1, 1]} : vector<2x96xf32> to vector<2x32xf32>
    %269 = vector.extract_strided_slice %259 {offsets = [0, 32], sizes = [2, 32], strides = [1, 1]} : vector<2x96xf32> to vector<2x32xf32>
    %270 = arith.addf %268, %269 : vector<2x32xf32>
    %271 = arith.negf %270 : vector<2x32xf32>
    %272 = math.exp %271 : vector<2x32xf32>
    %cst_69 = arith.constant 1.000000e+00 : f32
    %273 = vector.broadcast %cst_69 : f32 to vector<2x32xf32>
    %274 = arith.addf %273, %272 : vector<2x32xf32>
    %275 = arith.divf %273, %274 : vector<2x32xf32>
    %276 = vector.extract_strided_slice %255 {offsets = [0, 64], sizes = [2, 32], strides = [1, 1]} : vector<2x96xf32> to vector<2x32xf32>
    %277 = vector.extract_strided_slice %259 {offsets = [0, 64], sizes = [2, 32], strides = [1, 1]} : vector<2x96xf32> to vector<2x32xf32>
    %278 = arith.mulf %267, %277 : vector<2x32xf32>
    %279 = arith.addf %276, %278 : vector<2x32xf32>
    %280 = math.tanh %279 : vector<2x32xf32>
    %281 = arith.subf %249, %280 : vector<2x32xf32>
    %282 = arith.mulf %275, %281 : vector<2x32xf32>
    %283 = arith.addf %280, %282 : vector<2x32xf32>
    %c2_i32_70 = arith.constant 2 : i32
    %284 = arith.muli %c7_i32, %c2_i32_70 : i32
    %285 = arith.index_cast %284 : i32 to index
    %c0_71 = arith.constant 0 : index
    %286 = vector.load %arg13[%285, %c0_71] : memref<16x32xf32, #tpu.memory_space<vmem>>, vector<2x32xf32>
    tpu.vector_store %arg13[%285, %c0_71], %283 {strides = array<i32>} : memref<16x32xf32, #tpu.memory_space<vmem>>, vector<2x32xf32>,
    %c8_i32 = arith.constant 8 : i32
    %c1 = arith.constant 1 : index
    %c0_72 = arith.constant 0 : index
    %c0_73 = arith.constant 0 : index
    %287 = vector.load %arg2[%c1, %c0_72, %c0_73] : memref<2x32x96xbf16, #tpu.memory_space<vmem>>, vector<1x32x96xbf16>
    %288 = vector.shape_cast %287 : vector<1x32x96xbf16> to vector<32x96xbf16>
    %c1_74 = arith.constant 1 : index
    %c0_75 = arith.constant 0 : index
    %c0_76 = arith.constant 0 : index
    %289 = vector.load %arg3[%c1_74, %c0_75, %c0_76] : memref<2x32x96xbf16, #tpu.memory_space<vmem>>, vector<1x32x96xbf16>
    %290 = vector.shape_cast %289 : vector<1x32x96xbf16> to vector<32x96xbf16>
    %c1_77 = arith.constant 1 : index
    %c0_78 = arith.constant 0 : index
    %c0_79 = arith.constant 0 : index
    %291 = vector.load %arg4[%c1_77, %c0_78, %c0_79] : memref<2x1x96xf32, #tpu.memory_space<vmem>>, vector<1x1x96xf32>
    %292 = vector.shape_cast %291 : vector<1x1x96xf32> to vector<1x96xf32>
    %c1_80 = arith.constant 1 : index
    %c0_81 = arith.constant 0 : index
    %c0_82 = arith.constant 0 : index
    %293 = vector.load %arg5[%c1_80, %c0_81, %c0_82] : memref<2x1x96xf32, #tpu.memory_space<vmem>>, vector<1x1x96xf32>
    %294 = vector.shape_cast %293 : vector<1x1x96xf32> to vector<1x96xf32>
    %c0_83 = arith.constant 0 : index
    %c0_84 = arith.constant 0 : index
    %295 = vector.load %arg13[%c0_83, %c0_84] : memref<16x32xf32, #tpu.memory_space<vmem>>, vector<16x32xf32>
    %296 = arith.truncf %295 : vector<16x32xf32> to vector<16x32xbf16>
    %cst_85 = arith.constant dense<0.000000e+00> : vector<16x96xf32>
    %297 = tpu.matmul %296, %288, %cst_85 {dimension_numbers = #tpu.dot_dimension_numbers<[1], [0], [0], [1], [0, 0, 1, 1], [], []>} : vector<16x32xbf16>, vector<32x96xbf16>, vector<16x96xf32> -> vector<16x96xf32>
    %298 = vector.broadcast %292 : vector<1x96xf32> to vector<16x96xf32>
    %299 = arith.addf %297, %298 : vector<16x96xf32>
    %c0_86 = arith.constant 0 : index
    %c0_87 = arith.constant 0 : index
    %300 = vector.load %arg14[%c0_86, %c0_87] : memref<16x96xf32, #tpu.memory_space<vmem>>, vector<16x96xf32>
    tpu.vector_store %arg14[%c0_86, %c0_87], %299 {strides = array<i32>} : memref<16x96xf32, #tpu.memory_space<vmem>>, vector<16x96xf32>,
    %cst_88 = arith.constant 0.000000e+00 : f32
    %301 = vector.broadcast %cst_88 : f32 to vector<2x32xf32>
    %c0_i32_89 = arith.constant 0 : i32
    %c2_i32_90 = arith.constant 2 : i32
    %302 = arith.muli %c0_i32_89, %c2_i32_90 : i32
    %303 = arith.index_cast %302 : i32 to index
    %c0_91 = arith.constant 0 : index
    %304 = vector.load %arg14[%303, %c0_91] : memref<16x96xf32, #tpu.memory_space<vmem>>, vector<2x96xf32>
    %305 = arith.truncf %301 : vector<2x32xf32> to vector<2x32xbf16>
    %cst_92 = arith.constant dense<0.000000e+00> : vector<2x96xf32>
    %306 = tpu.matmul %305, %290, %cst_92 {dimension_numbers = #tpu.dot_dimension_numbers<[1], [0], [0], [1], [0, 0, 1, 1], [], []>} : vector<2x32xbf16>, vector<32x96xbf16>, vector<2x96xf32> -> vector<2x96xf32>
    %307 = vector.broadcast %294 : vector<1x96xf32> to vector<2x96xf32>
    %308 = arith.addf %306, %307 : vector<2x96xf32>
    %309 = vector.extract_strided_slice %304 {offsets = [0, 0], sizes = [2, 32], strides = [1, 1]} : vector<2x96xf32> to vector<2x32xf32>
    %310 = vector.extract_strided_slice %308 {offsets = [0, 0], sizes = [2, 32], strides = [1, 1]} : vector<2x96xf32> to vector<2x32xf32>
    %311 = arith.addf %309, %310 : vector<2x32xf32>
    %312 = arith.negf %311 : vector<2x32xf32>
    %313 = math.exp %312 : vector<2x32xf32>
    %cst_93 = arith.constant 1.000000e+00 : f32
    %314 = vector.broadcast %cst_93 : f32 to vector<2x32xf32>
    %315 = arith.addf %314, %313 : vector<2x32xf32>
    %316 = arith.divf %314, %315 : vector<2x32xf32>
    %317 = vector.extract_strided_slice %304 {offsets = [0, 32], sizes = [2, 32], strides = [1, 1]} : vector<2x96xf32> to vector<2x32xf32>
    %318 = vector.extract_strided_slice %308 {offsets = [0, 32], sizes = [2, 32], strides = [1, 1]} : vector<2x96xf32> to vector<2x32xf32>
    %319 = arith.addf %317, %318 : vector<2x32xf32>
    %320 = arith.negf %319 : vector<2x32xf32>
    %321 = math.exp %320 : vector<2x32xf32>
    %cst_94 = arith.constant 1.000000e+00 : f32
    %322 = vector.broadcast %cst_94 : f32 to vector<2x32xf32>
    %323 = arith.addf %322, %321 : vector<2x32xf32>
    %324 = arith.divf %322, %323 : vector<2x32xf32>
    %325 = vector.extract_strided_slice %304 {offsets = [0, 64], sizes = [2, 32], strides = [1, 1]} : vector<2x96xf32> to vector<2x32xf32>
    %326 = vector.extract_strided_slice %308 {offsets = [0, 64], sizes = [2, 32], strides = [1, 1]} : vector<2x96xf32> to vector<2x32xf32>
    %327 = arith.mulf %316, %326 : vector<2x32xf32>
    %328 = arith.addf %325, %327 : vector<2x32xf32>
    %329 = math.tanh %328 : vector<2x32xf32>
    %330 = arith.subf %301, %329 : vector<2x32xf32>
    %331 = arith.mulf %324, %330 : vector<2x32xf32>
    %332 = arith.addf %329, %331 : vector<2x32xf32>
    %c1_i32_95 = arith.constant 1 : i32
    %c2_i32_96 = arith.constant 2 : i32
    %333 = arith.muli %c1_i32_95, %c2_i32_96 : i32
    %334 = arith.index_cast %333 : i32 to index
    %c0_97 = arith.constant 0 : index
    %335 = vector.load %arg14[%334, %c0_97] : memref<16x96xf32, #tpu.memory_space<vmem>>, vector<2x96xf32>
    %336 = arith.truncf %332 : vector<2x32xf32> to vector<2x32xbf16>
    %cst_98 = arith.constant dense<0.000000e+00> : vector<2x96xf32>
    %337 = tpu.matmul %336, %290, %cst_98 {dimension_numbers = #tpu.dot_dimension_numbers<[1], [0], [0], [1], [0, 0, 1, 1], [], []>} : vector<2x32xbf16>, vector<32x96xbf16>, vector<2x96xf32> -> vector<2x96xf32>
    %338 = vector.broadcast %294 : vector<1x96xf32> to vector<2x96xf32>
    %339 = arith.addf %337, %338 : vector<2x96xf32>
    %340 = vector.extract_strided_slice %335 {offsets = [0, 0], sizes = [2, 32], strides = [1, 1]} : vector<2x96xf32> to vector<2x32xf32>
    %341 = vector.extract_strided_slice %339 {offsets = [0, 0], sizes = [2, 32], strides = [1, 1]} : vector<2x96xf32> to vector<2x32xf32>
    %342 = arith.addf %340, %341 : vector<2x32xf32>
    %343 = arith.negf %342 : vector<2x32xf32>
    %344 = math.exp %343 : vector<2x32xf32>
    %cst_99 = arith.constant 1.000000e+00 : f32
    %345 = vector.broadcast %cst_99 : f32 to vector<2x32xf32>
    %346 = arith.addf %345, %344 : vector<2x32xf32>
    %347 = arith.divf %345, %346 : vector<2x32xf32>
    %348 = vector.extract_strided_slice %335 {offsets = [0, 32], sizes = [2, 32], strides = [1, 1]} : vector<2x96xf32> to vector<2x32xf32>
    %349 = vector.extract_strided_slice %339 {offsets = [0, 32], sizes = [2, 32], strides = [1, 1]} : vector<2x96xf32> to vector<2x32xf32>
    %350 = arith.addf %348, %349 : vector<2x32xf32>
    %351 = arith.negf %350 : vector<2x32xf32>
    %352 = math.exp %351 : vector<2x32xf32>
    %cst_100 = arith.constant 1.000000e+00 : f32
    %353 = vector.broadcast %cst_100 : f32 to vector<2x32xf32>
    %354 = arith.addf %353, %352 : vector<2x32xf32>
    %355 = arith.divf %353, %354 : vector<2x32xf32>
    %356 = vector.extract_strided_slice %335 {offsets = [0, 64], sizes = [2, 32], strides = [1, 1]} : vector<2x96xf32> to vector<2x32xf32>
    %357 = vector.extract_strided_slice %339 {offsets = [0, 64], sizes = [2, 32], strides = [1, 1]} : vector<2x96xf32> to vector<2x32xf32>
    %358 = arith.mulf %347, %357 : vector<2x32xf32>
    %359 = arith.addf %356, %358 : vector<2x32xf32>
    %360 = math.tanh %359 : vector<2x32xf32>
    %361 = arith.subf %332, %360 : vector<2x32xf32>
    %362 = arith.mulf %355, %361 : vector<2x32xf32>
    %363 = arith.addf %360, %362 : vector<2x32xf32>
    %c2_i32_101 = arith.constant 2 : i32
    %c2_i32_102 = arith.constant 2 : i32
    %364 = arith.muli %c2_i32_101, %c2_i32_102 : i32
    %365 = arith.index_cast %364 : i32 to index
    %c0_103 = arith.constant 0 : index
    %366 = vector.load %arg14[%365, %c0_103] : memref<16x96xf32, #tpu.memory_space<vmem>>, vector<2x96xf32>
    %367 = arith.truncf %363 : vector<2x32xf32> to vector<2x32xbf16>
    %cst_104 = arith.constant dense<0.000000e+00> : vector<2x96xf32>
    %368 = tpu.matmul %367, %290, %cst_104 {dimension_numbers = #tpu.dot_dimension_numbers<[1], [0], [0], [1], [0, 0, 1, 1], [], []>} : vector<2x32xbf16>, vector<32x96xbf16>, vector<2x96xf32> -> vector<2x96xf32>
    %369 = vector.broadcast %294 : vector<1x96xf32> to vector<2x96xf32>
    %370 = arith.addf %368, %369 : vector<2x96xf32>
    %371 = vector.extract_strided_slice %366 {offsets = [0, 0], sizes = [2, 32], strides = [1, 1]} : vector<2x96xf32> to vector<2x32xf32>
    %372 = vector.extract_strided_slice %370 {offsets = [0, 0], sizes = [2, 32], strides = [1, 1]} : vector<2x96xf32> to vector<2x32xf32>
    %373 = arith.addf %371, %372 : vector<2x32xf32>
    %374 = arith.negf %373 : vector<2x32xf32>
    %375 = math.exp %374 : vector<2x32xf32>
    %cst_105 = arith.constant 1.000000e+00 : f32
    %376 = vector.broadcast %cst_105 : f32 to vector<2x32xf32>
    %377 = arith.addf %376, %375 : vector<2x32xf32>
    %378 = arith.divf %376, %377 : vector<2x32xf32>
    %379 = vector.extract_strided_slice %366 {offsets = [0, 32], sizes = [2, 32], strides = [1, 1]} : vector<2x96xf32> to vector<2x32xf32>
    %380 = vector.extract_strided_slice %370 {offsets = [0, 32], sizes = [2, 32], strides = [1, 1]} : vector<2x96xf32> to vector<2x32xf32>
    %381 = arith.addf %379, %380 : vector<2x32xf32>
    %382 = arith.negf %381 : vector<2x32xf32>
    %383 = math.exp %382 : vector<2x32xf32>
    %cst_106 = arith.constant 1.000000e+00 : f32
    %384 = vector.broadcast %cst_106 : f32 to vector<2x32xf32>
    %385 = arith.addf %384, %383 : vector<2x32xf32>
    %386 = arith.divf %384, %385 : vector<2x32xf32>
    %387 = vector.extract_strided_slice %366 {offsets = [0, 64], sizes = [2, 32], strides = [1, 1]} : vector<2x96xf32> to vector<2x32xf32>
    %388 = vector.extract_strided_slice %370 {offsets = [0, 64], sizes = [2, 32], strides = [1, 1]} : vector<2x96xf32> to vector<2x32xf32>
    %389 = arith.mulf %378, %388 : vector<2x32xf32>
    %390 = arith.addf %387, %389 : vector<2x32xf32>
    %391 = math.tanh %390 : vector<2x32xf32>
    %392 = arith.subf %363, %391 : vector<2x32xf32>
    %393 = arith.mulf %386, %392 : vector<2x32xf32>
    %394 = arith.addf %391, %393 : vector<2x32xf32>
    %c3_i32_107 = arith.constant 3 : i32
    %c2_i32_108 = arith.constant 2 : i32
    %395 = arith.muli %c3_i32_107, %c2_i32_108 : i32
    %396 = arith.index_cast %395 : i32 to index
    %c0_109 = arith.constant 0 : index
    %397 = vector.load %arg14[%396, %c0_109] : memref<16x96xf32, #tpu.memory_space<vmem>>, vector<2x96xf32>
    %398 = arith.truncf %394 : vector<2x32xf32> to vector<2x32xbf16>
    %cst_110 = arith.constant dense<0.000000e+00> : vector<2x96xf32>
    %399 = tpu.matmul %398, %290, %cst_110 {dimension_numbers = #tpu.dot_dimension_numbers<[1], [0], [0], [1], [0, 0, 1, 1], [], []>} : vector<2x32xbf16>, vector<32x96xbf16>, vector<2x96xf32> -> vector<2x96xf32>
    %400 = vector.broadcast %294 : vector<1x96xf32> to vector<2x96xf32>
    %401 = arith.addf %399, %400 : vector<2x96xf32>
    %402 = vector.extract_strided_slice %397 {offsets = [0, 0], sizes = [2, 32], strides = [1, 1]} : vector<2x96xf32> to vector<2x32xf32>
    %403 = vector.extract_strided_slice %401 {offsets = [0, 0], sizes = [2, 32], strides = [1, 1]} : vector<2x96xf32> to vector<2x32xf32>
    %404 = arith.addf %402, %403 : vector<2x32xf32>
    %405 = arith.negf %404 : vector<2x32xf32>
    %406 = math.exp %405 : vector<2x32xf32>
    %cst_111 = arith.constant 1.000000e+00 : f32
    %407 = vector.broadcast %cst_111 : f32 to vector<2x32xf32>
    %408 = arith.addf %407, %406 : vector<2x32xf32>
    %409 = arith.divf %407, %408 : vector<2x32xf32>
    %410 = vector.extract_strided_slice %397 {offsets = [0, 32], sizes = [2, 32], strides = [1, 1]} : vector<2x96xf32> to vector<2x32xf32>
    %411 = vector.extract_strided_slice %401 {offsets = [0, 32], sizes = [2, 32], strides = [1, 1]} : vector<2x96xf32> to vector<2x32xf32>
    %412 = arith.addf %410, %411 : vector<2x32xf32>
    %413 = arith.negf %412 : vector<2x32xf32>
    %414 = math.exp %413 : vector<2x32xf32>
    %cst_112 = arith.constant 1.000000e+00 : f32
    %415 = vector.broadcast %cst_112 : f32 to vector<2x32xf32>
    %416 = arith.addf %415, %414 : vector<2x32xf32>
    %417 = arith.divf %415, %416 : vector<2x32xf32>
    %418 = vector.extract_strided_slice %397 {offsets = [0, 64], sizes = [2, 32], strides = [1, 1]} : vector<2x96xf32> to vector<2x32xf32>
    %419 = vector.extract_strided_slice %401 {offsets = [0, 64], sizes = [2, 32], strides = [1, 1]} : vector<2x96xf32> to vector<2x32xf32>
    %420 = arith.mulf %409, %419 : vector<2x32xf32>
    %421 = arith.addf %418, %420 : vector<2x32xf32>
    %422 = math.tanh %421 : vector<2x32xf32>
    %423 = arith.subf %394, %422 : vector<2x32xf32>
    %424 = arith.mulf %417, %423 : vector<2x32xf32>
    %425 = arith.addf %422, %424 : vector<2x32xf32>
    %c4_i32_113 = arith.constant 4 : i32
    %c2_i32_114 = arith.constant 2 : i32
    %426 = arith.muli %c4_i32_113, %c2_i32_114 : i32
    %427 = arith.index_cast %426 : i32 to index
    %c0_115 = arith.constant 0 : index
    %428 = vector.load %arg14[%427, %c0_115] : memref<16x96xf32, #tpu.memory_space<vmem>>, vector<2x96xf32>
    %429 = arith.truncf %425 : vector<2x32xf32> to vector<2x32xbf16>
    %cst_116 = arith.constant dense<0.000000e+00> : vector<2x96xf32>
    %430 = tpu.matmul %429, %290, %cst_116 {dimension_numbers = #tpu.dot_dimension_numbers<[1], [0], [0], [1], [0, 0, 1, 1], [], []>} : vector<2x32xbf16>, vector<32x96xbf16>, vector<2x96xf32> -> vector<2x96xf32>
    %431 = vector.broadcast %294 : vector<1x96xf32> to vector<2x96xf32>
    %432 = arith.addf %430, %431 : vector<2x96xf32>
    %433 = vector.extract_strided_slice %428 {offsets = [0, 0], sizes = [2, 32], strides = [1, 1]} : vector<2x96xf32> to vector<2x32xf32>
    %434 = vector.extract_strided_slice %432 {offsets = [0, 0], sizes = [2, 32], strides = [1, 1]} : vector<2x96xf32> to vector<2x32xf32>
    %435 = arith.addf %433, %434 : vector<2x32xf32>
    %436 = arith.negf %435 : vector<2x32xf32>
    %437 = math.exp %436 : vector<2x32xf32>
    %cst_117 = arith.constant 1.000000e+00 : f32
    %438 = vector.broadcast %cst_117 : f32 to vector<2x32xf32>
    %439 = arith.addf %438, %437 : vector<2x32xf32>
    %440 = arith.divf %438, %439 : vector<2x32xf32>
    %441 = vector.extract_strided_slice %428 {offsets = [0, 32], sizes = [2, 32], strides = [1, 1]} : vector<2x96xf32> to vector<2x32xf32>
    %442 = vector.extract_strided_slice %432 {offsets = [0, 32], sizes = [2, 32], strides = [1, 1]} : vector<2x96xf32> to vector<2x32xf32>
    %443 = arith.addf %441, %442 : vector<2x32xf32>
    %444 = arith.negf %443 : vector<2x32xf32>
    %445 = math.exp %444 : vector<2x32xf32>
    %cst_118 = arith.constant 1.000000e+00 : f32
    %446 = vector.broadcast %cst_118 : f32 to vector<2x32xf32>
    %447 = arith.addf %446, %445 : vector<2x32xf32>
    %448 = arith.divf %446, %447 : vector<2x32xf32>
    %449 = vector.extract_strided_slice %428 {offsets = [0, 64], sizes = [2, 32], strides = [1, 1]} : vector<2x96xf32> to vector<2x32xf32>
    %450 = vector.extract_strided_slice %432 {offsets = [0, 64], sizes = [2, 32], strides = [1, 1]} : vector<2x96xf32> to vector<2x32xf32>
    %451 = arith.mulf %440, %450 : vector<2x32xf32>
    %452 = arith.addf %449, %451 : vector<2x32xf32>
    %453 = math.tanh %452 : vector<2x32xf32>
    %454 = arith.subf %425, %453 : vector<2x32xf32>
    %455 = arith.mulf %448, %454 : vector<2x32xf32>
    %456 = arith.addf %453, %455 : vector<2x32xf32>
    %c5_i32_119 = arith.constant 5 : i32
    %c2_i32_120 = arith.constant 2 : i32
    %457 = arith.muli %c5_i32_119, %c2_i32_120 : i32
    %458 = arith.index_cast %457 : i32 to index
    %c0_121 = arith.constant 0 : index
    %459 = vector.load %arg14[%458, %c0_121] : memref<16x96xf32, #tpu.memory_space<vmem>>, vector<2x96xf32>
    %460 = arith.truncf %456 : vector<2x32xf32> to vector<2x32xbf16>
    %cst_122 = arith.constant dense<0.000000e+00> : vector<2x96xf32>
    %461 = tpu.matmul %460, %290, %cst_122 {dimension_numbers = #tpu.dot_dimension_numbers<[1], [0], [0], [1], [0, 0, 1, 1], [], []>} : vector<2x32xbf16>, vector<32x96xbf16>, vector<2x96xf32> -> vector<2x96xf32>
    %462 = vector.broadcast %294 : vector<1x96xf32> to vector<2x96xf32>
    %463 = arith.addf %461, %462 : vector<2x96xf32>
    %464 = vector.extract_strided_slice %459 {offsets = [0, 0], sizes = [2, 32], strides = [1, 1]} : vector<2x96xf32> to vector<2x32xf32>
    %465 = vector.extract_strided_slice %463 {offsets = [0, 0], sizes = [2, 32], strides = [1, 1]} : vector<2x96xf32> to vector<2x32xf32>
    %466 = arith.addf %464, %465 : vector<2x32xf32>
    %467 = arith.negf %466 : vector<2x32xf32>
    %468 = math.exp %467 : vector<2x32xf32>
    %cst_123 = arith.constant 1.000000e+00 : f32
    %469 = vector.broadcast %cst_123 : f32 to vector<2x32xf32>
    %470 = arith.addf %469, %468 : vector<2x32xf32>
    %471 = arith.divf %469, %470 : vector<2x32xf32>
    %472 = vector.extract_strided_slice %459 {offsets = [0, 32], sizes = [2, 32], strides = [1, 1]} : vector<2x96xf32> to vector<2x32xf32>
    %473 = vector.extract_strided_slice %463 {offsets = [0, 32], sizes = [2, 32], strides = [1, 1]} : vector<2x96xf32> to vector<2x32xf32>
    %474 = arith.addf %472, %473 : vector<2x32xf32>
    %475 = arith.negf %474 : vector<2x32xf32>
    %476 = math.exp %475 : vector<2x32xf32>
    %cst_124 = arith.constant 1.000000e+00 : f32
    %477 = vector.broadcast %cst_124 : f32 to vector<2x32xf32>
    %478 = arith.addf %477, %476 : vector<2x32xf32>
    %479 = arith.divf %477, %478 : vector<2x32xf32>
    %480 = vector.extract_strided_slice %459 {offsets = [0, 64], sizes = [2, 32], strides = [1, 1]} : vector<2x96xf32> to vector<2x32xf32>
    %481 = vector.extract_strided_slice %463 {offsets = [0, 64], sizes = [2, 32], strides = [1, 1]} : vector<2x96xf32> to vector<2x32xf32>
    %482 = arith.mulf %471, %481 : vector<2x32xf32>
    %483 = arith.addf %480, %482 : vector<2x32xf32>
    %484 = math.tanh %483 : vector<2x32xf32>
    %485 = arith.subf %456, %484 : vector<2x32xf32>
    %486 = arith.mulf %479, %485 : vector<2x32xf32>
    %487 = arith.addf %484, %486 : vector<2x32xf32>
    %c6_i32_125 = arith.constant 6 : i32
    %c2_i32_126 = arith.constant 2 : i32
    %488 = arith.muli %c6_i32_125, %c2_i32_126 : i32
    %489 = arith.index_cast %488 : i32 to index
    %c0_127 = arith.constant 0 : index
    %490 = vector.load %arg14[%489, %c0_127] : memref<16x96xf32, #tpu.memory_space<vmem>>, vector<2x96xf32>
    %491 = arith.truncf %487 : vector<2x32xf32> to vector<2x32xbf16>
    %cst_128 = arith.constant dense<0.000000e+00> : vector<2x96xf32>
    %492 = tpu.matmul %491, %290, %cst_128 {dimension_numbers = #tpu.dot_dimension_numbers<[1], [0], [0], [1], [0, 0, 1, 1], [], []>} : vector<2x32xbf16>, vector<32x96xbf16>, vector<2x96xf32> -> vector<2x96xf32>
    %493 = vector.broadcast %294 : vector<1x96xf32> to vector<2x96xf32>
    %494 = arith.addf %492, %493 : vector<2x96xf32>
    %495 = vector.extract_strided_slice %490 {offsets = [0, 0], sizes = [2, 32], strides = [1, 1]} : vector<2x96xf32> to vector<2x32xf32>
    %496 = vector.extract_strided_slice %494 {offsets = [0, 0], sizes = [2, 32], strides = [1, 1]} : vector<2x96xf32> to vector<2x32xf32>
    %497 = arith.addf %495, %496 : vector<2x32xf32>
    %498 = arith.negf %497 : vector<2x32xf32>
    %499 = math.exp %498 : vector<2x32xf32>
    %cst_129 = arith.constant 1.000000e+00 : f32
    %500 = vector.broadcast %cst_129 : f32 to vector<2x32xf32>
    %501 = arith.addf %500, %499 : vector<2x32xf32>
    %502 = arith.divf %500, %501 : vector<2x32xf32>
    %503 = vector.extract_strided_slice %490 {offsets = [0, 32], sizes = [2, 32], strides = [1, 1]} : vector<2x96xf32> to vector<2x32xf32>
    %504 = vector.extract_strided_slice %494 {offsets = [0, 32], sizes = [2, 32], strides = [1, 1]} : vector<2x96xf32> to vector<2x32xf32>
    %505 = arith.addf %503, %504 : vector<2x32xf32>
    %506 = arith.negf %505 : vector<2x32xf32>
    %507 = math.exp %506 : vector<2x32xf32>
    %cst_130 = arith.constant 1.000000e+00 : f32
    %508 = vector.broadcast %cst_130 : f32 to vector<2x32xf32>
    %509 = arith.addf %508, %507 : vector<2x32xf32>
    %510 = arith.divf %508, %509 : vector<2x32xf32>
    %511 = vector.extract_strided_slice %490 {offsets = [0, 64], sizes = [2, 32], strides = [1, 1]} : vector<2x96xf32> to vector<2x32xf32>
    %512 = vector.extract_strided_slice %494 {offsets = [0, 64], sizes = [2, 32], strides = [1, 1]} : vector<2x96xf32> to vector<2x32xf32>
    %513 = arith.mulf %502, %512 : vector<2x32xf32>
    %514 = arith.addf %511, %513 : vector<2x32xf32>
    %515 = math.tanh %514 : vector<2x32xf32>
    %516 = arith.subf %487, %515 : vector<2x32xf32>
    %517 = arith.mulf %510, %516 : vector<2x32xf32>
    %518 = arith.addf %515, %517 : vector<2x32xf32>
    %c7_i32_131 = arith.constant 7 : i32
    %c2_i32_132 = arith.constant 2 : i32
    %519 = arith.muli %c7_i32_131, %c2_i32_132 : i32
    %520 = arith.index_cast %519 : i32 to index
    %c0_133 = arith.constant 0 : index
    %521 = vector.load %arg14[%520, %c0_133] : memref<16x96xf32, #tpu.memory_space<vmem>>, vector<2x96xf32>
    %522 = arith.truncf %518 : vector<2x32xf32> to vector<2x32xbf16>
    %cst_134 = arith.constant dense<0.000000e+00> : vector<2x96xf32>
    %523 = tpu.matmul %522, %290, %cst_134 {dimension_numbers = #tpu.dot_dimension_numbers<[1], [0], [0], [1], [0, 0, 1, 1], [], []>} : vector<2x32xbf16>, vector<32x96xbf16>, vector<2x96xf32> -> vector<2x96xf32>
    %524 = vector.broadcast %294 : vector<1x96xf32> to vector<2x96xf32>
    %525 = arith.addf %523, %524 : vector<2x96xf32>
    %526 = vector.extract_strided_slice %521 {offsets = [0, 0], sizes = [2, 32], strides = [1, 1]} : vector<2x96xf32> to vector<2x32xf32>
    %527 = vector.extract_strided_slice %525 {offsets = [0, 0], sizes = [2, 32], strides = [1, 1]} : vector<2x96xf32> to vector<2x32xf32>
    %528 = arith.addf %526, %527 : vector<2x32xf32>
    %529 = arith.negf %528 : vector<2x32xf32>
    %530 = math.exp %529 : vector<2x32xf32>
    %cst_135 = arith.constant 1.000000e+00 : f32
    %531 = vector.broadcast %cst_135 : f32 to vector<2x32xf32>
    %532 = arith.addf %531, %530 : vector<2x32xf32>
    %533 = arith.divf %531, %532 : vector<2x32xf32>
    %534 = vector.extract_strided_slice %521 {offsets = [0, 32], sizes = [2, 32], strides = [1, 1]} : vector<2x96xf32> to vector<2x32xf32>
    %535 = vector.extract_strided_slice %525 {offsets = [0, 32], sizes = [2, 32], strides = [1, 1]} : vector<2x96xf32> to vector<2x32xf32>
    %536 = arith.addf %534, %535 : vector<2x32xf32>
    %537 = arith.negf %536 : vector<2x32xf32>
    %538 = math.exp %537 : vector<2x32xf32>
    %cst_136 = arith.constant 1.000000e+00 : f32
    %539 = vector.broadcast %cst_136 : f32 to vector<2x32xf32>
    %540 = arith.addf %539, %538 : vector<2x32xf32>
    %541 = arith.divf %539, %540 : vector<2x32xf32>
    %542 = vector.extract_strided_slice %521 {offsets = [0, 64], sizes = [2, 32], strides = [1, 1]} : vector<2x96xf32> to vector<2x32xf32>
    %543 = vector.extract_strided_slice %525 {offsets = [0, 64], sizes = [2, 32], strides = [1, 1]} : vector<2x96xf32> to vector<2x32xf32>
    %544 = arith.mulf %533, %543 : vector<2x32xf32>
    %545 = arith.addf %542, %544 : vector<2x32xf32>
    %546 = math.tanh %545 : vector<2x32xf32>
    %547 = arith.subf %518, %546 : vector<2x32xf32>
    %548 = arith.mulf %541, %547 : vector<2x32xf32>
    %549 = arith.addf %546, %548 : vector<2x32xf32>
    %c8_i32_137 = arith.constant 8 : i32
    %550 = arith.truncf %549 : vector<2x32xf32> to vector<2x32xbf16>
    %c0_138 = arith.constant 0 : index
    %c0_139 = arith.constant 0 : index
    %551 = vector.load %arg6[%c0_138, %c0_139] : memref<32x32xbf16, #tpu.memory_space<vmem>>, vector<32x32xbf16>
    %cst_140 = arith.constant dense<0.000000e+00> : vector<2x32xf32>
    %552 = tpu.matmul %550, %551, %cst_140 {dimension_numbers = #tpu.dot_dimension_numbers<[1], [0], [0], [1], [0, 0, 1, 1], [], []>} : vector<2x32xbf16>, vector<32x32xbf16>, vector<2x32xf32> -> vector<2x32xf32>
    %c0_141 = arith.constant 0 : index
    %c0_142 = arith.constant 0 : index
    %553 = vector.load %arg7[%c0_141, %c0_142] : memref<1x32xf32, #tpu.memory_space<vmem>>, vector<1x32xf32>
    %554 = vector.broadcast %553 : vector<1x32xf32> to vector<2x32xf32>
    %555 = arith.addf %552, %554 : vector<2x32xf32>
    %c0_143 = arith.constant 0 : index
    %c0_144 = arith.constant 0 : index
    %556 = vector.load %arg8[%c0_143, %c0_144] : memref<1x32xf32, #tpu.memory_space<vmem>>, vector<1x32xf32>
    %557 = vector.broadcast %556 : vector<1x32xf32> to vector<2x32xf32>
    %558 = arith.mulf %555, %557 : vector<2x32xf32>
    %c0_145 = arith.constant 0 : index
    %c0_146 = arith.constant 0 : index
    %559 = vector.load %arg9[%c0_145, %c0_146] : memref<1x32xf32, #tpu.memory_space<vmem>>, vector<1x32xf32>
    %560 = vector.broadcast %559 : vector<1x32xf32> to vector<2x32xf32>
    %561 = arith.addf %558, %560 : vector<2x32xf32>
    %562 = arith.truncf %561 : vector<2x32xf32> to vector<2x32xbf16>
    %c0_147 = arith.constant 0 : index
    %c0_148 = arith.constant 0 : index
    %563 = vector.load %arg10[%c0_147, %c0_148] : memref<32x3xbf16, #tpu.memory_space<vmem>>, vector<32x3xbf16>
    %cst_149 = arith.constant dense<0.000000e+00> : vector<2x3xf32>
    %564 = tpu.matmul %562, %563, %cst_149 {dimension_numbers = #tpu.dot_dimension_numbers<[1], [0], [0], [1], [0, 0, 1, 1], [], []>} : vector<2x32xbf16>, vector<32x3xbf16>, vector<2x3xf32> -> vector<2x3xf32>
    %c0_150 = arith.constant 0 : index
    %c0_151 = arith.constant 0 : index
    %565 = vector.load %arg11[%c0_150, %c0_151] : memref<1x3xf32, #tpu.memory_space<vmem>>, vector<1x3xf32>
    %566 = vector.broadcast %565 : vector<1x3xf32> to vector<2x3xf32>
    %567 = arith.addf %564, %566 : vector<2x3xf32>
    %c0_152 = arith.constant 0 : index
    %c0_153 = arith.constant 0 : index
    %568 = vector.load %arg12[%c0_152, %c0_153] : memref<2x3xf32, #tpu.memory_space<vmem>>, vector<2x3xf32>
    tpu.vector_store %arg12[%c0_152, %c0_153], %567 {strides = array<i32>} : memref<2x3xf32, #tpu.memory_space<vmem>>, vector<2x3xf32>,
    return
  }
  func.func @transform_0(%arg0: i32) -> (i32, i32) {
    %c0_i32 = arith.constant 0 : i32
    %c0_i32_0 = arith.constant 0 : i32
    %c0_i32_1 = arith.constant 0 : i32
    return %c0_i32, %c0_i32_0 : i32, i32
  }
  func.func @transform_1(%arg0: i32) -> (i32, i32, i32) {
    %c0_i32 = arith.constant 0 : i32
    %c0_i32_0 = arith.constant 0 : i32
    %c0_i32_1 = arith.constant 0 : i32
    %c0_i32_2 = arith.constant 0 : i32
    return %c0_i32, %c0_i32_0, %c0_i32_1 : i32, i32, i32
  }
  func.func @transform_2(%arg0: i32) -> (i32, i32, i32) {
    %c0_i32 = arith.constant 0 : i32
    %c0_i32_0 = arith.constant 0 : i32
    %c0_i32_1 = arith.constant 0 : i32
    %c0_i32_2 = arith.constant 0 : i32
    return %c0_i32, %c0_i32_0, %c0_i32_1 : i32, i32, i32
  }
  func.func @transform_3(%arg0: i32) -> (i32, i32, i32) {
    %c0_i32 = arith.constant 0 : i32
    %c0_i32_0 = arith.constant 0 : i32
    %c0_i32_1 = arith.constant 0 : i32
    %c0_i32_2 = arith.constant 0 : i32
    return %c0_i32, %c0_i32_0, %c0_i32_1 : i32, i32, i32
  }
  func.func @transform_4(%arg0: i32) -> (i32, i32, i32) {
    %c0_i32 = arith.constant 0 : i32
    %c0_i32_0 = arith.constant 0 : i32
    %c0_i32_1 = arith.constant 0 : i32
    %c0_i32_2 = arith.constant 0 : i32
    return %c0_i32, %c0_i32_0, %c0_i32_1 : i32, i32, i32
  }
  func.func @transform_5(%arg0: i32) -> (i32, i32) {
    %c0_i32 = arith.constant 0 : i32
    %c0_i32_0 = arith.constant 0 : i32
    %c0_i32_1 = arith.constant 0 : i32
    return %c0_i32, %c0_i32_0 : i32, i32
  }
  func.func @transform_6(%arg0: i32) -> (i32, i32) {
    %c0_i32 = arith.constant 0 : i32
    %c0_i32_0 = arith.constant 0 : i32
    %c0_i32_1 = arith.constant 0 : i32
    return %c0_i32, %c0_i32_0 : i32, i32
  }
  func.func @transform_7(%arg0: i32) -> (i32, i32) {
    %c0_i32 = arith.constant 0 : i32
    %c0_i32_0 = arith.constant 0 : i32
    %c0_i32_1 = arith.constant 0 : i32
    return %c0_i32, %c0_i32_0 : i32, i32
  }
  func.func @transform_8(%arg0: i32) -> (i32, i32) {
    %c0_i32 = arith.constant 0 : i32
    %c0_i32_0 = arith.constant 0 : i32
    %c0_i32_1 = arith.constant 0 : i32
    return %c0_i32, %c0_i32_0 : i32, i32
  }
  func.func @transform_9(%arg0: i32) -> (i32, i32) {
    %c0_i32 = arith.constant 0 : i32
    %c0_i32_0 = arith.constant 0 : i32
    %c0_i32_1 = arith.constant 0 : i32
    return %c0_i32, %c0_i32_0 : i32, i32
  }
  func.func @transform_10(%arg0: i32) -> (i32, i32) {
    %c0_i32 = arith.constant 0 : i32
    %c0_i32_0 = arith.constant 0 : i32
    %c0_i32_1 = arith.constant 0 : i32
    return %c0_i32, %c0_i32_0 : i32, i32
  }
  func.func @transform_11(%arg0: i32) -> (i32, i32) {
    %c0_i32 = arith.constant 0 : i32
    %c0_i32_0 = arith.constant 0 : i32
    %c0_i32_1 = arith.constant 0 : i32
    return %c0_i32, %c0_i32_0 : i32, i32
  }
}

</mosaic_0001>

<bundles_post_ra>
// kernel: convgru_forward.2
= control target key start
LH: loop header
LB: loop body
LE: loop exit
PB: predicated region body
PF: predicated region fallthrough
CT: control target
= control target key end

     0   :  { %s1108_s30 = smov 0   ;;  %s1110_s10 = smov 0   ;;  %s1297_s0 = inlined_call_operand.vmem [shape: f32[2,16,4], index: 0, kind: input, shape index: {}]   ;;  %s1298_s1 = inlined_call_operand.vmem [shape: bf16[20,32], index: 1, kind: input, shape index: {}]   ;;  %s1299_s2 = inlined_call_operand.vmem [shape: f32[1,32], index: 2, kind: input, shape index: {}]   ;;  %s1300_s3 = inlined_call_operand.vmem [shape: f32[1,32], index: 3, kind: input, shape index: {}]   ;;  %s1301_s4 = inlined_call_operand.vmem [shape: f32[1,32], index: 4, kind: input, shape index: {}]   ;;  %s1302_s5 = inlined_call_operand.vmem [shape: bf16[5,32,32], index: 5, kind: input, shape index: {}]   ;;  %s1303_s6 = inlined_call_operand.vmem [shape: f32[1,32], index: 6, kind: input, shape index: {}]   ;;  %s1304_s7 = inlined_call_operand.vmem [shape: f32[1,32], index: 7, kind: input, shape index: {}]   ;;  %s1305_s8 = inlined_call_operand.vmem [shape: f32[1,32], index: 8, kind: input, shape index: {}]   ;;  %s1306_s9 = inlined_call_operand.vmem [shape: f32[8,2,1,32], index: 9, kind: output, shape index: {}]  }
   0x1   :  { %s1112_s11 = smov 0  }
   0x2 LB: > { %s1121_s12 = sadd.s32 4294967295, %s1052_s11   ;;  %s1123_s13 = sadd.s32 1, %s1052_s11   ;;  %s1052_s11 = sphi %s1112_s11, %s1310_s11   ;;  %s1048_s10 = sphi %s1110_s10, %s1309_s10   ;;  %s1044_s30 = sphi %s1108_s30, %s1308_s30  }
   0x3   : > { %s217_s14 = ssub.s32 %s1052_s11, %s1123_s13  ;;  %s220_s15 = sadd.s32 1, %s1048_s10 }
   0x4   : > { %p218_p0 = scmp.eq.s32.totalorder %s217_s14, 0  ;;  %p230_p1 = scmp.ne.s32.totalorder %s1048_s10, %s1044_s30 }
   0x5   : > { %p231_p2 = scmp.eq.s32.totalorder %s1121_s12, 1  ;;  %p891_p3 = scmp.ge.s32.totalorder %s1052_s11, 1 }
   0x6   : > { %s1131_s16 = scalar_select %p218_p0, %s1048_s10, %s220_s15  }
   0x7   : > { %p1133_p4 = por %p231_p2, %p230_p1  ;;  %p287_p5 = scmp.lt.s32.totalorder %s1052_s11, 3 }
   0x9   : > { %p288_p6 = pnand %p891_p3, %p287_p5 }
   0xa   : > { %p322_p7 = scmp.lt.s32.totalorder (!%p288_p6), %s1121_s12, 1  ;;  %s1054_s23 = smov (!%p288_p6), 4  }
   0xb   : > { %291 = sbr.rel (%p288_p6) target bundleno = 492 (0x1ec), region = 56  ;;  %s1055_s24 = smov (!%p288_p6), 12  }
   0xc   : > { %s1056_s25 = smov (!%p288_p6), 8   ;;  %s1057_s26 = smov (!%p288_p6), 16  }
  0x10   : > { %v328_v0 = vlaneseq  ;;  %s323_s18 = scalar_select %p322_p7, %s1121_s12, 1  ;;  %v456_v27 = vld [vmem:[%s1298_s1 + $0x8] sm:$0x3]  ;;  %vm474_vm6 = vcmask 1041408   ;;  %v965_v31 = vld [vmem:[%s1298_s1] sm:$0xff]  ;;  %vm441_vm9 = vcmask 31744  }
  0x11   : > { %v466_v28 = vunpack.c.l.b16 %v456_v27  ;;  %vm444_vm10 = vcmask 64512   ;;  %vm447_vm11 = vcmask 97280   ;;  %vm450_vm12 = vcmask 130048   ;;  %v971_v59 = vld [vmem:[%s1302_s5 + $0x28] sm:$0xff]  ;;  %v969_v60 = vld [vmem:[%s1302_s5 + $0x18] sm:$0xff]  ;;  %v970_v62 = vld [vmem:[%s1302_s5 + $0x20] sm:$0xff] }
  0x12   : > { %v1139_v1 = vshrl.u32 %v328_v0, 7  ;;  %s964_s19 = sshll.u32 %s323_s18, 4  ;;  %vm470_vm13 = vcmask 162816   ;;  %615 = vmatpush.bf16.msra.mxu3 %v971_v59  ;;  %v967_v61 = vld [vmem:[%s1302_s5 + $0x8] sm:$0xff]  ;;  %v973_v63 = vld [vmem:[%s1302_s5 + $0x38] sm:$0xff]  ;;  %551 = vmatpush.bf16.msra.mxu1 %v969_v60  ;;  %v968_v0 = vld [vmem:[%s1302_s5 + $0x10] sm:$0xff] }
  0x13   : > { %s326_s22 = scalar_lea.vmem %s1297_s0, %s964_s19  ;;  %v468_v29 = vpack.c.b16 %v466_v28, %v466_v28  ;;  %580 = vmatpush.bf16.msra.mxu2 %v967_v61  ;;  %vm541_vm14 = vcmask 261120   ;;  %v1028_v59 = vld [vmem:[%s1304_s7] ss:$0 sm:$0xff]  ;;  %s319_s18 = sand.u32 1, %s1044_s30   ;;  %vm752_vm15 = vcmask 253952  }
  0x14   : > { %v1142_v2 = vadd.s32 4294967295, %v1139_v1  ;;  %v330_v3 = vadd.s32 8, %v1139_v1  ;;  %vm378_vm0 = vcmp.lt.s32.totalorder %v1139_v1, 1  ;;  %v363_v4 = vld [vmem:[%s326_s22] sm:$0xff]  ;;  %v364_v5 = vld [vmem:[%s326_s22 + $0x8] sm:$0xff]  ;;  %vm389_vm2 = vcmp.lt.s32.totalorder %v1139_v1, 7  ;;  %s768_s22 = scalar_lea.vmem (%p1133_p4), %s1306_s9, %s1121_s12 }
  0x15   : > { %v376_v8 = vrot.slane %v363_v4, 7  ;;  %v377_v9 = vrot.slane %v364_v5, 7  ;;  %v387_v10 = vrot.slane %v363_v4, 1  ;;  %v388_v11 = vrot.slane %v364_v5, 1  ;;  %v1029_v61 = vld [vmem:[%s1305_s8] ss:$0 sm:$0xff] }
  0x16   : > { %vm341_vm1 = vcmp.ge.s32.totalorder %v1142_v2, 0  ;;  %v1150_v6 = vadd.s32 1, %v330_v3  ;;  %v1153_v7 = vadd.s32 2, %v330_v3  ;;  %v398_v12 = vrot.slane %v363_v4, 2  ;;  %616 = vmatpush.bf16.msra.mxu3 %v970_v62  ;;  %v966_v3 = vld [vmem:[%s1302_s5] sm:$0xff]  ;;  %552 = vmatpush.bf16.msra.mxu1 %v968_v0  ;;  %s892_s19 = sshll.u32 %s319_s18, 3 }
  0x17   : > { %vm400_vm4 = vcmp.lt.s32.totalorder %v1139_v1, 6  ;;  %v379_v13 = vsel %vm378_vm0, %v376_v8, %v377_v9  ;;  %v380_v14 = vsel %vm378_vm0, %v377_v9, %v376_v8  ;;  %v390_v15 = vsel %vm389_vm2, %v387_v10, %v388_v11  ;;  %581 = vmatpush.bf16.msra.mxu2 %v966_v3  ;;  %v974_v8 = vld [vmem:[%s1302_s5 + $0x40] sm:$0xff]  ;;  %s321_s20 = scalar_lea.vmem [#allocation3], %s892_s19 }
  0x18   : > { %vm352_vm3 = vcmp.lt.s32.totalorder %v1150_v6, 16  ;;  %v391_v16 = vsel %vm389_vm2, %v388_v11, %v387_v10  ;;  %v385_v17 = vsel %vm341_vm1, %v380_v14, 0.0  ;;  %v399_v19 = vrot.slane %v364_v5, 2  ;;  %v1024_v9 = vld [vmem:[%s1299_s2] ss:$0 sm:$0xff] }
  0x19   : > { %v397_v18 = vsel %vm352_vm3, %v391_v16, 0.0  ;;  %v1004_v20 = vpack.i.bf16 %v379_v13, %v385_v17  ;;  %vm360_vm5 = vcmp.lt.s32.totalorder %v1153_v7, 16  ;;  %v1009_v25 = vpack.i.bf16 %v364_v5, %v363_v4  ;;  %v1025_v13 = vld [vmem:[%s1300_s3] ss:$0 sm:$0xff] }
  0x1a   : > { %v1014_v21 = vpack.i.bf16 %v397_v18, %v390_v15  ;;  %v402_v22 = vsel %vm400_vm4, %v399_v19, %v398_v12  ;;  %v401_v23 = vsel %vm400_vm4, %v398_v12, %v399_v19  ;;  %v476_v30 = vsel %vm474_vm6, %v468_v29, 0  ;;  %v1026_v15 = vld [vmem:[%s1301_s4] ss:$0 sm:$0xff] }
  0x1b   : > { %1005 = vrot.lane.b32.xlu0 %v1004_v20, %s1054_s23  ;;  %v408_v24 = vsel %vm360_vm5, %v402_v22, 0.0  ;;  %484 = vmatpush.bf16.msra.mxu0 %v476_v30  ;;  %v1183_v32 = vadd.s32 4294967294, %v1139_v1  ;;  %v366_v33 = vrot.slane %v364_v5, 6  ;;  %v365_v35 = vrot.slane %v363_v4, 6  ;;  %v972_v4 = vld [vmem:[%s1302_s5 + $0x30] sm:$0xff]  ;;  %v975_v5 = vld [vmem:[%s1302_s5 + $0x48] sm:$0xff] }
  0x1c   : > { %1015 = vrot.lane.b32.xlu1 %v1014_v21, %s1055_s24  ;;  %v1019_v26 = vpack.i.bf16 %v408_v24, %v401_v23  ;;  %vm367_vm7 = vcmp.lt.s32.totalorder %v1139_v1, 2  ;;  %701 = vmatpush.bf16.msrb.mxu1 %v975_v5  ;;  %v1027_v1 = vld [vmem:[%s1303_s6] ss:$0 sm:$0xff] }
  0x1d   : > { %vm333_vm8 = vcmp.ge.s32.totalorder %v1183_v32, 0  ;;  %v369_v37 = vsel %vm367_vm7, %v366_v33, %v365_v35  ;;  %v368_v40 = vsel %vm367_vm7, %v365_v35, %v366_v33 }
  0x1e   : > { %v374_v41 = vsel %vm333_vm8, %v369_v37, 0.0 }
  0x1f   : > { %485 = vmatpush.bf16.msra.mxu0 %v965_v31 }
  0x20   : > { %702 = vmatpush.bf16.msrb.mxu1 %v974_v8 }
  0x23   : > { %1010 = vrot.lane.b32.xlu0 %v1009_v25, %s1056_s25  ;;  %658 = vmatpush.bf16.msrb.mxu0 %v973_v63 }
  0x24   : > { %1020 = vrot.lane.b32.xlu1 %v1019_v26, %s1057_s26 }
  0x27   : > { %659 = vmatpush.bf16.msrb.mxu0 %v972_v4 }
  0x8d   : > { %v1006_v34 = vpop.permute.xlu0 %1005 }
  0x8e   : > { %v1016_v36 = vpop.permute.xlu1 %1015  ;;  %v1008_v38 = vunpack.i.h.bf16 %v1006_v34  ;;  %v1007_v39 = vunpack.i.l.bf16 %v1006_v34 }
  0x8f   : > { %v1018_v50 = vunpack.i.h.bf16 %v1016_v36  ;;  %v1017_v51 = vunpack.i.l.bf16 %v1016_v36 }
  0x90   : > { %v442_v48 = vsel %vm441_vm9, %v374_v41, %v1007_v39  ;;  %v443_v49 = vsel %vm441_vm9, %v368_v40, %v1008_v38 }
  0x95   : > { %v1011_v42 = vpop.permute.xlu0 %1010 }
  0x96   : > { %v1021_v43 = vpop.permute.xlu1 %1020  ;;  %v1013_v44 = vunpack.i.h.bf16 %v1011_v42  ;;  %v1012_v45 = vunpack.i.l.bf16 %v1011_v42 }
  0x97   : > { %v1023_v46 = vunpack.i.h.bf16 %v1021_v43  ;;  %v1022_v47 = vunpack.i.l.bf16 %v1021_v43 }
  0x98   : > { %v445_v52 = vsel %vm444_vm10, %v442_v48, %v1012_v45  ;;  %v446_v53 = vsel %vm444_vm10, %v443_v49, %v1013_v44 }
  0x99   : > { %v448_v54 = vsel %vm447_vm11, %v445_v52, %v1017_v51  ;;  %v449_v55 = vsel %vm447_vm11, %v446_v53, %v1018_v50 }
  0x9a   : > { %v451_v56 = vsel %vm450_vm12, %v448_v54, %v1022_v47  ;;  %v452_v57 = vsel %vm450_vm12, %v449_v55, %v1023_v46 }
  0x9b   : > { %v453_v58 = vpack.c.bf16 %v452_v57, %v451_v56 }
  0x9d   : > { %899 = vmatmul.msk.bf16.vlgmr.msra.gmra.mxu0 %vm470_vm13, %v453_v58 }
 0x11a   : > { %v487_v10 = vpop.f32.mrf.mxu0 }
 0x11b   : > { %v488_v11 = vadd.f32 %v1024_v9, %v487_v10 }
 0x11d   : > { %v492_v12 = vmax.f32 %v488_v11, 0.0 }
 0x11f   : > { %v498_v14 = vmul.f32 %v1025_v13, %v492_v12 }
 0x121   : > { %v504_v19 = vadd.f32 %v1026_v15, %v498_v14 }
 0x122   : > { %v489_v16 = vpop.f32.mrf.mxu0 }
 0x123   : > { %v490_v17 = vadd.f32 %v1024_v9, %v489_v16  ;;  %v517_v22 = vrot.slane %v504_v19, 7  ;;  %v506_v23 = vrot.slane %v504_v19, 6  ;;  %v625_v28 = vrot.slane %v504_v19, 1 }
 0x124   : > { %v668_v32 = vrot.slane %v504_v19, 2 }
 0x125   : > { %v493_v18 = vmax.f32 %v490_v17, 0.0 }
 0x127   : > { %v499_v20 = vmul.f32 %v1025_v13, %v493_v18 }
 0x129   : > { %v505_v21 = vadd.f32 %v1026_v15, %v499_v20 }
 0x12b   : > { %v588_v24 = vpack.c.bf16 %v505_v21, %v504_v19  ;;  %v518_v25 = vrot.slane %v505_v21, 7  ;;  %v507_v26 = vrot.slane %v505_v21, 6  ;;  %v626_v27 = vrot.slane %v505_v21, 1 }
 0x12c   : > { %v669_v2 = vrot.slane %v505_v21, 2 }
 0x12d   : > { %934 = vmatmul.msk.bf16.vlgmr.msra.gmra.mxu3 %vm541_vm14, %v588_v24  ;;  %v519_v29 = vsel %vm378_vm0, %v517_v22, %v518_v25  ;;  %v520_v30 = vsel %vm378_vm0, %v518_v25, %v517_v22  ;;  %v508_v31 = vsel %vm367_vm7, %v506_v23, %v507_v26  ;;  %v509_v33 = vsel %vm367_vm7, %v507_v26, %v506_v23 }
 0x12e   : > { %v521_v34 = vsel %vm341_vm1, %v520_v30, 0.0  ;;  %v510_v35 = vsel %vm333_vm8, %v509_v33, 0.0  ;;  %v627_v36 = vsel %vm389_vm2, %v625_v28, %v626_v27  ;;  %v628_v37 = vsel %vm389_vm2, %v626_v27, %v625_v28 }
 0x12f   : > { %v523_v38 = vpack.c.bf16 %v519_v29, %v521_v34  ;;  %v512_v39 = vpack.c.bf16 %v508_v31, %v510_v35  ;;  %v630_v40 = vsel %vm352_vm3, %v628_v37, 0.0  ;;  %v671_v42 = vsel %vm400_vm4, %v669_v2, %v668_v32 }
 0x130   : > { %v631_v41 = vpack.c.bf16 %v630_v40, %v627_v36  ;;  %v670_v43 = vsel %vm400_vm4, %v668_v32, %v669_v2  ;;  %v673_v44 = vsel %vm360_vm5, %v671_v42, 0.0 }
 0x131   : > { %912 = vmatmul.msk.bf16.vlgmr.msra.gmra.mxu1 %vm541_vm14, %v523_v38  ;;  %921 = vmatmul.msk.bf16.vlgmr.msra.gmra.mxu2 %vm541_vm14, %v512_v39  ;;  %v674_v6 = vpack.c.bf16 %v673_v44, %v670_v43 }
 0x132   : > { %947 = vmatmul.msk.bf16.vlgmr.msrb.gmra.mxu0 %vm541_vm14, %v631_v41 }
 0x141   : > { %960 = vmatmul.msk.bf16.vlgmr.msrb.gmra.mxu1 %vm541_vm14, %v674_v6 }
 0x1ae   : > { %v554_v45 = vpop.f32.mrf.mxu1 }
 0x1af   : > { %v661_v51 = vpop.f32.mrf.mxu0 }
 0x1b0   : > { %v618_v48 = vpop.f32.mrf.mxu3 }
 0x1b4   : > { %v583_v46 = vpop.f32.mrf.mxu2 }
 0x1b5   : > { %v584_v47 = vadd.f32 %v583_v46, %v554_v45 }
 0x1b6   : > { %v556_v49 = vpop.f32.mrf.mxu1 }
 0x1b7   : > { %v623_v50 = vadd.f32 %v618_v48, %v584_v47  ;;  %v663_v62 = vpop.f32.mrf.mxu0 }
 0x1b8   : > { %v620_v56 = vpop.f32.mrf.mxu3 }
 0x1b9   : > { %v666_v54 = vadd.f32 %v661_v51, %v623_v50 }
 0x1bc   : > { %v585_v52 = vpop.f32.mrf.mxu2 }
 0x1bd   : > { %v586_v53 = vadd.f32 %v585_v52, %v556_v49 }
 0x1be   : > { %v704_v55 = vpop.f32.mrf.mxu1 }
 0x1bf   : > { %v709_v7 = vadd.f32 %v704_v55, %v666_v54  ;;  %v624_v57 = vadd.f32 %v620_v56, %v586_v53 }
 0x1c1   : > { %v715_v58 = vadd.f32 %v1027_v1, %v709_v7  ;;  %v667_v0 = vadd.f32 %v663_v62, %v624_v57 }
 0x1c3   : > { %v717_v60 = vmax.f32 %v715_v58, 0.0 }
 0x1c5   : > { %v723_v63 = vmul.f32 %v1028_v59, %v717_v60 }
 0x1c6   : > { %v706_v3 = vpop.f32.mrf.mxu1 }
 0x1c7   : > { %v729_v4 = vadd.f32 %v1029_v61, %v723_v63  ;;  %v710_v5 = vadd.f32 %v706_v3, %v667_v0 }
 0x1c9   : > { %731 = vst.msk [vmem:[#allocation2] sm:$0xff] %vm541_vm14, %v729_v4  ;;  %v716_v8 = vadd.f32 %v1027_v1, %v710_v5 }
 0x1cb   : > { %v718_v9 = vmax.f32 %v716_v8, 0.0 }
 0x1cd   : > { %v724_v10 = vmul.f32 %v1028_v59, %v718_v9 }
 0x1cf   : > { %v730_v11 = vadd.f32 %v1029_v61, %v724_v10 }
 0x1d1   : > { %732 = vst.msk [vmem:[#allocation2 + $0x8] sm:$0xff] %vm541_vm14, %v730_v11 }
 0x1d8   : > { %v733_v12 = vld [vmem:[#allocation2] ss:$2 sm:$0xff]  ;;  %v735_v13 = vld [vmem:[#allocation2 + $0x1] ss:$2 sm:$0xff] }
 0x1d9   : > { %v736_v14 = vmax.f32 %v733_v12, %v735_v13 }
 0x1db   : > { %v738_v15 = vrot.slane %v736_v14, 1  ;;  %v739_v16 = vrot.slane %v736_v14, 2  ;;  %v740_v17 = vrot.slane %v736_v14, 3  ;;  %753 = vst.msk [vmem:[%s321_s20] sm:$0x1] %vm752_vm15, %v736_v14  ;;  %v741_v18 = vrot.slane %v736_v14, 4 }
 0x1dc   : > { %v742_v19 = vrot.slane %v736_v14, 5  ;;  %v743_v20 = vrot.slane %v736_v14, 6  ;;  %v744_v21 = vrot.slane %v736_v14, 7 }
 0x1dd   : > { %754 = vst.msk [vmem:[%s321_s20 + $0x1] sm:$0x1] %vm752_vm15, %v738_v15 }
 0x1de   : > { %755 = vst.msk [vmem:[%s321_s20 + $0x2] sm:$0x1] %vm752_vm15, %v739_v16 }
 0x1df   : > { %756 = vst.msk [vmem:[%s321_s20 + $0x3] sm:$0x1] %vm752_vm15, %v740_v17  ;;  %767 = sbr.rel (!%p1133_p4) target bundleno = 492 (0x1ec), region = 60 }
 0x1e0   : > { %757 = vst.msk [vmem:[%s321_s20 + $0x4] sm:$0x1] %vm752_vm15, %v741_v18 }
 0x1e1   : > { %758 = vst.msk [vmem:[%s321_s20 + $0x5] sm:$0x1] %vm752_vm15, %v742_v19 }
 0x1e2   : > { %759 = vst.msk [vmem:[%s321_s20 + $0x6] sm:$0x1] %vm752_vm15, %v743_v20  ;;  %v785_v22 = vld [vmem:[%s321_s20] sm:$0x1] (%p1133_p4) }
 0x1e3   : > { %760 = vst.msk [vmem:[%s321_s20 + $0x7] sm:$0x1] %vm752_vm15, %v744_v21 }
 0x1e4   : > { %v787_v23 = vld [vmem:[%s321_s20 + $0x1] sm:$0x1]  ;;  %786 = vst [vmem:[%s768_s22] sm:$0x1] %v785_v22 }
 0x1e5   : > { %v789_v24 = vld [vmem:[%s321_s20 + $0x2] sm:$0x1]  ;;  %788 = vst [vmem:[%s768_s22 + $0x2] sm:$0x1] %v787_v23 }
 0x1e6   : > { %v791_v25 = vld [vmem:[%s321_s20 + $0x3] sm:$0x1]  ;;  %790 = vst [vmem:[%s768_s22 + $0x4] sm:$0x1] %v789_v24 }
 0x1e7   : > { %v793_v26 = vld [vmem:[%s321_s20 + $0x4] sm:$0x1]  ;;  %792 = vst [vmem:[%s768_s22 + $0x6] sm:$0x1] %v791_v25 }
 0x1e8   : > { %v795_v27 = vld [vmem:[%s321_s20 + $0x5] sm:$0x1]  ;;  %794 = vst [vmem:[%s768_s22 + $0x8] sm:$0x1] %v793_v26 }
 0x1e9   : > { %v797_v28 = vld [vmem:[%s321_s20 + $0x6] sm:$0x1]  ;;  %796 = vst [vmem:[%s768_s22 + $0xa] sm:$0x1] %v795_v27 }
 0x1ea   : > { %v799_v29 = vld [vmem:[%s321_s20 + $0x7] sm:$0x1]  ;;  %798 = vst [vmem:[%s768_s22 + $0xc] sm:$0x1] %v797_v28 }
 0x1eb   : > { %800 = vst [vmem:[%s768_s22 + $0xe] sm:$0x1] %v799_v29 }
 0x1ec PF: > { %p16_p8 = scmp.ge.s32.totalorder %s1123_s13, 4   ;;  %s1308_s30 = smov %s1048_s10 }
 0x1ed   : > { %s1309_s10 = smov %s1131_s16  ;;  %s1310_s11 = smov %s1123_s13 }
 0x1ee   :  { %18 = sbr.rel (!%p16_p8) target bundleno = 2 (0x2), region = 132 }

// kernel: convgru_forward.3
= control target key start
LH: loop header
LB: loop body
LE: loop exit
PB: predicated region body
PF: predicated region fallthrough
CT: control target
= control target key end

     0   :  { %s1861_s0 = inlined_call_operand.vmem [shape: f32[16,32], index: 0, kind: input, shape index: {}]   ;;  %s1862_s1 = inlined_call_operand.vmem [shape: bf16[2,32,96], index: 1, kind: input, shape index: {}]   ;;  %s1863_s2 = inlined_call_operand.vmem [shape: bf16[2,32,96], index: 2, kind: input, shape index: {}]   ;;  %s1864_s3 = inlined_call_operand.vmem [shape: f32[2,1,96], index: 3, kind: input, shape index: {}]   ;;  %s1865_s4 = inlined_call_operand.vmem [shape: f32[2,1,96], index: 4, kind: input, shape index: {}]   ;;  %s1866_s5 = inlined_call_operand.vmem [shape: bf16[32,32], index: 5, kind: input, shape index: {}]   ;;  %s1867_s6 = inlined_call_operand.vmem [shape: f32[1,32], index: 6, kind: input, shape index: {}]   ;;  %s1868_s7 = inlined_call_operand.vmem [shape: f32[1,32], index: 7, kind: input, shape index: {}]   ;;  %s1869_s8 = inlined_call_operand.vmem [shape: f32[1,32], index: 8, kind: input, shape index: {}]   ;;  %s1870_s9 = inlined_call_operand.vmem [shape: bf16[32,3], index: 9, kind: input, shape index: {}]   ;;  %s1871_s10 = inlined_call_operand.vmem [shape: f32[1,3], index: 10, kind: input, shape index: {}]   ;;  %s1872_s11 = inlined_call_operand.hbm [shape: f32[2,3], index: 11, kind: output, shape index: {}]  }
   0x1   :  { %v1406_v0 = vld [vmem:[%s1862_s1 + $0x8] sm:$0xff]  ;;  %v1405_v2 = vld [vmem:[%s1862_s1] sm:$0xff] }
   0x2   :  { %v1408_v1 = vld [vmem:[%s1863_s2 + $0x8] sm:$0xff]  ;;  %v1407_v3 = vld [vmem:[%s1863_s2] sm:$0xff]  ;;  %78 = vmatpush.bf16.msra.mxu0 %v1406_v0 }
   0x3   :  { %v50_v4 = vld [vmem:[%s1861_s0] sm:$0xff]  ;;  %114 = vmatpush.bf16.msra.mxu1 %v1408_v1  ;;  %v51_v5 = vld [vmem:[%s1861_s0 + $0x8] sm:$0xff]  ;;  %183 = vmatpush.bf16.msra.mxu2 %v1408_v1 }
   0x4   :  { %251 = vmatpush.bf16.msra.mxu3 %v1408_v1  ;;  %v52_v6 = vpack.c.bf16 %v51_v5, %v50_v4 }
   0x5   :  { %16 = vsyncpa [#allocation5], 0  ;;  %vm68_vm0 = vcmask 261120   ;;  %v1552_v7 = vmov 0   ;;  %v1422_v8 = vld [vmem:[%s1864_s3] ss:$0 sm:$0xff] }
   0x6   :  { %79 = vmatpush.bf16.msra.mxu0 %v1405_v2  ;;  %v1643_v9 = vld [vmem:[%s1865_s4] ss:$0 sm:$0xff]  ;;  %vm86_vm1 = vcmask 785408   ;;  %s1553_s13 = smov 64   ;;  %s1554_s14 = smov 96  }
   0x7   :  { %115 = vmatpush.bf16.msra.mxu1 %v1407_v3  ;;  %184 = vmatpush.bf16.msra.mxu2 %v1407_v3  ;;  %s1555_s15 = smov 32   ;;  %s1304_s20 = sshll.u32 %s1872_s11, 4  ;;  %s1305_s20 = int_to_ptr.hbm [resolvable:$true] %s1304_s20 }
   0x8   :  { %252 = vmatpush.bf16.msra.mxu3 %v1407_v3 }
   0x9   :  { %1321 = vmatmul.msk.bf16.vlgmr.msra.gmra.mxu0 %vm68_vm0, %v52_v6 }
   0xa   :  { %319 = vmatpush.bf16.msrb.mxu0 %v1408_v1  ;;  %116 = vmatmul.bf16.vlgmr.msra.gmra.mxu1 %v1552_v7 }
   0xb   :  { %387 = vmatpush.bf16.msrb.mxu1 %v1408_v1  ;;  %455 = vmatpush.bf16.msrb.mxu2 %v1408_v1 }
   0xc   :  { %523 = vmatpush.bf16.msrb.mxu3 %v1408_v1 }
   0xe   :  { %320 = vmatpush.bf16.msrb.mxu0 %v1407_v3 }
   0xf   :  { %388 = vmatpush.bf16.msrb.mxu1 %v1407_v3  ;;  %456 = vmatpush.bf16.msrb.mxu2 %v1407_v3 }
  0x10   :  { %524 = vmatpush.bf16.msrb.mxu3 %v1407_v3 }
  0x12   :  { %591 = vmatpush.bf16.msra.mxu0 %v1408_v1 }
  0x16   :  { %592 = vmatpush.bf16.msra.mxu0 %v1407_v3 }
  0x86   :  { %v81_v10 = vpop.f32.mrf.mxu0 }
  0x87   :  { %v117_v11 = vpop.f32.mrf.mxu1  ;;  %v82_v12 = vadd.f32 %v1422_v8, %v81_v10 }
  0x88   :  { %v118_v13 = vadd.f32 %v1643_v9, %v117_v11 }
  0x89   :  { %87 = vst.msk [vmem:[#allocation3] sm:$0xff] %vm86_vm1, %v82_v12 }
  0x8a   :  { %142 = vrot.lane.b32.xlu0 %v118_v13, %s1553_s13 }
  0x8e   :  { %v83_v15 = vpop.f32.mrf.mxu0 }
  0x8f   :  { %v119_v14 = vpop.f32.mrf.mxu1  ;;  %v84_v16 = vadd.f32 %v1422_v8, %v83_v15 }
  0x90   :  { %v89_v17 = vld [vmem:[#allocation3] sm:$0x3]  ;;  %v169_v47 = vld [vmem:[#allocation3 + $0x2] sm:$0x3]  ;;  %v237_v15 = vld [vmem:[#allocation3 + $0x4] sm:$0x3] }
  0x91   :  { %88 = vst.msk [vmem:[#allocation3 + $0x8] sm:$0xff] %vm86_vm1, %v84_v16  ;;  %v121_v18 = vadd.f32 %v118_v13, %v89_v17 }
  0x93   :  { %v1330_v19 = vmul.f32 -1.442695, %v121_v18 }
  0x95   :  { %1430 = vpow2.f32 %v1330_v19 }
  0x9b   :  { %v1431_v20 = vpop.eup %1430 }
  0x9c   :  { %v125_v21 = vadd.f32 1.0, %v1431_v20 }
  0x9e   :  { %1432 = vrcp.f32 %v125_v21  ;;  %v137_v27 = vand.u32 2147483648, %v125_v21  ;;  %vm131_vm3 = vweird.f32 %v125_v21  ;;  %v135_v28 = vand.u32 2147483647, %v125_v21 }
  0xa0   :  { %v138_v30 = vor.u32 1.1754944e-38, %v137_v27  ;;  %vm136_vm5 = vcmp.eq.f32.partialorder %v135_v28, 8.507059e+37 }
  0xa4   :  { %v1433_v22 = vpop.eup %1432 }
  0xa5   :  { %v127_v23 = vmul.f32 %v1433_v22, %v125_v21  ;;  %vm132_vm2 = vweird.f32 %v1433_v22 }
  0xa6   :  { %vm133_vm4 = vmor %vm131_vm3, %vm132_vm2 }
  0xa7   :  { %v128_v24 = vsub.f32 1.0, %v127_v23 }
  0xa9   :  { %v129_v25 = vmul.f32 %v1433_v22, %v128_v24 }
  0xab   :  { %v130_v26 = vadd.f32 %v1433_v22, %v129_v25 }
  0xad   :  { %v134_v29 = vsel %vm133_vm4, %v1433_v22, %v130_v26 }
  0xae   :  { %v139_v32 = vsel %vm136_vm5, %v138_v30, %v134_v29 }
  0xfc   :  { %v143_v31 = vpop.permute.xlu0 %142 }
  0xfd   :  { %v145_v33 = vmul.f32 %v143_v31, %v139_v32 }
  0xff   :  { %147 = vrot.lane.b32.xlu0 %v145_v33, %s1553_s13 }
 0x171   :  { %v148_v34 = vpop.permute.xlu0 %147 }
 0x172   :  { %v150_v35 = vadd.f32 %v148_v34, %v89_v17 }
 0x174   :  { %1434 = vtanh.f32 %v150_v35 }
 0x17a   :  { %v1435_v36 = vpop.eup %1434 }
 0x17b   :  { %v152_v37 = vsub.f32 0.0, %v1435_v36 }
 0x17d   :  { %154 = vrot.lane.b32.xlu1 %v152_v37, %s1554_s14 }
 0x1ef   :  { %v155_v38 = vpop.permute.xlu1 %154 }
 0x1f0   :  { %v157_v39 = vmul.f32 %v155_v38, %v139_v32 }
 0x1f2   :  { %159 = vrot.lane.b32.xlu1 %v157_v39, %s1555_s15 }
 0x264   :  { %v160_v40 = vpop.permute.xlu1 %159 }
 0x265   :  { %v1652_v41 = vadd.f32 %v1435_v36, %v160_v40 }
 0x267   :  { %v170_v42 = vpack.c.bf16 %v1652_v41, %v1652_v41 }
 0x269   :  { %172 = vrot.lane.b32.xlu2 %v170_v42, %s1553_s13 }
 0x2c3   :  { %v173_v43 = vpop.permute.xlu2 %172 }
 0x2c4   :  { %1331 = vmatmul.msk.bf16.vlgmr.msra.gmra.mxu2 %vm68_vm0, %v173_v43 }
 0x347   :  { %v186_v44 = vpop.f32.mrf.mxu2 }
 0x348   :  { %v187_v45 = vadd.f32 %v1643_v9, %v186_v44 }
 0x34a   :  { %211 = vrot.lane.b32.xlu2 %v187_v45, %s1553_s13  ;;  %v190_v48 = vadd.f32 %v187_v45, %v169_v47 }
 0x34c   :  { %v1332_v49 = vmul.f32 -1.442695, %v190_v48 }
 0x34e   :  { %1436 = vpow2.f32 %v1332_v49 }
 0x34f   :  { %v188_v46 = vpop.f32.mrf.mxu2 }
 0x350   :  { %v305_v46 = vld [vmem:[#allocation3 + $0x6] sm:$0x3] }
 0x354   :  { %v1437_v50 = vpop.eup %1436 }
 0x355   :  { %v194_v51 = vadd.f32 1.0, %v1437_v50 }
 0x357   :  { %1438 = vrcp.f32 %v194_v51  ;;  %v206_v57 = vand.u32 2147483648, %v194_v51  ;;  %vm200_vm7 = vweird.f32 %v194_v51  ;;  %v204_v58 = vand.u32 2147483647, %v194_v51 }
 0x359   :  { %v207_v60 = vor.u32 1.1754944e-38, %v206_v57  ;;  %vm205_vm9 = vcmp.eq.f32.partialorder %v204_v58, 8.507059e+37 }
 0x35d   :  { %v1439_v52 = vpop.eup %1438 }
 0x35e   :  { %v196_v53 = vmul.f32 %v1439_v52, %v194_v51  ;;  %vm201_vm6 = vweird.f32 %v1439_v52 }
 0x35f   :  { %vm202_vm8 = vmor %vm200_vm7, %vm201_vm6 }
 0x360   :  { %v197_v54 = vsub.f32 1.0, %v196_v53 }
 0x362   :  { %v198_v55 = vmul.f32 %v1439_v52, %v197_v54 }
 0x364   :  { %v199_v56 = vadd.f32 %v1439_v52, %v198_v55 }
 0x366   :  { %v203_v59 = vsel %vm202_vm8, %v1439_v52, %v199_v56 }
 0x367   :  { %v208_v62 = vsel %vm205_vm9, %v207_v60, %v203_v59 }
 0x3a4   :  { %v212_v61 = vpop.permute.xlu2 %211 }
 0x3a5   :  { %v214_v63 = vmul.f32 %v212_v61, %v208_v62 }
 0x3a7   :  { %216 = vrot.lane.b32.xlu0 %v214_v63, %s1553_s13 }
 0x419   :  { %v217_v0 = vpop.permute.xlu0 %216 }
 0x41a   :  { %v219_v1 = vadd.f32 %v217_v0, %v169_v47 }
 0x41c   :  { %1440 = vtanh.f32 %v219_v1 }
 0x422   :  { %v1441_v2 = vpop.eup %1440 }
 0x423   :  { %v221_v3 = vsub.f32 %v1652_v41, %v1441_v2 }
 0x425   :  { %223 = vrot.lane.b32.xlu1 %v221_v3, %s1554_s14 }
 0x497   :  { %v224_v4 = vpop.permute.xlu1 %223 }
 0x498   :  { %v226_v5 = vmul.f32 %v224_v4, %v208_v62 }
 0x49a   :  { %228 = vrot.lane.b32.xlu2 %v226_v5, %s1555_s15 }
 0x4f4   :  { %v229_v6 = vpop.permute.xlu2 %228 }
 0x4f5   :  { %v1664_v8 = vadd.f32 %v1441_v2, %v229_v6 }
 0x4f7   :  { %v238_v10 = vpack.c.bf16 %v1664_v8, %v1664_v8 }
 0x4f9   :  { %240 = vrot.lane.b32.xlu0 %v238_v10, %s1553_s13 }
 0x56b   :  { %v241_v11 = vpop.permute.xlu0 %240 }
 0x56c   :  { %1333 = vmatmul.msk.bf16.vlgmr.msra.gmra.mxu3 %vm68_vm0, %v241_v11 }
 0x5ef   :  { %v254_v12 = vpop.f32.mrf.mxu3 }
 0x5f0   :  { %v255_v13 = vadd.f32 %v1643_v9, %v254_v12 }
 0x5f2   :  { %279 = vrot.lane.b32.xlu1 %v255_v13, %s1553_s13  ;;  %v258_v16 = vadd.f32 %v255_v13, %v237_v15 }
 0x5f4   :  { %v1334_v17 = vmul.f32 -1.442695, %v258_v16 }
 0x5f6   :  { %1442 = vpow2.f32 %v1334_v17 }
 0x5f7   :  { %v256_v14 = vpop.f32.mrf.mxu3 }
 0x5fc   :  { %v1443_v18 = vpop.eup %1442 }
 0x5fd   :  { %v262_v19 = vadd.f32 1.0, %v1443_v18 }
 0x5ff   :  { %1444 = vrcp.f32 %v262_v19  ;;  %v274_v25 = vand.u32 2147483648, %v262_v19  ;;  %vm268_vm11 = vweird.f32 %v262_v19  ;;  %v272_v26 = vand.u32 2147483647, %v262_v19 }
 0x601   :  { %v275_v28 = vor.u32 1.1754944e-38, %v274_v25  ;;  %vm273_vm13 = vcmp.eq.f32.partialorder %v272_v26, 8.507059e+37 }
 0x605   :  { %v1445_v20 = vpop.eup %1444 }
 0x606   :  { %v264_v21 = vmul.f32 %v1445_v20, %v262_v19  ;;  %vm269_vm10 = vweird.f32 %v1445_v20 }
 0x607   :  { %vm270_vm12 = vmor %vm268_vm11, %vm269_vm10 }
 0x608   :  { %v265_v22 = vsub.f32 1.0, %v264_v21 }
 0x60a   :  { %v266_v23 = vmul.f32 %v1445_v20, %v265_v22 }
 0x60c   :  { %v267_v24 = vadd.f32 %v1445_v20, %v266_v23 }
 0x60e   :  { %v271_v27 = vsel %vm270_vm12, %v1445_v20, %v267_v24 }
 0x60f   :  { %v276_v30 = vsel %vm273_vm13, %v275_v28, %v271_v27 }
 0x664   :  { %v280_v29 = vpop.permute.xlu1 %279 }
 0x665   :  { %v282_v31 = vmul.f32 %v280_v29, %v276_v30 }
 0x667   :  { %284 = vrot.lane.b32.xlu2 %v282_v31, %s1553_s13 }
 0x6c1   :  { %v285_v32 = vpop.permute.xlu2 %284 }
 0x6c2   :  { %v287_v33 = vadd.f32 %v285_v32, %v237_v15  ;;  %v373_v15 = vld [vmem:[#allocation3 + $0x8] sm:$0x3] }
 0x6c4   :  { %1446 = vtanh.f32 %v287_v33 }
 0x6ca   :  { %v1447_v34 = vpop.eup %1446 }
 0x6cb   :  { %v289_v35 = vsub.f32 %v1664_v8, %v1447_v34 }
 0x6cd   :  { %291 = vrot.lane.b32.xlu0 %v289_v35, %s1554_s14 }
 0x73f   :  { %v292_v36 = vpop.permute.xlu0 %291 }
 0x740   :  { %v294_v37 = vmul.f32 %v292_v36, %v276_v30 }
 0x742   :  { %296 = vrot.lane.b32.xlu1 %v294_v37, %s1555_s15 }
 0x7b4   :  { %v297_v38 = vpop.permute.xlu1 %296 }
 0x7b5   :  { %v1676_v39 = vadd.f32 %v1447_v34, %v297_v38 }
 0x7b7   :  { %v306_v40 = vpack.c.bf16 %v1676_v39, %v1676_v39 }
 0x7b9   :  { %308 = vrot.lane.b32.xlu2 %v306_v40, %s1553_s13 }
 0x813   :  { %v309_v42 = vpop.permute.xlu2 %308 }
 0x814   :  { %1335 = vmatmul.msk.bf16.vlgmr.msrb.gmra.mxu0 %vm68_vm0, %v309_v42 }
 0x891   :  { %v322_v43 = vpop.f32.mrf.mxu0 }
 0x892   :  { %v323_v44 = vadd.f32 %v1643_v9, %v322_v43 }
 0x894   :  { %347 = vrot.lane.b32.xlu0 %v323_v44, %s1553_s13  ;;  %v326_v47 = vadd.f32 %v323_v44, %v305_v46 }
 0x896   :  { %v1336_v48 = vmul.f32 -1.442695, %v326_v47  ;;  %v441_v47 = vld [vmem:[#allocation3 + $0xa] sm:$0x3] }
 0x898   :  { %1448 = vpow2.f32 %v1336_v48 }
 0x899   :  { %v324_v45 = vpop.f32.mrf.mxu0 }
 0x89e   :  { %v1449_v49 = vpop.eup %1448 }
 0x89f   :  { %v330_v50 = vadd.f32 1.0, %v1449_v49 }
 0x8a1   :  { %1450 = vrcp.f32 %v330_v50  ;;  %v342_v56 = vand.u32 2147483648, %v330_v50  ;;  %vm336_vm15 = vweird.f32 %v330_v50  ;;  %v340_v57 = vand.u32 2147483647, %v330_v50 }
 0x8a3   :  { %v343_v59 = vor.u32 1.1754944e-38, %v342_v56  ;;  %vm341_vm3 = vcmp.eq.f32.partialorder %v340_v57, 8.507059e+37 }
 0x8a7   :  { %v1451_v51 = vpop.eup %1450 }
 0x8a8   :  { %v332_v52 = vmul.f32 %v1451_v51, %v330_v50  ;;  %vm337_vm14 = vweird.f32 %v1451_v51 }
 0x8a9   :  { %vm338_vm2 = vmor %vm336_vm15, %vm337_vm14 }
 0x8aa   :  { %v333_v53 = vsub.f32 1.0, %v332_v52 }
 0x8ac   :  { %v334_v54 = vmul.f32 %v1451_v51, %v333_v53 }
 0x8ae   :  { %v335_v55 = vadd.f32 %v1451_v51, %v334_v54 }
 0x8b0   :  { %v339_v58 = vsel %vm338_vm2, %v1451_v51, %v335_v55 }
 0x8b1   :  { %v344_v61 = vsel %vm341_vm3, %v343_v59, %v339_v58 }
 0x906   :  { %v348_v60 = vpop.permute.xlu0 %347 }
 0x907   :  { %v350_v62 = vmul.f32 %v348_v60, %v344_v61 }
 0x909   :  { %352 = vrot.lane.b32.xlu1 %v350_v62, %s1553_s13 }
 0x97b   :  { %v353_v63 = vpop.permute.xlu1 %352 }
 0x97c   :  { %v355_v0 = vadd.f32 %v353_v63, %v305_v46 }
 0x97e   :  { %1452 = vtanh.f32 %v355_v0 }
 0x984   :  { %v1453_v1 = vpop.eup %1452 }
 0x985   :  { %v357_v2 = vsub.f32 %v1676_v39, %v1453_v1 }
 0x987   :  { %359 = vrot.lane.b32.xlu2 %v357_v2, %s1554_s14 }
 0x9e1   :  { %v360_v3 = vpop.permute.xlu2 %359 }
 0x9e2   :  { %v362_v4 = vmul.f32 %v360_v3, %v344_v61 }
 0x9e4   :  { %364 = vrot.lane.b32.xlu0 %v362_v4, %s1555_s15 }
 0xa56   :  { %v365_v5 = vpop.permute.xlu0 %364 }
 0xa57   :  { %v1688_v6 = vadd.f32 %v1453_v1, %v365_v5 }
 0xa59   :  { %v374_v10 = vpack.c.bf16 %v1688_v6, %v1688_v6 }
 0xa5b   :  { %376 = vrot.lane.b32.xlu1 %v374_v10, %s1553_s13 }
 0xacd   :  { %v377_v11 = vpop.permute.xlu1 %376 }
 0xace   :  { %1337 = vmatmul.msk.bf16.vlgmr.msrb.gmra.mxu1 %vm68_vm0, %v377_v11 }
 0xb4b   :  { %v390_v12 = vpop.f32.mrf.mxu1 }
 0xb4c   :  { %v391_v13 = vadd.f32 %v1643_v9, %v390_v12 }
 0xb4e   :  { %415 = vrot.lane.b32.xlu2 %v391_v13, %s1553_s13  ;;  %v394_v16 = vadd.f32 %v391_v13, %v373_v15 }
 0xb50   :  { %v1338_v17 = vmul.f32 -1.442695, %v394_v16 }
 0xb52   :  { %1454 = vpow2.f32 %v1338_v17  ;;  %v509_v17 = vld [vmem:[#allocation3 + $0xc] sm:$0x3] }
 0xb53   :  { %v392_v14 = vpop.f32.mrf.mxu1 }
 0xb58   :  { %v1455_v18 = vpop.eup %1454 }
 0xb59   :  { %v398_v19 = vadd.f32 1.0, %v1455_v18 }
 0xb5b   :  { %1456 = vrcp.f32 %v398_v19  ;;  %v410_v25 = vand.u32 2147483648, %v398_v19  ;;  %vm404_vm5 = vweird.f32 %v398_v19  ;;  %v408_v26 = vand.u32 2147483647, %v398_v19 }
 0xb5d   :  { %v411_v28 = vor.u32 1.1754944e-38, %v410_v25  ;;  %vm409_vm7 = vcmp.eq.f32.partialorder %v408_v26, 8.507059e+37 }
 0xb61   :  { %v1457_v20 = vpop.eup %1456 }
 0xb62   :  { %v400_v21 = vmul.f32 %v1457_v20, %v398_v19  ;;  %vm405_vm4 = vweird.f32 %v1457_v20 }
 0xb63   :  { %vm406_vm6 = vmor %vm404_vm5, %vm405_vm4 }
 0xb64   :  { %v401_v22 = vsub.f32 1.0, %v400_v21 }
 0xb66   :  { %v402_v23 = vmul.f32 %v1457_v20, %v401_v22 }
 0xb68   :  { %v403_v24 = vadd.f32 %v1457_v20, %v402_v23 }
 0xb6a   :  { %v407_v27 = vsel %vm406_vm6, %v1457_v20, %v403_v24  ;;  %vm167_vm6 = vcmask 254976  }
 0xb6b   :  { %v412_v30 = vsel %vm409_vm7, %v411_v28, %v407_v27 }
 0xba8   :  { %v416_v29 = vpop.permute.xlu2 %415 }
 0xba9   :  { %v418_v31 = vmul.f32 %v416_v29, %v412_v30 }
 0xbab   :  { %420 = vrot.lane.b32.xlu0 %v418_v31, %s1553_s13 }
 0xc1d   :  { %v421_v32 = vpop.permute.xlu0 %420 }
 0xc1e   :  { %v423_v33 = vadd.f32 %v421_v32, %v373_v15 }
 0xc20   :  { %1458 = vtanh.f32 %v423_v33 }
 0xc26   :  { %v1459_v34 = vpop.eup %1458 }
 0xc27   :  { %v425_v35 = vsub.f32 %v1688_v6, %v1459_v34 }
 0xc29   :  { %427 = vrot.lane.b32.xlu1 %v425_v35, %s1554_s14 }
 0xc9b   :  { %v428_v36 = vpop.permute.xlu1 %427 }
 0xc9c   :  { %v430_v37 = vmul.f32 %v428_v36, %v412_v30 }
 0xc9e   :  { %432 = vrot.lane.b32.xlu2 %v430_v37, %s1555_s15 }
 0xcf8   :  { %v433_v38 = vpop.permute.xlu2 %432 }
 0xcf9   :  { %v1700_v40 = vadd.f32 %v1459_v34, %v433_v38 }
 0xcfb   :  { %v442_v42 = vpack.c.bf16 %v1700_v40, %v1700_v40 }
 0xcfd   :  { %444 = vrot.lane.b32.xlu0 %v442_v42, %s1553_s13 }
 0xd6f   :  { %v445_v43 = vpop.permute.xlu0 %444 }
 0xd70   :  { %1339 = vmatmul.msk.bf16.vlgmr.msrb.gmra.mxu2 %vm68_vm0, %v445_v43 }
 0xdf3   :  { %v458_v44 = vpop.f32.mrf.mxu2 }
 0xdf4   :  { %v459_v45 = vadd.f32 %v1643_v9, %v458_v44 }
 0xdf6   :  { %483 = vrot.lane.b32.xlu1 %v459_v45, %s1553_s13  ;;  %v462_v48 = vadd.f32 %v459_v45, %v441_v47 }
 0xdf8   :  { %v1340_v49 = vmul.f32 -1.442695, %v462_v48 }
 0xdfa   :  { %1460 = vpow2.f32 %v1340_v49 }
 0xdfb   :  { %v460_v46 = vpop.f32.mrf.mxu2 }
 0xe00   :  { %v1461_v50 = vpop.eup %1460 }
 0xe01   :  { %v466_v51 = vadd.f32 1.0, %v1461_v50  ;;  %v577_v50 = vld [vmem:[#allocation3 + $0xe] sm:$0x3] }
 0xe03   :  { %1462 = vrcp.f32 %v466_v51  ;;  %v478_v57 = vand.u32 2147483648, %v466_v51  ;;  %vm472_vm9 = vweird.f32 %v466_v51  ;;  %v476_v58 = vand.u32 2147483647, %v466_v51 }
 0xe05   :  { %v479_v60 = vor.u32 1.1754944e-38, %v478_v57  ;;  %vm477_vm11 = vcmp.eq.f32.partialorder %v476_v58, 8.507059e+37 }
 0xe09   :  { %v1463_v52 = vpop.eup %1462 }
 0xe0a   :  { %v468_v53 = vmul.f32 %v1463_v52, %v466_v51  ;;  %vm473_vm8 = vweird.f32 %v1463_v52 }
 0xe0b   :  { %vm474_vm10 = vmor %vm472_vm9, %vm473_vm8 }
 0xe0c   :  { %v469_v54 = vsub.f32 1.0, %v468_v53 }
 0xe0e   :  { %v470_v55 = vmul.f32 %v1463_v52, %v469_v54 }
 0xe10   :  { %v471_v56 = vadd.f32 %v1463_v52, %v470_v55 }
 0xe12   :  { %v475_v59 = vsel %vm474_vm10, %v1463_v52, %v471_v56 }
 0xe13   :  { %v480_v62 = vsel %vm477_vm11, %v479_v60, %v475_v59 }
 0xe68   :  { %v484_v61 = vpop.permute.xlu1 %483 }
 0xe69   :  { %v486_v63 = vmul.f32 %v484_v61, %v480_v62 }
 0xe6b   :  { %488 = vrot.lane.b32.xlu2 %v486_v63, %s1553_s13 }
 0xec5   :  { %v489_v0 = vpop.permute.xlu2 %488 }
 0xec6   :  { %v491_v1 = vadd.f32 %v489_v0, %v441_v47 }
 0xec8   :  { %1464 = vtanh.f32 %v491_v1 }
 0xece   :  { %v1465_v2 = vpop.eup %1464 }
 0xecf   :  { %v493_v3 = vsub.f32 %v1700_v40, %v1465_v2 }
 0xed1   :  { %495 = vrot.lane.b32.xlu0 %v493_v3, %s1554_s14 }
 0xf43   :  { %v496_v4 = vpop.permute.xlu0 %495 }
 0xf44   :  { %v498_v5 = vmul.f32 %v496_v4, %v480_v62 }
 0xf46   :  { %500 = vrot.lane.b32.xlu1 %v498_v5, %s1555_s15 }
 0xfb8   :  { %v501_v10 = vpop.permute.xlu1 %500 }
 0xfb9   :  { %v1712_v11 = vadd.f32 %v1465_v2, %v501_v10 }
 0xfbb   :  { %v510_v12 = vpack.c.bf16 %v1712_v11, %v1712_v11 }
 0xfbd   :  { %512 = vrot.lane.b32.xlu2 %v510_v12, %s1553_s13 }
0x1017   :  { %v513_v13 = vpop.permute.xlu2 %512 }
0x1018   :  { %1341 = vmatmul.msk.bf16.vlgmr.msrb.gmra.mxu3 %vm68_vm0, %v513_v13 }
0x109b   :  { %v526_v14 = vpop.f32.mrf.mxu3 }
0x109c   :  { %v527_v15 = vadd.f32 %v1643_v9, %v526_v14 }
0x109e   :  { %551 = vrot.lane.b32.xlu0 %v527_v15, %s1553_s13  ;;  %v530_v18 = vadd.f32 %v527_v15, %v509_v17 }
0x10a0   :  { %v1342_v19 = vmul.f32 -1.442695, %v530_v18 }
0x10a2   :  { %1466 = vpow2.f32 %v1342_v19  ;;  %v1409_v19 = vld [vmem:[%s1862_s1 + $0x10] sm:$0xff] }
0x10a3   :  { %v528_v16 = vpop.f32.mrf.mxu3 }
0x10a4   :  { %v1411_v16 = vld [vmem:[%s1863_s2 + $0x10] sm:$0xff] }
0x10a8   :  { %v1467_v20 = vpop.eup %1466 }
0x10a9   :  { %v534_v21 = vadd.f32 1.0, %v1467_v20  ;;  %v1769_v20 = vld [vmem:[%s1865_s4 + $0x1] ss:$0 sm:$0xff] }
0x10ab   :  { %1468 = vrcp.f32 %v534_v21  ;;  %v546_v27 = vand.u32 2147483648, %v534_v21  ;;  %vm540_vm13 = vweird.f32 %v534_v21  ;;  %v544_v28 = vand.u32 2147483647, %v534_v21 }
0x10ad   :  { %v547_v30 = vor.u32 1.1754944e-38, %v546_v27  ;;  %vm545_vm15 = vcmp.eq.f32.partialorder %v544_v28, 8.507059e+37  ;;  %v1425_v27 = vld [vmem:[%s1864_s3 + $0x1] ss:$0 sm:$0xff] }
0x10b1   :  { %v1469_v22 = vpop.eup %1468 }
0x10b2   :  { %v536_v23 = vmul.f32 %v1469_v22, %v534_v21  ;;  %vm541_vm12 = vweird.f32 %v1469_v22 }
0x10b3   :  { %vm542_vm14 = vmor %vm540_vm13, %vm541_vm12 }
0x10b4   :  { %v537_v24 = vsub.f32 1.0, %v536_v23 }
0x10b6   :  { %v538_v25 = vmul.f32 %v1469_v22, %v537_v24 }
0x10b8   :  { %v539_v26 = vadd.f32 %v1469_v22, %v538_v25 }
0x10ba   :  { %v543_v29 = vsel %vm542_vm14, %v1469_v22, %v539_v26 }
0x10bb   :  { %v548_v32 = vsel %vm545_vm15, %v547_v30, %v543_v29 }
0x1110   :  { %v552_v31 = vpop.permute.xlu0 %551 }
0x1111   :  { %v554_v33 = vmul.f32 %v552_v31, %v548_v32 }
0x1113   :  { %556 = vrot.lane.b32.xlu1 %v554_v33, %s1553_s13 }
0x1185   :  { %v557_v34 = vpop.permute.xlu1 %556 }
0x1186   :  { %v559_v35 = vadd.f32 %v557_v34, %v509_v17 }
0x1188   :  { %1470 = vtanh.f32 %v559_v35 }
0x118e   :  { %v1471_v36 = vpop.eup %1470 }
0x118f   :  { %v561_v37 = vsub.f32 %v1712_v11, %v1471_v36 }
0x1191   :  { %563 = vrot.lane.b32.xlu2 %v561_v37, %s1554_s14 }
0x11eb   :  { %v564_v38 = vpop.permute.xlu2 %563 }
0x11ec   :  { %v566_v42 = vmul.f32 %v564_v38, %v548_v32 }
0x11ee   :  { %568 = vrot.lane.b32.xlu0 %v566_v42, %s1555_s15 }
0x1260   :  { %v569_v43 = vpop.permute.xlu0 %568 }
0x1261   :  { %v571_v44 = vadd.f32 %v1471_v36, %v569_v43 }
0x1263   :  { %v578_v45 = vpack.c.bf16 %v571_v44, %v571_v44 }
0x1265   :  { %580 = vrot.lane.b32.xlu1 %v578_v45, %s1553_s13 }
0x12d7   :  { %v581_v46 = vpop.permute.xlu1 %580 }
0x12d8   :  { %1343 = vmatmul.msk.bf16.vlgmr.msra.gmra.mxu0 %vm68_vm0, %v581_v46 }
0x1355   :  { %v594_v47 = vpop.f32.mrf.mxu0 }
0x1356   :  { %v595_v48 = vadd.f32 %v1643_v9, %v594_v47 }
0x1358   :  { %619 = vrot.lane.b32.xlu2 %v595_v48, %s1553_s13  ;;  %v598_v51 = vadd.f32 %v595_v48, %v577_v50 }
0x135a   :  { %v1344_v52 = vmul.f32 -1.442695, %v598_v51 }
0x135c   :  { %1472 = vpow2.f32 %v1344_v52 }
0x135d   :  { %v596_v49 = vpop.f32.mrf.mxu0 }
0x1362   :  { %v1473_v53 = vpop.eup %1472 }
0x1363   :  { %v602_v54 = vadd.f32 1.0, %v1473_v53 }
0x1365   :  { %1474 = vrcp.f32 %v602_v54  ;;  %v614_v60 = vand.u32 2147483648, %v602_v54  ;;  %vm608_vm3 = vweird.f32 %v602_v54  ;;  %v612_v61 = vand.u32 2147483647, %v602_v54 }
0x1367   :  { %v615_v62 = vor.u32 1.1754944e-38, %v614_v60  ;;  %vm613_vm5 = vcmp.eq.f32.partialorder %v612_v61, 8.507059e+37 }
0x136b   :  { %v1475_v55 = vpop.eup %1474 }
0x136c   :  { %v604_v56 = vmul.f32 %v1475_v55, %v602_v54  ;;  %vm609_vm2 = vweird.f32 %v1475_v55 }
0x136d   :  { %vm610_vm4 = vmor %vm608_vm3, %vm609_vm2 }
0x136e   :  { %v605_v57 = vsub.f32 1.0, %v604_v56 }
0x1370   :  { %v606_v58 = vmul.f32 %v1475_v55, %v605_v57 }
0x1372   :  { %v607_v59 = vadd.f32 %v1475_v55, %v606_v58 }
0x1374   :  { %v611_v9 = vsel %vm610_vm4, %v1475_v55, %v607_v59 }
0x1375   :  { %v616_v0 = vsel %vm613_vm5, %v615_v62, %v611_v9 }
0x13b2   :  { %v620_v63 = vpop.permute.xlu2 %619 }
0x13b3   :  { %v622_v1 = vmul.f32 %v620_v63, %v616_v0 }
0x13b5   :  { %624 = vrot.lane.b32.xlu0 %v622_v1, %s1553_s13 }
0x13bd   :  { %164 = vrot.lane.b32.xlu0 %v1652_v41, %s1553_s13 }
0x13c5   :  { %369 = vrot.lane.b32.xlu0 %v1688_v6, %s1553_s13 }
0x13cd   :  { %573 = vrot.lane.b32.xlu0 %v571_v44, %s1553_s13 }
0x1427   :  { %v625_v2 = vpop.permute.xlu0 %624 }
0x1428   :  { %v627_v3 = vadd.f32 %v625_v2, %v577_v50 }
0x142a   :  { %1476 = vtanh.f32 %v627_v3 }
0x142f   :  { %v165_v4 = vpop.permute.xlu0 %164 }
0x1430   :  { %v1477_v5 = vpop.eup %1476  ;;  %168 = vst.msk [vmem:[#allocation2] sm:$0x3] %vm167_vm6, %v165_v4 }
0x1431   :  { %v629_v10 = vsub.f32 %v571_v44, %v1477_v5 }
0x1433   :  { %631 = vrot.lane.b32.xlu1 %v629_v10, %s1554_s14 }
0x1437   :  { %v370_v12 = vpop.permute.xlu0 %369 }
0x1438   :  { %372 = vst.msk [vmem:[#allocation2 + $0x6] sm:$0x3] %vm167_vm6, %v370_v12 }
0x143b   :  { %233 = vrot.lane.b32.xlu1 %v1664_v8, %s1553_s13  ;;  %v1412_v8 = vld [vmem:[%s1863_s2 + $0x18] sm:$0xff] }
0x143c   :  { %718 = vmatpush.bf16.msra.mxu2 %v1412_v8  ;;  %781 = vmatpush.bf16.msra.mxu3 %v1412_v8 }
0x143d   :  { %844 = vmatpush.bf16.msrb.mxu0 %v1412_v8 }
0x143f   :  { %v574_v41 = vpop.permute.xlu0 %573 }
0x1440   :  { %576 = vst.msk [vmem:[#allocation2 + $0xc] sm:$0x3] %vm167_vm6, %v574_v41  ;;  %719 = vmatpush.bf16.msra.mxu2 %v1411_v16  ;;  %782 = vmatpush.bf16.msra.mxu3 %v1411_v16 }
0x1441   :  { %845 = vmatpush.bf16.msrb.mxu0 %v1411_v16 }
0x1443   :  { %437 = vrot.lane.b32.xlu1 %v1700_v40, %s1553_s13  ;;  %v1410_v40 = vld [vmem:[%s1862_s1 + $0x18] sm:$0xff]  ;;  %720 = vmatmul.bf16.vlgmr.msra.gmra.mxu2 %v1552_v7 }
0x1444   :  { %686 = vmatpush.bf16.msra.mxu1 %v1410_v40  ;;  %970 = vmatpush.bf16.msrb.mxu2 %v1412_v8 }
0x1445   :  { %1033 = vmatpush.bf16.msrb.mxu3 %v1412_v8  ;;  %1096 = vmatpush.bf16.msra.mxu0 %v1412_v8 }
0x1448   :  { %971 = vmatpush.bf16.msrb.mxu2 %v1411_v16  ;;  %687 = vmatpush.bf16.msra.mxu1 %v1409_v19 }
0x1449   :  { %1034 = vmatpush.bf16.msrb.mxu3 %v1411_v16  ;;  %1097 = vmatpush.bf16.msra.mxu0 %v1411_v16 }
0x144c   :  { %907 = vmatpush.bf16.msrb.mxu1 %v1412_v8 }
0x1450   :  { %908 = vmatpush.bf16.msrb.mxu1 %v1411_v16 }
0x14a5   :  { %v632_v6 = vpop.permute.xlu1 %631 }
0x14a6   :  { %v634_v13 = vmul.f32 %v632_v6, %v616_v0 }
0x14a8   :  { %636 = vrot.lane.b32.xlu2 %v634_v13, %s1555_s15 }
0x14ad   :  { %v234_v14 = vpop.permute.xlu1 %233 }
0x14ae   :  { %236 = vst.msk [vmem:[#allocation2 + $0x2] sm:$0x3] %vm167_vm6, %v234_v14 }
0x14b0   :  { %301 = vrot.lane.b32.xlu2 %v1676_v39, %s1553_s13 }
0x14b5   :  { %v438_v15 = vpop.permute.xlu1 %437 }
0x14b6   :  { %440 = vst.msk [vmem:[#allocation2 + $0x8] sm:$0x3] %vm167_vm6, %v438_v15 }
0x14b8   :  { %505 = vrot.lane.b32.xlu2 %v1712_v11, %s1553_s13 }
0x14c6   :  { %v721_v23 = vpop.f32.mrf.mxu2 }
0x14c7   :  { %v722_v25 = vadd.f32 %v1769_v20, %v721_v23 }
0x14c9   :  { %746 = vrot.lane.b32.xlu2 %v722_v25, %s1553_s13 }
0x14ce   :  { %v723_v26 = vpop.f32.mrf.mxu2 }
0x1502   :  { %v637_v39 = vpop.permute.xlu2 %636 }
0x1503   :  { %v639_v11 = vadd.f32 %v1477_v5, %v637_v39 }
0x1505   :  { %641 = vrot.lane.b32.xlu1 %v639_v11, %s1553_s13 }
0x150a   :  { %v302_v17 = vpop.permute.xlu2 %301 }
0x150b   :  { %304 = vst.msk [vmem:[#allocation2 + $0x4] sm:$0x3] %vm167_vm6, %v302_v17 }
0x1512   :  { %v506_v18 = vpop.permute.xlu2 %505  ;;  %v659_v21 = vld [vmem:[#allocation2] sm:$0xff] }
0x1513   :  { %508 = vst.msk [vmem:[#allocation2 + $0xa] sm:$0x3] %vm167_vm6, %v506_v18 }
0x1523   :  { %v747_v47 = vpop.permute.xlu2 %746 }
0x1577   :  { %v642_v7 = vpop.permute.xlu1 %641 }
0x1578   :  { %644 = vst.msk [vmem:[#allocation2 + $0xe] sm:$0x3] %vm167_vm6, %v642_v7 }
0x157f   :  { %v660_v22 = vld [vmem:[#allocation2 + $0x8] sm:$0xff] }
0x1580   :  { %v661_v24 = vpack.c.bf16 %v660_v22, %v659_v21 }
0x1582   :  { %1363 = vmatmul.msk.bf16.vlgmr.msra.gmra.mxu1 %vm68_vm0, %v661_v24 }
0x1583   :  { %1159 = vmatpush.bf16.msra.mxu1 %v1412_v8 }
0x1587   :  { %1160 = vmatpush.bf16.msra.mxu1 %v1411_v16 }
0x15ff   :  { %v689_v28 = vpop.f32.mrf.mxu1 }
0x1600   :  { %v690_v29 = vadd.f32 %v1425_v27, %v689_v28 }
0x1602   :  { %694 = vst.msk [vmem:[#allocation3] sm:$0xff] %vm86_vm1, %v690_v29 }
0x1607   :  { %v691_v30 = vpop.f32.mrf.mxu1 }
0x1608   :  { %v692_v31 = vadd.f32 %v1425_v27, %v691_v30 }
0x1609   :  { %v696_v32 = vld [vmem:[#allocation3] sm:$0x3]  ;;  %v767_v0 = vld [vmem:[#allocation3 + $0x2] sm:$0x3]  ;;  %v830_v29 = vld [vmem:[#allocation3 + $0x4] sm:$0x3] }
0x160a   :  { %695 = vst.msk [vmem:[#allocation3 + $0x8] sm:$0xff] %vm86_vm1, %v692_v31  ;;  %v725_v33 = vadd.f32 %v722_v25, %v696_v32 }
0x160c   :  { %v1372_v34 = vmul.f32 -1.442695, %v725_v33 }
0x160e   :  { %1478 = vpow2.f32 %v1372_v34 }
0x1614   :  { %v1479_v35 = vpop.eup %1478 }
0x1615   :  { %v729_v36 = vadd.f32 1.0, %v1479_v35 }
0x1617   :  { %1480 = vrcp.f32 %v729_v36  ;;  %v741_v43 = vand.u32 2147483648, %v729_v36  ;;  %v739_v45 = vand.u32 2147483647, %v729_v36  ;;  %vm735_vm8 = vweird.f32 %v729_v36 }
0x1619   :  { %v742_v48 = vor.u32 1.1754944e-38, %v741_v43  ;;  %vm740_vm1 = vcmp.eq.f32.partialorder %v739_v45, 8.507059e+37 }
0x161d   :  { %v1481_v37 = vpop.eup %1480 }
0x161e   :  { %v731_v38 = vmul.f32 %v1481_v37, %v729_v36  ;;  %vm736_vm7 = vweird.f32 %v1481_v37 }
0x161f   :  { %vm737_vm9 = vmor %vm735_vm8, %vm736_vm7 }
0x1620   :  { %v732_v42 = vsub.f32 1.0, %v731_v38 }
0x1622   :  { %v733_v44 = vmul.f32 %v1481_v37, %v732_v42 }
0x1624   :  { %v734_v46 = vadd.f32 %v1481_v37, %v733_v44 }
0x1626   :  { %v738_v49 = vsel %vm737_vm9, %v1481_v37, %v734_v46 }
0x1627   :  { %v743_v50 = vsel %vm740_vm1, %v742_v48, %v738_v49 }
0x1628   :  { %v749_v51 = vmul.f32 %v747_v47, %v743_v50 }
0x162a   :  { %751 = vrot.lane.b32.xlu0 %v749_v51, %s1553_s13 }
0x169c   :  { %v752_v52 = vpop.permute.xlu0 %751 }
0x169d   :  { %v754_v53 = vadd.f32 %v752_v52, %v696_v32 }
0x169f   :  { %1482 = vtanh.f32 %v754_v53 }
0x16a5   :  { %v1483_v54 = vpop.eup %1482 }
0x16a6   :  { %v756_v55 = vsub.f32 0.0, %v1483_v54 }
0x16a8   :  { %758 = vrot.lane.b32.xlu1 %v756_v55, %s1554_s14 }
0x171a   :  { %v759_v56 = vpop.permute.xlu1 %758 }
0x171b   :  { %v761_v57 = vmul.f32 %v759_v56, %v743_v50 }
0x171d   :  { %763 = vrot.lane.b32.xlu2 %v761_v57, %s1555_s15 }
0x1777   :  { %v764_v58 = vpop.permute.xlu2 %763 }
0x1778   :  { %v766_v59 = vadd.f32 %v1483_v54, %v764_v58 }
0x177a   :  { %v768_v60 = vpack.c.bf16 %v766_v59, %v766_v59 }
0x177c   :  { %770 = vrot.lane.b32.xlu0 %v768_v60, %s1553_s13 }
0x17ee   :  { %v771_v61 = vpop.permute.xlu0 %770 }
0x17ef   :  { %1373 = vmatmul.msk.bf16.vlgmr.msra.gmra.mxu3 %vm68_vm0, %v771_v61 }
0x1872   :  { %v784_v9 = vpop.f32.mrf.mxu3 }
0x1873   :  { %v785_v62 = vadd.f32 %v1769_v20, %v784_v9  ;;  %v893_v9 = vld [vmem:[#allocation3 + $0x6] sm:$0x3] }
0x1875   :  { %809 = vrot.lane.b32.xlu1 %v785_v62, %s1553_s13  ;;  %v788_v1 = vadd.f32 %v785_v62, %v767_v0 }
0x1877   :  { %v1374_v2 = vmul.f32 -1.442695, %v788_v1 }
0x1879   :  { %1484 = vpow2.f32 %v1374_v2 }
0x187a   :  { %v786_v63 = vpop.f32.mrf.mxu3 }
0x187f   :  { %v1485_v3 = vpop.eup %1484 }
0x1880   :  { %v792_v4 = vadd.f32 1.0, %v1485_v3 }
0x1882   :  { %1486 = vrcp.f32 %v792_v4  ;;  %v804_v13 = vand.u32 2147483648, %v792_v4  ;;  %vm798_vm11 = vweird.f32 %v792_v4  ;;  %v802_v14 = vand.u32 2147483647, %v792_v4 }
0x1884   :  { %v805_v8 = vor.u32 1.1754944e-38, %v804_v13  ;;  %vm803_vm13 = vcmp.eq.f32.partialorder %v802_v14, 8.507059e+37 }
0x1888   :  { %v1487_v5 = vpop.eup %1486 }
0x1889   :  { %v794_v10 = vmul.f32 %v1487_v5, %v792_v4  ;;  %vm799_vm10 = vweird.f32 %v1487_v5 }
0x188a   :  { %vm800_vm12 = vmor %vm798_vm11, %vm799_vm10 }
0x188b   :  { %v795_v12 = vsub.f32 1.0, %v794_v10 }
0x188d   :  { %v796_v41 = vmul.f32 %v1487_v5, %v795_v12 }
0x188f   :  { %v797_v6 = vadd.f32 %v1487_v5, %v796_v41 }
0x1891   :  { %v801_v15 = vsel %vm800_vm12, %v1487_v5, %v797_v6 }
0x1892   :  { %v806_v16 = vsel %vm803_vm13, %v805_v8, %v801_v15 }
0x18e7   :  { %v810_v40 = vpop.permute.xlu1 %809 }
0x18e8   :  { %v812_v39 = vmul.f32 %v810_v40, %v806_v16 }
0x18ea   :  { %814 = vrot.lane.b32.xlu2 %v812_v39, %s1553_s13 }
0x1944   :  { %v815_v11 = vpop.permute.xlu2 %814 }
0x1945   :  { %v817_v17 = vadd.f32 %v815_v11, %v767_v0 }
0x1947   :  { %1488 = vtanh.f32 %v817_v17 }
0x194d   :  { %v1489_v18 = vpop.eup %1488 }
0x194e   :  { %v819_v19 = vsub.f32 %v766_v59, %v1489_v18 }
0x1950   :  { %821 = vrot.lane.b32.xlu0 %v819_v19, %s1554_s14 }
0x19c2   :  { %v822_v7 = vpop.permute.xlu0 %821 }
0x19c3   :  { %v824_v21 = vmul.f32 %v822_v7, %v806_v16 }
0x19c5   :  { %826 = vrot.lane.b32.xlu1 %v824_v21, %s1555_s15 }
0x1a37   :  { %v827_v22 = vpop.permute.xlu1 %826 }
0x1a38   :  { %v829_v23 = vadd.f32 %v1489_v18, %v827_v22 }
0x1a3a   :  { %v831_v24 = vpack.c.bf16 %v829_v23, %v829_v23 }
0x1a3c   :  { %833 = vrot.lane.b32.xlu2 %v831_v24, %s1553_s13 }
0x1a96   :  { %v834_v25 = vpop.permute.xlu2 %833 }
0x1a97   :  { %1375 = vmatmul.msk.bf16.vlgmr.msrb.gmra.mxu0 %vm68_vm0, %v834_v25 }
0x1b14   :  { %v847_v26 = vpop.f32.mrf.mxu0 }
0x1b15   :  { %v848_v27 = vadd.f32 %v1769_v20, %v847_v26  ;;  %v956_v26 = vld [vmem:[#allocation3 + $0x8] sm:$0x3] }
0x1b17   :  { %872 = vrot.lane.b32.xlu0 %v848_v27, %s1553_s13  ;;  %v851_v30 = vadd.f32 %v848_v27, %v830_v29 }
0x1b19   :  { %v1376_v31 = vmul.f32 -1.442695, %v851_v30 }
0x1b1b   :  { %1490 = vpow2.f32 %v1376_v31 }
0x1b1c   :  { %v849_v28 = vpop.f32.mrf.mxu0 }
0x1b21   :  { %v1491_v32 = vpop.eup %1490 }
0x1b22   :  { %v855_v33 = vadd.f32 1.0, %v1491_v32 }
0x1b24   :  { %1492 = vrcp.f32 %v855_v33  ;;  %v867_v42 = vand.u32 2147483648, %v855_v33  ;;  %vm861_vm15 = vweird.f32 %v855_v33  ;;  %v865_v43 = vand.u32 2147483647, %v855_v33 }
0x1b26   :  { %v868_v45 = vor.u32 1.1754944e-38, %v867_v42  ;;  %vm866_vm3 = vcmp.eq.f32.partialorder %v865_v43, 8.507059e+37 }
0x1b2a   :  { %v1493_v34 = vpop.eup %1492 }
0x1b2b   :  { %v857_v35 = vmul.f32 %v1493_v34, %v855_v33  ;;  %vm862_vm14 = vweird.f32 %v1493_v34 }
0x1b2c   :  { %vm863_vm2 = vmor %vm861_vm15, %vm862_vm14 }
0x1b2d   :  { %v858_v36 = vsub.f32 1.0, %v857_v35 }
0x1b2f   :  { %v859_v37 = vmul.f32 %v1493_v34, %v858_v36 }
0x1b31   :  { %v860_v38 = vadd.f32 %v1493_v34, %v859_v37 }
0x1b33   :  { %v864_v44 = vsel %vm863_vm2, %v1493_v34, %v860_v38 }
0x1b34   :  { %v869_v47 = vsel %vm866_vm3, %v868_v45, %v864_v44 }
0x1b89   :  { %v873_v46 = vpop.permute.xlu0 %872 }
0x1b8a   :  { %v875_v48 = vmul.f32 %v873_v46, %v869_v47 }
0x1b8c   :  { %877 = vrot.lane.b32.xlu1 %v875_v48, %s1553_s13 }
0x1bfe   :  { %v878_v49 = vpop.permute.xlu1 %877 }
0x1bff   :  { %v880_v50 = vadd.f32 %v878_v49, %v830_v29 }
0x1c01   :  { %1494 = vtanh.f32 %v880_v50 }
0x1c07   :  { %v1495_v51 = vpop.eup %1494 }
0x1c08   :  { %v882_v52 = vsub.f32 %v829_v23, %v1495_v51 }
0x1c0a   :  { %884 = vrot.lane.b32.xlu2 %v882_v52, %s1554_s14 }
0x1c64   :  { %v885_v53 = vpop.permute.xlu2 %884 }
0x1c65   :  { %v887_v54 = vmul.f32 %v885_v53, %v869_v47 }
0x1c67   :  { %889 = vrot.lane.b32.xlu0 %v887_v54, %s1555_s15 }
0x1cd9   :  { %v890_v55 = vpop.permute.xlu0 %889 }
0x1cda   :  { %v892_v56 = vadd.f32 %v1495_v51, %v890_v55 }
0x1cdc   :  { %v894_v57 = vpack.c.bf16 %v892_v56, %v892_v56 }
0x1cde   :  { %896 = vrot.lane.b32.xlu1 %v894_v57, %s1553_s13 }
0x1d50   :  { %v897_v58 = vpop.permute.xlu1 %896 }
0x1d51   :  { %1377 = vmatmul.msk.bf16.vlgmr.msrb.gmra.mxu1 %vm68_vm0, %v897_v58 }
0x1dce   :  { %v910_v59 = vpop.f32.mrf.mxu1 }
0x1dcf   :  { %v911_v60 = vadd.f32 %v1769_v20, %v910_v59  ;;  %v1019_v59 = vld [vmem:[#allocation3 + $0xa] sm:$0x3] }
0x1dd1   :  { %935 = vrot.lane.b32.xlu2 %v911_v60, %s1553_s13  ;;  %v914_v62 = vadd.f32 %v911_v60, %v893_v9 }
0x1dd3   :  { %v1378_v63 = vmul.f32 -1.442695, %v914_v62 }
0x1dd5   :  { %1496 = vpow2.f32 %v1378_v63 }
0x1dd6   :  { %v912_v61 = vpop.f32.mrf.mxu1 }
0x1ddb   :  { %v1497_v0 = vpop.eup %1496 }
0x1ddc   :  { %v918_v1 = vadd.f32 1.0, %v1497_v0 }
0x1dde   :  { %1498 = vrcp.f32 %v918_v1  ;;  %v930_v12 = vand.u32 2147483648, %v918_v1  ;;  %vm924_vm5 = vweird.f32 %v918_v1  ;;  %v928_v41 = vand.u32 2147483647, %v918_v1 }
0x1de0   :  { %v931_v13 = vor.u32 1.1754944e-38, %v930_v12  ;;  %vm929_vm7 = vcmp.eq.f32.partialorder %v928_v41, 8.507059e+37 }
0x1de4   :  { %v1499_v2 = vpop.eup %1498 }
0x1de5   :  { %v920_v3 = vmul.f32 %v1499_v2, %v918_v1  ;;  %vm925_vm4 = vweird.f32 %v1499_v2 }
0x1de6   :  { %vm926_vm6 = vmor %vm924_vm5, %vm925_vm4 }
0x1de7   :  { %v921_v4 = vsub.f32 1.0, %v920_v3 }
0x1de9   :  { %v922_v5 = vmul.f32 %v1499_v2, %v921_v4 }
0x1deb   :  { %v923_v10 = vadd.f32 %v1499_v2, %v922_v5 }
0x1ded   :  { %v927_v6 = vsel %vm926_vm6, %v1499_v2, %v923_v10 }
0x1dee   :  { %v932_v15 = vsel %vm929_vm7, %v931_v13, %v927_v6 }
0x1e2b   :  { %v936_v14 = vpop.permute.xlu2 %935 }
0x1e2c   :  { %v938_v8 = vmul.f32 %v936_v14, %v932_v15 }
0x1e2e   :  { %940 = vrot.lane.b32.xlu0 %v938_v8, %s1553_s13 }
0x1ea0   :  { %v941_v40 = vpop.permute.xlu0 %940 }
0x1ea1   :  { %v943_v16 = vadd.f32 %v941_v40, %v893_v9 }
0x1ea3   :  { %1500 = vtanh.f32 %v943_v16 }
0x1ea9   :  { %v1501_v39 = vpop.eup %1500 }
0x1eaa   :  { %v945_v11 = vsub.f32 %v892_v56, %v1501_v39 }
0x1eac   :  { %947 = vrot.lane.b32.xlu1 %v945_v11, %s1554_s14 }
0x1f1e   :  { %v948_v17 = vpop.permute.xlu1 %947 }
0x1f1f   :  { %v950_v18 = vmul.f32 %v948_v17, %v932_v15 }
0x1f21   :  { %952 = vrot.lane.b32.xlu2 %v950_v18, %s1555_s15 }
0x1f7b   :  { %v953_v19 = vpop.permute.xlu2 %952 }
0x1f7c   :  { %v955_v7 = vadd.f32 %v1501_v39, %v953_v19 }
0x1f7e   :  { %v957_v21 = vpack.c.bf16 %v955_v7, %v955_v7 }
0x1f80   :  { %959 = vrot.lane.b32.xlu0 %v957_v21, %s1553_s13 }
0x1ff2   :  { %v960_v22 = vpop.permute.xlu0 %959 }
0x1ff3   :  { %1379 = vmatmul.msk.bf16.vlgmr.msrb.gmra.mxu2 %vm68_vm0, %v960_v22 }
0x2076   :  { %v973_v23 = vpop.f32.mrf.mxu2 }
0x2077   :  { %v974_v24 = vadd.f32 %v1769_v20, %v973_v23  ;;  %v1082_v23 = vld [vmem:[#allocation3 + $0xc] sm:$0x3] }
0x2079   :  { %998 = vrot.lane.b32.xlu1 %v974_v24, %s1553_s13  ;;  %v977_v27 = vadd.f32 %v974_v24, %v956_v26 }
0x207b   :  { %v1380_v28 = vmul.f32 -1.442695, %v977_v27 }
0x207d   :  { %1502 = vpow2.f32 %v1380_v28 }
0x207e   :  { %v975_v25 = vpop.f32.mrf.mxu2 }
0x2083   :  { %v1503_v29 = vpop.eup %1502 }
0x2084   :  { %v981_v30 = vadd.f32 1.0, %v1503_v29 }
0x2086   :  { %1504 = vrcp.f32 %v981_v30  ;;  %v993_v36 = vand.u32 2147483648, %v981_v30  ;;  %vm987_vm9 = vweird.f32 %v981_v30  ;;  %v991_v37 = vand.u32 2147483647, %v981_v30 }
0x2088   :  { %v994_v42 = vor.u32 1.1754944e-38, %v993_v36  ;;  %vm992_vm10 = vcmp.eq.f32.partialorder %v991_v37, 8.507059e+37 }
0x208c   :  { %v1505_v31 = vpop.eup %1504 }
0x208d   :  { %v983_v32 = vmul.f32 %v1505_v31, %v981_v30  ;;  %vm988_vm8 = vweird.f32 %v1505_v31 }
0x208e   :  { %vm989_vm1 = vmor %vm987_vm9, %vm988_vm8  ;;  %vm1295_vm9 = vcmask 17408  }
0x208f   :  { %v984_v33 = vsub.f32 1.0, %v983_v32 }
0x2091   :  { %v985_v34 = vmul.f32 %v1505_v31, %v984_v33 }
0x2093   :  { %v986_v35 = vadd.f32 %v1505_v31, %v985_v34 }
0x2095   :  { %v990_v38 = vsel %vm989_vm1, %v1505_v31, %v986_v35 }
0x2096   :  { %v995_v44 = vsel %vm992_vm10, %v994_v42, %v990_v38 }
0x20eb   :  { %v999_v43 = vpop.permute.xlu1 %998 }
0x20ec   :  { %v1001_v45 = vmul.f32 %v999_v43, %v995_v44 }
0x20ee   :  { %1003 = vrot.lane.b32.xlu2 %v1001_v45, %s1553_s13 }
0x2148   :  { %v1004_v46 = vpop.permute.xlu2 %1003 }
0x2149   :  { %v1006_v47 = vadd.f32 %v1004_v46, %v956_v26 }
0x214b   :  { %1506 = vtanh.f32 %v1006_v47 }
0x2151   :  { %v1507_v48 = vpop.eup %1506 }
0x2152   :  { %v1008_v49 = vsub.f32 %v955_v7, %v1507_v48 }
0x2154   :  { %1010 = vrot.lane.b32.xlu0 %v1008_v49, %s1554_s14 }
0x21c6   :  { %v1011_v50 = vpop.permute.xlu0 %1010 }
0x21c7   :  { %v1013_v51 = vmul.f32 %v1011_v50, %v995_v44 }
0x21c9   :  { %1015 = vrot.lane.b32.xlu1 %v1013_v51, %s1555_s15 }
0x223b   :  { %v1016_v52 = vpop.permute.xlu1 %1015 }
0x223c   :  { %v1018_v53 = vadd.f32 %v1507_v48, %v1016_v52 }
0x223e   :  { %v1020_v54 = vpack.c.bf16 %v1018_v53, %v1018_v53 }
0x2240   :  { %1022 = vrot.lane.b32.xlu2 %v1020_v54, %s1553_s13 }
0x229a   :  { %v1023_v55 = vpop.permute.xlu2 %1022 }
0x229b   :  { %1381 = vmatmul.msk.bf16.vlgmr.msrb.gmra.mxu3 %vm68_vm0, %v1023_v55 }
0x231e   :  { %v1036_v56 = vpop.f32.mrf.mxu3 }
0x231f   :  { %v1037_v57 = vadd.f32 %v1769_v20, %v1036_v56  ;;  %v1145_v56 = vld [vmem:[#allocation3 + $0xe] sm:$0x3] }
0x2321   :  { %1061 = vrot.lane.b32.xlu0 %v1037_v57, %s1553_s13  ;;  %v1040_v60 = vadd.f32 %v1037_v57, %v1019_v59 }
0x2323   :  { %v1382_v61 = vmul.f32 -1.442695, %v1040_v60 }
0x2325   :  { %1508 = vpow2.f32 %v1382_v61 }
0x2326   :  { %v1038_v58 = vpop.f32.mrf.mxu3 }
0x232b   :  { %v1509_v9 = vpop.eup %1508 }
0x232c   :  { %v1044_v62 = vadd.f32 1.0, %v1509_v9 }
0x232e   :  { %1510 = vrcp.f32 %v1044_v62  ;;  %v1056_v4 = vand.u32 2147483648, %v1044_v62  ;;  %vm1050_vm12 = vweird.f32 %v1044_v62  ;;  %v1054_v5 = vand.u32 2147483647, %v1044_v62 }
0x2330   :  { %v1057_v12 = vor.u32 1.1754944e-38, %v1056_v4  ;;  %vm1055_vm14 = vcmp.eq.f32.partialorder %v1054_v5, 8.507059e+37 }
0x2334   :  { %v1511_v63 = vpop.eup %1510 }
0x2335   :  { %v1046_v0 = vmul.f32 %v1511_v63, %v1044_v62  ;;  %vm1051_vm11 = vweird.f32 %v1511_v63 }
0x2336   :  { %vm1052_vm13 = vmor %vm1050_vm12, %vm1051_vm11 }
0x2337   :  { %v1047_v1 = vsub.f32 1.0, %v1046_v0 }
0x2339   :  { %v1048_v2 = vmul.f32 %v1511_v63, %v1047_v1 }
0x233b   :  { %v1049_v3 = vadd.f32 %v1511_v63, %v1048_v2 }
0x233d   :  { %v1053_v10 = vsel %vm1052_vm13, %v1511_v63, %v1049_v3 }
0x233e   :  { %v1058_v6 = vsel %vm1055_vm14, %v1057_v12, %v1053_v10 }
0x2393   :  { %v1062_v41 = vpop.permute.xlu0 %1061 }
0x2394   :  { %v1064_v13 = vmul.f32 %v1062_v41, %v1058_v6 }
0x2396   :  { %1066 = vrot.lane.b32.xlu1 %v1064_v13, %s1553_s13 }
0x2408   :  { %v1067_v14 = vpop.permute.xlu1 %1066 }
0x2409   :  { %v1069_v15 = vadd.f32 %v1067_v14, %v1019_v59 }
0x240b   :  { %1512 = vtanh.f32 %v1069_v15 }
0x2411   :  { %v1513_v8 = vpop.eup %1512 }
0x2412   :  { %v1071_v40 = vsub.f32 %v1018_v53, %v1513_v8 }
0x2414   :  { %1073 = vrot.lane.b32.xlu2 %v1071_v40, %s1554_s14  ;;  %v1413_v40 = vld [vmem:[%s1866_s5] sm:$0xff] }
0x246e   :  { %v1074_v16 = vpop.permute.xlu2 %1073 }
0x246f   :  { %v1076_v39 = vmul.f32 %v1074_v16, %v1058_v6 }
0x2471   :  { %1078 = vrot.lane.b32.xlu0 %v1076_v39, %s1555_s15 }
0x24e3   :  { %v1079_v11 = vpop.permute.xlu0 %1078 }
0x24e4   :  { %v1081_v17 = vadd.f32 %v1513_v8, %v1079_v11  ;;  %v1414_v8 = vld [vmem:[%s1866_s5 + $0x8] sm:$0xff] }
0x24e5   :  { %1241 = vmatpush.bf16.msra.mxu2 %v1414_v8 }
0x24e6   :  { %v1083_v18 = vpack.c.bf16 %v1081_v17, %v1081_v17 }
0x24e8   :  { %1085 = vrot.lane.b32.xlu1 %v1083_v18, %s1553_s13 }
0x24e9   :  { %1242 = vmatpush.bf16.msra.mxu2 %v1413_v40 }
0x255a   :  { %v1086_v19 = vpop.permute.xlu1 %1085 }
0x255b   :  { %1383 = vmatmul.msk.bf16.vlgmr.msra.gmra.mxu0 %vm68_vm0, %v1086_v19  ;;  %v1415_v19 = vld [vmem:[%s1870_s9] sm:$0xff] }
0x25d8   :  { %v1099_v7 = vpop.f32.mrf.mxu0 }
0x25d9   :  { %v1100_v21 = vadd.f32 %v1769_v20, %v1099_v7  ;;  %v1426_v7 = vld [vmem:[%s1867_s6] ss:$0 sm:$0xff]  ;;  %s1556_s6 = smov [#allocation4]  }
0x25da   :  { %s1302_s18 = sshll.u32 %s1556_s6, 4  ;;  %s1303_s18 = int_to_ptr.vmem [resolvable:$true] %s1302_s18 }
0x25db   :  { %1124 = vrot.lane.b32.xlu2 %v1100_v21, %s1553_s13  ;;  %v1103_v24 = vadd.f32 %v1100_v21, %v1082_v23  ;;  %v1427_v21 = vld [vmem:[%s1868_s7] ss:$0 sm:$0xff] }
0x25dd   :  { %v1384_v25 = vmul.f32 -1.442695, %v1103_v24  ;;  %v1428_v24 = vld [vmem:[%s1869_s8] ss:$0 sm:$0xff] }
0x25df   :  { %1514 = vpow2.f32 %v1384_v25 }
0x25e0   :  { %v1101_v22 = vpop.f32.mrf.mxu0 }
0x25e5   :  { %v1515_v26 = vpop.eup %1514 }
0x25e6   :  { %v1107_v27 = vadd.f32 1.0, %v1515_v26 }
0x25e8   :  { %1516 = vrcp.f32 %v1107_v27  ;;  %v1119_v33 = vand.u32 2147483648, %v1107_v27  ;;  %vm1113_vm2 = vweird.f32 %v1107_v27  ;;  %v1117_v34 = vand.u32 2147483647, %v1107_v27 }
0x25ea   :  { %v1120_v36 = vor.u32 1.1754944e-38, %v1119_v33  ;;  %vm1118_vm4 = vcmp.eq.f32.partialorder %v1117_v34, 8.507059e+37 }
0x25ee   :  { %v1517_v28 = vpop.eup %1516 }
0x25ef   :  { %v1109_v29 = vmul.f32 %v1517_v28, %v1107_v27  ;;  %vm1114_vm15 = vweird.f32 %v1517_v28 }
0x25f0   :  { %vm1115_vm3 = vmor %vm1113_vm2, %vm1114_vm15 }
0x25f1   :  { %v1110_v30 = vsub.f32 1.0, %v1109_v29  ;;  %v1429_v29 = vld [vmem:[%s1871_s10] ss:$0 sm:$0xff] }
0x25f3   :  { %v1111_v31 = vmul.f32 %v1517_v28, %v1110_v30 }
0x25f5   :  { %v1112_v32 = vadd.f32 %v1517_v28, %v1111_v31 }
0x25f7   :  { %v1116_v35 = vsel %vm1115_vm3, %v1517_v28, %v1112_v32 }
0x25f8   :  { %v1121_v38 = vsel %vm1118_vm4, %v1120_v36, %v1116_v35 }
0x2635   :  { %v1125_v37 = vpop.permute.xlu2 %1124 }
0x2636   :  { %v1127_v42 = vmul.f32 %v1125_v37, %v1121_v38 }
0x2638   :  { %1129 = vrot.lane.b32.xlu0 %v1127_v42, %s1553_s13 }
0x26aa   :  { %v1130_v43 = vpop.permute.xlu0 %1129 }
0x26ab   :  { %v1132_v44 = vadd.f32 %v1130_v43, %v1082_v23 }
0x26ad   :  { %1518 = vtanh.f32 %v1132_v44 }
0x26b3   :  { %v1519_v45 = vpop.eup %1518 }
0x26b4   :  { %v1134_v46 = vsub.f32 %v1081_v17, %v1519_v45  ;;  %v1416_v17 = vld [vmem:[%s1870_s9 + $0x8] sm:$0xff] }
0x26b5   :  { %1288 = vmatpush.bf16.msra.mxu3 %v1416_v17 }
0x26b6   :  { %1136 = vrot.lane.b32.xlu1 %v1134_v46, %s1554_s14 }
0x26b9   :  { %1289 = vmatpush.bf16.msra.mxu3 %v1415_v19 }
0x2728   :  { %v1137_v47 = vpop.permute.xlu1 %1136 }
0x2729   :  { %v1139_v48 = vmul.f32 %v1137_v47, %v1121_v38 }
0x272b   :  { %1141 = vrot.lane.b32.xlu2 %v1139_v48, %s1555_s15 }
0x2785   :  { %v1142_v49 = vpop.permute.xlu2 %1141 }
0x2786   :  { %v1144_v50 = vadd.f32 %v1519_v45, %v1142_v49 }
0x2788   :  { %v1146_v51 = vpack.c.bf16 %v1144_v50, %v1144_v50 }
0x278a   :  { %1148 = vrot.lane.b32.xlu0 %v1146_v51, %s1553_s13 }
0x27fc   :  { %v1149_v52 = vpop.permute.xlu0 %1148 }
0x27fd   :  { %1385 = vmatmul.msk.bf16.vlgmr.msra.gmra.mxu1 %vm68_vm0, %v1149_v52 }
0x287a   :  { %v1162_v53 = vpop.f32.mrf.mxu1 }
0x287b   :  { %v1163_v54 = vadd.f32 %v1769_v20, %v1162_v53 }
0x287d   :  { %1187 = vrot.lane.b32.xlu1 %v1163_v54, %s1553_s13  ;;  %v1166_v57 = vadd.f32 %v1163_v54, %v1145_v56 }
0x287f   :  { %v1386_v58 = vmul.f32 -1.442695, %v1166_v57 }
0x2881   :  { %1520 = vpow2.f32 %v1386_v58 }
0x2882   :  { %v1164_v55 = vpop.f32.mrf.mxu1 }
0x2887   :  { %v1521_v59 = vpop.eup %1520 }
0x2888   :  { %v1170_v60 = vadd.f32 1.0, %v1521_v59 }
0x288a   :  { %1522 = vrcp.f32 %v1170_v60  ;;  %v1182_v1 = vand.u32 2147483648, %v1170_v60  ;;  %vm1176_vm6 = vweird.f32 %v1170_v60  ;;  %v1180_v2 = vand.u32 2147483647, %v1170_v60 }
0x288c   :  { %v1183_v3 = vor.u32 1.1754944e-38, %v1182_v1  ;;  %vm1181_vm8 = vcmp.eq.f32.partialorder %v1180_v2, 8.507059e+37 }
0x2890   :  { %v1523_v61 = vpop.eup %1522 }
0x2891   :  { %v1172_v9 = vmul.f32 %v1523_v61, %v1170_v60  ;;  %vm1177_vm5 = vweird.f32 %v1523_v61 }
0x2892   :  { %vm1178_vm7 = vmor %vm1176_vm6, %vm1177_vm5 }
0x2893   :  { %v1173_v62 = vsub.f32 1.0, %v1172_v9 }
0x2895   :  { %v1174_v63 = vmul.f32 %v1523_v61, %v1173_v62 }
0x2897   :  { %v1175_v0 = vadd.f32 %v1523_v61, %v1174_v63 }
0x2899   :  { %v1179_v20 = vsel %vm1178_vm7, %v1523_v61, %v1175_v0 }
0x289a   :  { %v1184_v5 = vsel %vm1181_vm8, %v1183_v3, %v1179_v20 }
0x28ef   :  { %v1188_v4 = vpop.permute.xlu1 %1187 }
0x28f0   :  { %v1190_v10 = vmul.f32 %v1188_v4, %v1184_v5 }
0x28f2   :  { %1192 = vrot.lane.b32.xlu2 %v1190_v10, %s1553_s13 }
0x294c   :  { %v1193_v12 = vpop.permute.xlu2 %1192 }
0x294d   :  { %v1195_v41 = vadd.f32 %v1193_v12, %v1145_v56 }
0x294f   :  { %1524 = vtanh.f32 %v1195_v41 }
0x2955   :  { %v1525_v6 = vpop.eup %1524 }
0x2956   :  { %v1197_v13 = vsub.f32 %v1144_v50, %v1525_v6 }
0x2958   :  { %1199 = vrot.lane.b32.xlu0 %v1197_v13, %s1554_s14 }
0x29ca   :  { %v1200_v14 = vpop.permute.xlu0 %1199 }
0x29cb   :  { %v1202_v15 = vmul.f32 %v1200_v14, %v1184_v5 }
0x29cd   :  { %1204 = vrot.lane.b32.xlu1 %v1202_v15, %s1555_s15 }
0x2a3f   :  { %v1205_v16 = vpop.permute.xlu1 %1204 }
0x2a40   :  { %v1207_v39 = vadd.f32 %v1525_v6, %v1205_v16 }
0x2a42   :  { %v1208_v11 = vpack.c.bf16 %v1207_v39, %v1207_v39 }
0x2a44   :  { %1218 = vrot.lane.b32.xlu2 %v1208_v11, %s1553_s13 }
0x2a9e   :  { %v1219_v18 = vpop.permute.xlu2 %1218 }
0x2a9f   :  { %1395 = vmatmul.msk.bf16.vlgmr.msra.gmra.mxu2 %vm68_vm0, %v1219_v18 }
0x2b22   :  { %v1244_v22 = vpop.f32.mrf.mxu2 }
0x2b23   :  { %v1245_v23 = vadd.f32 %v1426_v7, %v1244_v22 }
0x2b25   :  { %v1252_v25 = vmul.f32 %v1427_v21, %v1245_v23 }
0x2b27   :  { %v1257_v26 = vadd.f32 %v1428_v24, %v1252_v25 }
0x2b29   :  { %v1258_v27 = vpack.c.bf16 %v1257_v26, %v1257_v26 }
0x2b2a   :  { %v1246_v28 = vpop.f32.mrf.mxu2 }
0x2b2b   :  { %1404 = vmatmul.msk.bf16.vlgmr.msra.gmra.mxu3 %vm68_vm0, %v1258_v27 }
0x2bae   :  { %v1291_v30 = vpop.f32.mrf.mxu3 }
0x2baf   :  { %v1292_v31 = vadd.f32 %v1429_v29, %v1291_v30 }
0x2bb1   :  { %1296 = vst.msk [vmem:[#allocation4] sm:$0x3] %vm1295_vm9, %v1292_v31 }
0x2bb2   :  { %1307 = dma.vmem_to_hbm [thread:$0]  %s1303_s18, 32, %s1305_s20, [#allocation5]  }
0x2bb6   :  { %v1293_v32 = vpop.f32.mrf.mxu3 }
0x2bb7   :  { %1550 = dma.done.wait [#allocation5], 32  }
0x2bb8   :  { %1551 = vsyncadd [#allocation5], 4294967264 }
0x2bb9   :  { %1312 = vsyncpa [#allocation5], 1 }

</bundles_post_ra>
